<compile_context>
chip_gen: v7x
topology: tpu7x:2x2x1
jax: 0.10.0
libtpu: 0.0.40
codegen_flags: <defaults>
</compile_context>

<pallas_src>
import jax
import jax.numpy as jnp
import numpy as np
from jax import lax
from jax.experimental import pallas as pl
from jax.experimental.pallas import tpu as pltpu

# ----------------------------- static model dims -----------------------------
_B = 2          # graphs per batch
_N_PER = 16     # nodes per graph
_E_PER = 32     # covalent (bg) edges per graph
_E3_PER = 32    # non-covalent (bg3) edges per graph
_FN = 64        # node_feat_size
_FE = 64        # edge_feat_size (bg)      (bg3 edge feature dim is 1)
_G = 128        # graph_feat_size
_O = 128        # outdim_g3
_DFC = 128      # d_FC_layer   (n_FC_layer = 2, n_tasks = 1)

assert _FN + _FE == 128 and _G == 128 and _O == 128 and _DFC == 128

# ----------------------------- parameter packing -----------------------------
_SQ_MATS = ("Wpe1", "Wet", "Wpn2", "Wm1_m", "Wm2", "Wm3", "W2i", "W2a")      # [128,128]
_GRU_MATS = ("Wih1", "Whh1", "Wih2", "Whh2")                                 # [128,384]
_WIDE_MATS = ("W1i", "W1a")                                                  # [256,128]
_SCALARS = ("bpe2", "bpe_g", "b_ew", "b_nw", "b3i", "b3a", "w_inter", "w_intra")

_VEC_WIDTHS = {
    "bpn": _G, "bpe1": _G, "wpe2": 2 * _G, "bet": _G,
    "bih1": 3 * _G, "bhh1": 3 * _G,
    "wpe_g": 2 * _G, "bpn2": _G, "bih2": 3 * _G, "bhh2": 3 * _G,
    "bn_g_w": _G, "bn_g_b": _G,
    "wm1_e": _O, "bm1": _O, "bm2": _O, "bm3": _O, "bn3_w": _O, "bn3_b": _O,
    "w_ew": _O, "w_nw": _G,
    "fc1i_b": _DFC, "bn1i_w": _DFC, "bn1i_b": _DFC,
    "fc2i_b": _DFC, "bn2i_w": _DFC, "bn2i_b": _DFC, "w3i": _DFC,
    "fc1a_b": _DFC, "bn1a_w": _DFC, "bn1a_b": _DFC,
    "fc2a_b": _DFC, "bn2a_w": _DFC, "bn2a_b": _DFC, "w3a": _DFC,
}
_VIDX = {name: i for i, name in enumerate(_VEC_WIDTHS)}
_VEC_PACK_WIDTH = 3 * _G


# ------------------------------- forward math --------------------------------
def _forward_math(nf, ef, ef3, src, dst, src3, dst3, p, *, n_graphs, approx_recip):
    """Full DTIPredictorV4_V2_InTra_Inter forward.  Shared by kernel & reference."""
    f32, bf16 = jnp.float32, jnp.bfloat16
    N = nf.shape[0]
    G = p["Wpn"].shape[1]

    def mmb(a, b):
        # bf16 MXU operands, f32 accumulation (exact for 0/1 one-hot operands).
        return jnp.dot(a.astype(bf16), b.astype(bf16), preferred_element_type=f32)

    def recip(x):
        return pl.reciprocal(x, approx=True) if approx_recip else 1.0 / x

    def lrelu(x):
        return jnp.where(x > 0, x, 0.01 * x)

    def elu(x):
        return jnp.where(x > 0, x, jnp.exp(jnp.minimum(x, 0.0)) - 1.0)

    def sigm(x):
        # sigmoid via EUP tanh (no VALU division, no logistic lowering needed)
        return 0.5 * (jnp.tanh(0.5 * x) + 1.0)

    def gru(x, h, Wih, bih, Whh, bhh):
        Gh = h.shape[1]
        gi = mmb(x, Wih) + bih
        gh = mmb(h, Whh) + bhh
        r = sigm(gi[:, :Gh] + gh[:, :Gh])
        z = sigm(gi[:, Gh:2 * Gh] + gh[:, Gh:2 * Gh])
        n = jnp.tanh(gi[:, 2 * Gh:] + r * gh[:, 2 * Gh:])
        return (1.0 - z) * n + z * h

    def batchnorm(x, w, b):
        # BatchNorm1d, training-mode batch statistics (biased var), eps=1e-5.
        # TODO(synk): running-stat update / eval-mode stats are not modeled.
        mu = jnp.mean(x, axis=0, keepdims=True)
        var = jnp.mean((x - mu) ** 2, axis=0, keepdims=True)
        return w * (x - mu) * lax.rsqrt(var + 1e-5) + b

    def onehot(idx_col, n):
        ids = lax.broadcasted_iota(jnp.int32, (idx_col.shape[0], n), 1)
        return (ids == idx_col).astype(f32)

    # ---- incidence one-hots built in-kernel from int32 index columns --------
    S_f = onehot(src, N)       # [E, N] source gather
    D_f = onehot(dst, N)       # [E, N] destination gather
    Dt_f = D_f.T               # [N, E] destination scatter-sum (in-VMEM transpose)
    D_m = D_f > 0.5            # bool mask for per-destination max

    def edge_softmax(logits):  # softmax over incoming edges, grouped by destination
        masked = jnp.where(D_m, logits, -1e30)                       # [E, N]
        node_max = jnp.max(masked, axis=0, keepdims=True)            # [1, N]
        dst_max = jnp.sum(D_f * node_max, axis=1, keepdims=True)     # [E, 1]
        ex = jnp.exp(logits - dst_max)
        node_sum = jnp.sum(D_f * ex, axis=0, keepdims=True)          # [1, N]
        dst_sum = jnp.sum(D_f * node_sum, axis=1, keepdims=True)     # [E, 1]
        return ex * recip(dst_sum)

    # ============================== cov_graph ================================
    # GetContext
    hv_new = lrelu(mmb(nf, p["Wpn"]) + p["bpn"])                              # [N, G]
    src_hv = mmb(S_f, nf)                                                     # [E, Fn]
    he1 = lrelu(mmb(jnp.concatenate([src_hv, ef], axis=1), p["Wpe1"]) + p["bpe1"])
    dst_hvnew = mmb(D_f, hv_new)                                              # [E, G]
    logits1 = lrelu(jnp.sum(dst_hvnew * p["wpe2"][:, :G]
                            + he1 * p["wpe2"][:, G:2 * G],
                            axis=1, keepdims=True) + p["bpe2"])               # [E,1] VPU
    a1 = edge_softmax(logits1)
    e_msg = a1 * (mmb(he1, p["Wet"]) + p["bet"])                              # [E, G]
    ctx1 = elu(mmb(Dt_f, e_msg))                                              # [N, G]
    h1 = jnp.maximum(gru(ctx1, hv_new, p["Wih1"], p["bih1"], p["Whh1"], p["bhh1"]), 0.0)

    # GNNLayer (num_layers=2 -> one layer)
    dst2 = mmb(D_f, h1)
    src2 = mmb(S_f, h1)
    logits2 = lrelu(jnp.sum(dst2 * p["wpe_g"][:, :G]
                            + src2 * p["wpe_g"][:, G:2 * G],
                            axis=1, keepdims=True) + p["bpe_g"])              # [E,1] VPU
    a2 = edge_softmax(logits2)
    hv_proj = mmb(h1, p["Wpn2"]) + p["bpn2"]                                  # [N, G]
    ctx2 = elu(mmb(Dt_f, a2 * mmb(S_f, hv_proj)))                             # [N, G]
    h2 = jnp.maximum(gru(ctx2, h1, p["Wih2"], p["bih2"], p["Whh2"], p["bhh2"]), 0.0)
    h2 = batchnorm(h2, p["bn_g_w"], p["bn_g_b"])
    atom = h1 + h2                                                            # sum_node_feats

    # ========================== noncov_graph (bg3) ===========================
    S3_f = onehot(src3, N)
    D3_f = onehot(dst3, N)
    m3 = mmb(S3_f + D3_f, atom)                       # u_add_v: h[src3] + h[dst3]
    # MLP input is cat([e3 (dim 1), m3 (dim G)]); the 1-wide channel is a VPU
    # broadcast multiply with row 0 of the first Linear instead of a 129-wide concat.
    e3 = lrelu(mmb(m3, p["Wm1_m"]) + ef3 * p["wm1_e"] + p["bm1"])
    e3 = lrelu(mmb(e3, p["Wm2"]) + p["bm2"])
    e3 = lrelu(mmb(e3, p["Wm3"]) + p["bm3"])
    e3 = batchnorm(e3, p["bn3_w"], p["bn3_b"])        # dropout p=0 -> identity

    # =============================== readouts ================================
    w_e = jnp.tanh(jnp.sum(e3 * p["w_ew"], axis=1, keepdims=True) + p["b_ew"])    # [E3,1]
    w_n = sigm(jnp.sum(atom * p["w_nw"], axis=1, keepdims=True) + p["b_nw"])      # [N,1]
    we3 = w_e * e3
    wat = w_n * atom
    e3_per = e3.shape[0] // n_graphs
    n_per = atom.shape[0] // n_graphs
    s_i, m_i, s_a, m_a = [], [], [], []
    for b in range(n_graphs):  # graphs are contiguous equal-size blocks
        s_i.append(jnp.sum(we3[b * e3_per:(b + 1) * e3_per], axis=0, keepdims=True))
        m_i.append(jnp.max(e3[b * e3_per:(b + 1) * e3_per], axis=0, keepdims=True))
        s_a.append(jnp.sum(wat[b * n_per:(b + 1) * n_per], axis=0, keepdims=True))
        m_a.append(jnp.max(atom[b * n_per:(b + 1) * n_per], axis=0, keepdims=True))
    ro_inter = jnp.concatenate([jnp.concatenate(s_i, 0), jnp.concatenate(m_i, 0)], axis=1)
    ro_intra = jnp.concatenate([jnp.concatenate(s_a, 0), jnp.concatenate(m_a, 0)], axis=1)

    # =============================== FC heads ================================
    def fc_head(x, W1, b1, g1, be1, W2, b2, g2, be2, w3, b3):
        h = batchnorm(lrelu(mmb(x, W1) + b1), g1, be1)
        h = batchnorm(lrelu(mmb(h, W2) + b2), g2, be2)
        return jnp.sum(h * w3, axis=1, keepdims=True) + b3   # Linear(d -> 1) on VPU

    out_i = fc_head(ro_inter, p["W1i"], p["fc1i_b"], p["bn1i_w"], p["bn1i_b"],
                    p["W2i"], p["fc2i_b"], p["bn2i_w"], p["bn2i_b"], p["w3i"], p["b3i"])
    out_a = fc_head(ro_intra, p["W1a"], p["fc1a_b"], p["bn1a_w"], p["bn1a_b"],
                    p["W2a"], p["fc2a_b"], p["bn2a_w"], p["bn2a_b"], p["w3a"], p["b3a"])
    return p["w_inter"] * out_i + p["w_intra"] * out_a        # [B, n_tasks=1]


# --------------------------------- kernel ------------------------------------
def _dti_kernel(nf_ref, ef_ref, ef3_ref, src_ref, dst_ref, src3_ref, dst3_ref,
                wpn_ref, wsq_ref, wgru_ref, wwide_ref, vec_ref, scal_ref, out_ref):
    V = vec_ref[...]

    def vrow(name):
        i = _VIDX[name]
        return V[i:i + 1, 0:_VEC_WIDTHS[name]]        # [1, width] static slice

    p = {"Wpn": wpn_ref[...]}
    for i, name in enumerate(_SQ_MATS):
        p[name] = wsq_ref[i]
    for i, name in enumerate(_GRU_MATS):
        p[name] = wgru_ref[i]
    for i, name in enumerate(_WIDE_MATS):
        p[name] = wwide_ref[i]
    for name in _VEC_WIDTHS:
        p[name] = vrow(name)
    for i, name in enumerate(_SCALARS):
        p[name] = scal_ref[i]

    out_ref[...] = _forward_math(
        nf_ref[...], ef_ref[...], ef3_ref[...],
        src_ref[...], dst_ref[...], src3_ref[...], dst3_ref[...],
        p, n_graphs=_B, approx_recip=True)


def dti_forward(nf, ef, ef3, src, dst, src3, dst3, packed):
    wpn, wsq, wgru, wwide, vecs, scal = packed
    vm = pl.BlockSpec(memory_space=pltpu.MemorySpace.VMEM)
    sm = pl.BlockSpec(memory_space=pltpu.MemorySpace.SMEM)
    return pl.pallas_call(
        _dti_kernel,
        out_shape=jax.ShapeDtypeStruct((_B, 1), jnp.float32),
        in_specs=[vm] * 12 + [sm],
        out_specs=vm,
        compiler_params=pltpu.CompilerParams(vmem_limit_bytes=32 * 1024 * 1024),
    )(nf, ef, ef3, src, dst, src3, dst3, wpn, wsq, wgru, wwide, vecs, scal)


# ------------------------------ params (host) --------------------------------
def init_params(key):
    ks = iter(jax.random.split(key, 80))
    f32 = jnp.float32

    def u(shape, fan_in):
        b = 1.0 / np.sqrt(fan_in)
        return jax.random.uniform(next(ks), shape, f32, -b, b)

    G, O, D, Fn, Fe = _G, _O, _DFC, _FN, _FE
    p = {}
    # cov_graph / GetContext
    p["Wpn"], p["bpn"] = u((Fn, G), Fn), u((1, G), Fn)
    p["Wpe1"], p["bpe1"] = u((Fn + Fe, G), Fn + Fe), u((1, G), Fn + Fe)
    p["wpe2"], p["bpe2"] = u((1, 2 * G), 2 * G), u((), 2 * G)
    p["Wet"], p["bet"] = u((G, G), G), u((1, G), G)
    p["Wih1"], p["bih1"] = u((G, 3 * G), G), u((1, 3 * G), G)
    p["Whh1"], p["bhh1"] = u((G, 3 * G), G), u((1, 3 * G), G)
    # cov_graph / GNNLayer
    p["wpe_g"], p["bpe_g"] = u((1, 2 * G), 2 * G), u((), 2 * G)
    p["Wpn2"], p["bpn2"] = u((G, G), G), u((1, G), G)
    p["Wih2"], p["bih2"] = u((G, 3 * G), G), u((1, 3 * G), G)
    p["Whh2"], p["bhh2"] = u((G, 3 * G), G), u((1, 3 * G), G)
    p["bn_g_w"], p["bn_g_b"] = jnp.ones((1, G), f32), jnp.zeros((1, G), f32)
    # noncov_graph DTIConvGraph3Layer (MLP in_dim = G + 1)
    p["wm1_e"] = u((1, O), G + 1)
    p["Wm1_m"] = u((G, O), G + 1)
    p["bm1"] = u((1, O), G + 1)
    p["Wm2"], p["bm2"] = u((O, O), O), u((1, O), O)
    p["Wm3"], p["bm3"] = u((O, O), O), u((1, O), O)
    p["bn3_w"], p["bn3_b"] = jnp.ones((1, O), f32), jnp.zeros((1, O), f32)
    # readouts
    p["w_ew"], p["b_ew"] = u((1, O), O), u((), O)     # EdgeWeightAndSum: Linear+Tanh
    p["w_nw"], p["b_nw"] = u((1, G), G), u((), G)     # WeightedSumAndMax: Linear+Sigmoid
    # FC_inter (input 2*O)
    p["W1i"], p["fc1i_b"] = u((2 * O, D), 2 * O), u((1, D), 2 * O)
    p["bn1i_w"], p["bn1i_b"] = jnp.ones((1, D), f32), jnp.zeros((1, D), f32)
    p["W2i"], p["fc2i_b"] = u((D, D), D), u((1, D), D)
    p["bn2i_w"], p["bn2i_b"] = jnp.ones((1, D), f32), jnp.zeros((1, D), f32)
    p["w3i"], p["b3i"] = u((1, D), D), u((), D)
    # FC_intra (input 2*G)
    p["W1a"], p["fc1a_b"] = u((2 * G, D), 2 * G), u((1, D), 2 * G)
    p["bn1a_w"], p["bn1a_b"] = jnp.ones((1, D), f32), jnp.zeros((1, D), f32)
    p["W2a"], p["fc2a_b"] = u((D, D), D), u((1, D), D)
    p["bn2a_w"], p["bn2a_b"] = jnp.ones((1, D), f32), jnp.zeros((1, D), f32)
    p["w3a"], p["b3a"] = u((1, D), D), u((), D)
    # learnable mixing weights
    p["w_inter"] = jnp.float32(0.8)
    p["w_intra"] = jnp.float32(0.2)
    return p


def pack_params(p):
    wpn = p["Wpn"]
    wsq = jnp.stack([p[n] for n in _SQ_MATS])        # [8, 128, 128]
    wgru = jnp.stack([p[n] for n in _GRU_MATS])      # [4, 128, 384]
    wwide = jnp.stack([p[n] for n in _WIDE_MATS])    # [2, 256, 128]
    rows = []
    for name, n in _VEC_WIDTHS.items():
        v = p[name]
        assert v.shape == (1, n), (name, v.shape, n)
        rows.append(jnp.pad(v, ((0, 0), (0, _VEC_PACK_WIDTH - n))))
    vecs = jnp.concatenate(rows, axis=0)             # [34, 384]
    scal = jnp.stack([jnp.asarray(p[n], jnp.float32) for n in _SCALARS])  # [8]
    return wpn, wsq, wgru, wwide, vecs, scal


# ----------------------------------- demo ------------------------------------
if __name__ == "__main__":
    key = jax.random.PRNGKey(0)
    k_nf, k_ef, k_e3, k_p = jax.random.split(key, 4)

    N = _B * _N_PER
    E = _B * _E_PER
    E3 = _B * _E3_PER

    node_feats = jax.random.normal(k_nf, (N, _FN), jnp.float32)
    edge_feats = jax.random.normal(k_ef, (E, _FE), jnp.float32)
    edge_feats3 = jax.random.normal(k_e3, (E3, 1), jnp.float32)

    def build_edges(e_per, a, b, c):
        src_l, dst_l = [], []
        for g in range(_B):
            base = g * _N_PER
            for i in range(e_per):
                src_l.append(base + (i * a) % _N_PER)
                dst_l.append(base + (i * b + c) % _N_PER)
        return (jnp.asarray(np.array(src_l, np.int32)[:, None]),
                jnp.asarray(np.array(dst_l, np.int32)[:, None]))

    # every node gets incoming covalent edges (needed for the edge softmax)
    src, dst = build_edges(_E_PER, 3, 5, 1)
    src3, dst3 = build_edges(_E3_PER, 7, 11, 3)

    params = init_params(k_p)
    packed = pack_params(params)

    out = dti_forward(node_feats, edge_feats, edge_feats3, src, dst, src3, dst3, packed)
    out = jax.block_until_ready(out)

    # Pure-JAX reference (same math, exact reciprocal) for a sanity check.
    ref = _forward_math(node_feats, edge_feats, edge_feats3, src, dst, src3, dst3,
                        params, n_graphs=_B, approx_recip=False)
    np.testing.assert_allclose(np.asarray(out), np.asarray(ref), rtol=5e-2, atol=5e-2)

    print("KERNEL_OK")
</pallas_src>

<mosaic_0001>
module attributes {stable_mosaic.version = 11 : i64} {
  func.func @_dti_kernel(%arg0: memref<32x64xf32, #tpu.memory_space<vmem>>, %arg1: memref<64x64xf32, #tpu.memory_space<vmem>>, %arg2: memref<64x1xf32, #tpu.memory_space<vmem>>, %arg3: memref<64x1xi32, #tpu.memory_space<vmem>>, %arg4: memref<64x1xi32, #tpu.memory_space<vmem>>, %arg5: memref<64x1xi32, #tpu.memory_space<vmem>>, %arg6: memref<64x1xi32, #tpu.memory_space<vmem>>, %arg7: memref<64x128xf32, #tpu.memory_space<vmem>>, %arg8: memref<8x128x128xf32, #tpu.memory_space<vmem>>, %arg9: memref<4x128x384xf32, #tpu.memory_space<vmem>>, %arg10: memref<2x256x128xf32, #tpu.memory_space<vmem>>, %arg11: memref<34x384xf32, #tpu.memory_space<vmem>>, %arg12: memref<8xf32, #tpu.memory_space<smem>>, %arg13: memref<2x1xf32, #tpu.memory_space<vmem>>) attributes {dimension_semantics = [], scalar_prefetch = 0 : i64, scratch_operands = 0 : i64, tpu.core_type = #tpu.core_type<tc>} {
    %c0 = arith.constant 0 : index
    %c0_0 = arith.constant 0 : index
    %0 = vector.load %arg11[%c0, %c0_0] : memref<34x384xf32, #tpu.memory_space<vmem>>, vector<34x384xf32>
    %c0_1 = arith.constant 0 : index
    %c0_2 = arith.constant 0 : index
    %1 = vector.load %arg7[%c0_1, %c0_2] : memref<64x128xf32, #tpu.memory_space<vmem>>, vector<64x128xf32>
    %c0_3 = arith.constant 0 : index
    %c0_4 = arith.constant 0 : index
    %c0_5 = arith.constant 0 : index
    %2 = vector.load %arg8[%c0_3, %c0_4, %c0_5] : memref<8x128x128xf32, #tpu.memory_space<vmem>>, vector<1x128x128xf32>
    %3 = vector.shape_cast %2 : vector<1x128x128xf32> to vector<128x128xf32>
    %c1 = arith.constant 1 : index
    %c0_6 = arith.constant 0 : index
    %c0_7 = arith.constant 0 : index
    %4 = vector.load %arg8[%c1, %c0_6, %c0_7] : memref<8x128x128xf32, #tpu.memory_space<vmem>>, vector<1x128x128xf32>
    %5 = vector.shape_cast %4 : vector<1x128x128xf32> to vector<128x128xf32>
    %c2 = arith.constant 2 : index
    %c0_8 = arith.constant 0 : index
    %c0_9 = arith.constant 0 : index
    %6 = vector.load %arg8[%c2, %c0_8, %c0_9] : memref<8x128x128xf32, #tpu.memory_space<vmem>>, vector<1x128x128xf32>
    %7 = vector.shape_cast %6 : vector<1x128x128xf32> to vector<128x128xf32>
    %c3 = arith.constant 3 : index
    %c0_10 = arith.constant 0 : index
    %c0_11 = arith.constant 0 : index
    %8 = vector.load %arg8[%c3, %c0_10, %c0_11] : memref<8x128x128xf32, #tpu.memory_space<vmem>>, vector<1x128x128xf32>
    %9 = vector.shape_cast %8 : vector<1x128x128xf32> to vector<128x128xf32>
    %c4 = arith.constant 4 : index
    %c0_12 = arith.constant 0 : index
    %c0_13 = arith.constant 0 : index
    %10 = vector.load %arg8[%c4, %c0_12, %c0_13] : memref<8x128x128xf32, #tpu.memory_space<vmem>>, vector<1x128x128xf32>
    %11 = vector.shape_cast %10 : vector<1x128x128xf32> to vector<128x128xf32>
    %c5 = arith.constant 5 : index
    %c0_14 = arith.constant 0 : index
    %c0_15 = arith.constant 0 : index
    %12 = vector.load %arg8[%c5, %c0_14, %c0_15] : memref<8x128x128xf32, #tpu.memory_space<vmem>>, vector<1x128x128xf32>
    %13 = vector.shape_cast %12 : vector<1x128x128xf32> to vector<128x128xf32>
    %c6 = arith.constant 6 : index
    %c0_16 = arith.constant 0 : index
    %c0_17 = arith.constant 0 : index
    %14 = vector.load %arg8[%c6, %c0_16, %c0_17] : memref<8x128x128xf32, #tpu.memory_space<vmem>>, vector<1x128x128xf32>
    %15 = vector.shape_cast %14 : vector<1x128x128xf32> to vector<128x128xf32>
    %c7 = arith.constant 7 : index
    %c0_18 = arith.constant 0 : index
    %c0_19 = arith.constant 0 : index
    %16 = vector.load %arg8[%c7, %c0_18, %c0_19] : memref<8x128x128xf32, #tpu.memory_space<vmem>>, vector<1x128x128xf32>
    %17 = vector.shape_cast %16 : vector<1x128x128xf32> to vector<128x128xf32>
    %c0_20 = arith.constant 0 : index
    %c0_21 = arith.constant 0 : index
    %c0_22 = arith.constant 0 : index
    %18 = vector.load %arg9[%c0_20, %c0_21, %c0_22] : memref<4x128x384xf32, #tpu.memory_space<vmem>>, vector<1x128x384xf32>
    %19 = vector.shape_cast %18 : vector<1x128x384xf32> to vector<128x384xf32>
    %c1_23 = arith.constant 1 : index
    %c0_24 = arith.constant 0 : index
    %c0_25 = arith.constant 0 : index
    %20 = vector.load %arg9[%c1_23, %c0_24, %c0_25] : memref<4x128x384xf32, #tpu.memory_space<vmem>>, vector<1x128x384xf32>
    %21 = vector.shape_cast %20 : vector<1x128x384xf32> to vector<128x384xf32>
    %c2_26 = arith.constant 2 : index
    %c0_27 = arith.constant 0 : index
    %c0_28 = arith.constant 0 : index
    %22 = vector.load %arg9[%c2_26, %c0_27, %c0_28] : memref<4x128x384xf32, #tpu.memory_space<vmem>>, vector<1x128x384xf32>
    %23 = vector.shape_cast %22 : vector<1x128x384xf32> to vector<128x384xf32>
    %c3_29 = arith.constant 3 : index
    %c0_30 = arith.constant 0 : index
    %c0_31 = arith.constant 0 : index
    %24 = vector.load %arg9[%c3_29, %c0_30, %c0_31] : memref<4x128x384xf32, #tpu.memory_space<vmem>>, vector<1x128x384xf32>
    %25 = vector.shape_cast %24 : vector<1x128x384xf32> to vector<128x384xf32>
    %c0_32 = arith.constant 0 : index
    %c0_33 = arith.constant 0 : index
    %c0_34 = arith.constant 0 : index
    %26 = vector.load %arg10[%c0_32, %c0_33, %c0_34] : memref<2x256x128xf32, #tpu.memory_space<vmem>>, vector<1x256x128xf32>
    %27 = vector.shape_cast %26 : vector<1x256x128xf32> to vector<256x128xf32>
    %c1_35 = arith.constant 1 : index
    %c0_36 = arith.constant 0 : index
    %c0_37 = arith.constant 0 : index
    %28 = vector.load %arg10[%c1_35, %c0_36, %c0_37] : memref<2x256x128xf32, #tpu.memory_space<vmem>>, vector<1x256x128xf32>
    %29 = vector.shape_cast %28 : vector<1x256x128xf32> to vector<256x128xf32>
    %30 = vector.extract_strided_slice %0 {offsets = [0, 0], sizes = [1, 128], strides = [1, 1]} : vector<34x384xf32> to vector<1x128xf32>
    %31 = vector.extract_strided_slice %0 {offsets = [1, 0], sizes = [1, 128], strides = [1, 1]} : vector<34x384xf32> to vector<1x128xf32>
    %32 = vector.extract_strided_slice %0 {offsets = [2, 0], sizes = [1, 256], strides = [1, 1]} : vector<34x384xf32> to vector<1x256xf32>
    %33 = vector.extract_strided_slice %0 {offsets = [3, 0], sizes = [1, 128], strides = [1, 1]} : vector<34x384xf32> to vector<1x128xf32>
    %34 = vector.extract_strided_slice %0 {offsets = [4, 0], sizes = [1, 384], strides = [1, 1]} : vector<34x384xf32> to vector<1x384xf32>
    %35 = vector.extract_strided_slice %0 {offsets = [5, 0], sizes = [1, 384], strides = [1, 1]} : vector<34x384xf32> to vector<1x384xf32>
    %36 = vector.extract_strided_slice %0 {offsets = [6, 0], sizes = [1, 256], strides = [1, 1]} : vector<34x384xf32> to vector<1x256xf32>
    %37 = vector.extract_strided_slice %0 {offsets = [7, 0], sizes = [1, 128], strides = [1, 1]} : vector<34x384xf32> to vector<1x128xf32>
    %38 = vector.extract_strided_slice %0 {offsets = [8, 0], sizes = [1, 384], strides = [1, 1]} : vector<34x384xf32> to vector<1x384xf32>
    %39 = vector.extract_strided_slice %0 {offsets = [9, 0], sizes = [1, 384], strides = [1, 1]} : vector<34x384xf32> to vector<1x384xf32>
    %40 = vector.extract_strided_slice %0 {offsets = [10, 0], sizes = [1, 128], strides = [1, 1]} : vector<34x384xf32> to vector<1x128xf32>
    %41 = vector.extract_strided_slice %0 {offsets = [11, 0], sizes = [1, 128], strides = [1, 1]} : vector<34x384xf32> to vector<1x128xf32>
    %42 = vector.extract_strided_slice %0 {offsets = [12, 0], sizes = [1, 128], strides = [1, 1]} : vector<34x384xf32> to vector<1x128xf32>
    %43 = vector.extract_strided_slice %0 {offsets = [13, 0], sizes = [1, 128], strides = [1, 1]} : vector<34x384xf32> to vector<1x128xf32>
    %44 = vector.extract_strided_slice %0 {offsets = [14, 0], sizes = [1, 128], strides = [1, 1]} : vector<34x384xf32> to vector<1x128xf32>
    %45 = vector.extract_strided_slice %0 {offsets = [15, 0], sizes = [1, 128], strides = [1, 1]} : vector<34x384xf32> to vector<1x128xf32>
    %46 = vector.extract_strided_slice %0 {offsets = [16, 0], sizes = [1, 128], strides = [1, 1]} : vector<34x384xf32> to vector<1x128xf32>
    %47 = vector.extract_strided_slice %0 {offsets = [17, 0], sizes = [1, 128], strides = [1, 1]} : vector<34x384xf32> to vector<1x128xf32>
    %48 = vector.extract_strided_slice %0 {offsets = [18, 0], sizes = [1, 128], strides = [1, 1]} : vector<34x384xf32> to vector<1x128xf32>
    %49 = vector.extract_strided_slice %0 {offsets = [19, 0], sizes = [1, 128], strides = [1, 1]} : vector<34x384xf32> to vector<1x128xf32>
    %50 = vector.extract_strided_slice %0 {offsets = [20, 0], sizes = [1, 128], strides = [1, 1]} : vector<34x384xf32> to vector<1x128xf32>
    %51 = vector.extract_strided_slice %0 {offsets = [21, 0], sizes = [1, 128], strides = [1, 1]} : vector<34x384xf32> to vector<1x128xf32>
    %52 = vector.extract_strided_slice %0 {offsets = [22, 0], sizes = [1, 128], strides = [1, 1]} : vector<34x384xf32> to vector<1x128xf32>
    %53 = vector.extract_strided_slice %0 {offsets = [23, 0], sizes = [1, 128], strides = [1, 1]} : vector<34x384xf32> to vector<1x128xf32>
    %54 = vector.extract_strided_slice %0 {offsets = [24, 0], sizes = [1, 128], strides = [1, 1]} : vector<34x384xf32> to vector<1x128xf32>
    %55 = vector.extract_strided_slice %0 {offsets = [25, 0], sizes = [1, 128], strides = [1, 1]} : vector<34x384xf32> to vector<1x128xf32>
    %56 = vector.extract_strided_slice %0 {offsets = [26, 0], sizes = [1, 128], strides = [1, 1]} : vector<34x384xf32> to vector<1x128xf32>
    %57 = vector.extract_strided_slice %0 {offsets = [27, 0], sizes = [1, 128], strides = [1, 1]} : vector<34x384xf32> to vector<1x128xf32>
    %58 = vector.extract_strided_slice %0 {offsets = [28, 0], sizes = [1, 128], strides = [1, 1]} : vector<34x384xf32> to vector<1x128xf32>
    %59 = vector.extract_strided_slice %0 {offsets = [29, 0], sizes = [1, 128], strides = [1, 1]} : vector<34x384xf32> to vector<1x128xf32>
    %60 = vector.extract_strided_slice %0 {offsets = [30, 0], sizes = [1, 128], strides = [1, 1]} : vector<34x384xf32> to vector<1x128xf32>
    %61 = vector.extract_strided_slice %0 {offsets = [31, 0], sizes = [1, 128], strides = [1, 1]} : vector<34x384xf32> to vector<1x128xf32>
    %62 = vector.extract_strided_slice %0 {offsets = [32, 0], sizes = [1, 128], strides = [1, 1]} : vector<34x384xf32> to vector<1x128xf32>
    %63 = vector.extract_strided_slice %0 {offsets = [33, 0], sizes = [1, 128], strides = [1, 1]} : vector<34x384xf32> to vector<1x128xf32>
    %c0_38 = arith.constant 0 : index
    %64 = memref.load %arg12[%c0_38] : memref<8xf32, #tpu.memory_space<smem>>
    %c1_39 = arith.constant 1 : index
    %65 = memref.load %arg12[%c1_39] : memref<8xf32, #tpu.memory_space<smem>>
    %c2_40 = arith.constant 2 : index
    %66 = memref.load %arg12[%c2_40] : memref<8xf32, #tpu.memory_space<smem>>
    %c3_41 = arith.constant 3 : index
    %67 = memref.load %arg12[%c3_41] : memref<8xf32, #tpu.memory_space<smem>>
    %c4_42 = arith.constant 4 : index
    %68 = memref.load %arg12[%c4_42] : memref<8xf32, #tpu.memory_space<smem>>
    %c5_43 = arith.constant 5 : index
    %69 = memref.load %arg12[%c5_43] : memref<8xf32, #tpu.memory_space<smem>>
    %c6_44 = arith.constant 6 : index
    %70 = memref.load %arg12[%c6_44] : memref<8xf32, #tpu.memory_space<smem>>
    %c7_45 = arith.constant 7 : index
    %71 = memref.load %arg12[%c7_45] : memref<8xf32, #tpu.memory_space<smem>>
    %c0_46 = arith.constant 0 : index
    %c0_47 = arith.constant 0 : index
    %72 = vector.load %arg0[%c0_46, %c0_47] : memref<32x64xf32, #tpu.memory_space<vmem>>, vector<32x64xf32>
    %c0_48 = arith.constant 0 : index
    %c0_49 = arith.constant 0 : index
    %73 = vector.load %arg1[%c0_48, %c0_49] : memref<64x64xf32, #tpu.memory_space<vmem>>, vector<64x64xf32>
    %c0_50 = arith.constant 0 : index
    %c0_51 = arith.constant 0 : index
    %74 = vector.load %arg2[%c0_50, %c0_51] : memref<64x1xf32, #tpu.memory_space<vmem>>, vector<64x1xf32>
    %c0_52 = arith.constant 0 : index
    %c0_53 = arith.constant 0 : index
    %75 = vector.load %arg3[%c0_52, %c0_53] : memref<64x1xi32, #tpu.memory_space<vmem>>, vector<64x1xi32>
    %c0_54 = arith.constant 0 : index
    %c0_55 = arith.constant 0 : index
    %76 = vector.load %arg4[%c0_54, %c0_55] : memref<64x1xi32, #tpu.memory_space<vmem>>, vector<64x1xi32>
    %c0_56 = arith.constant 0 : index
    %c0_57 = arith.constant 0 : index
    %77 = vector.load %arg5[%c0_56, %c0_57] : memref<64x1xi32, #tpu.memory_space<vmem>>, vector<64x1xi32>
    %c0_58 = arith.constant 0 : index
    %c0_59 = arith.constant 0 : index
    %78 = vector.load %arg6[%c0_58, %c0_59] : memref<64x1xi32, #tpu.memory_space<vmem>>, vector<64x1xi32>
    %79 = tpu.iota {dimensions = array<i32: 1>} : vector<64x32xi32>
    %80 = vector.broadcast %75 : vector<64x1xi32> to vector<64x32xi32>
    %81 = arith.cmpi eq, %79, %80 : vector<64x32xi32>
    %82 = arith.extui %81 : vector<64x32xi1> to vector<64x32xi32>
    %83 = arith.sitofp %82 : vector<64x32xi32> to vector<64x32xf32>
    %84 = tpu.iota {dimensions = array<i32: 1>} : vector<64x32xi32>
    %85 = vector.broadcast %76 : vector<64x1xi32> to vector<64x32xi32>
    %86 = arith.cmpi eq, %84, %85 : vector<64x32xi32>
    %87 = arith.extui %86 : vector<64x32xi1> to vector<64x32xi32>
    %88 = arith.sitofp %87 : vector<64x32xi32> to vector<64x32xf32>
    %89 = tpu.transpose %88, [1, 0] : vector<64x32xf32> -> vector<32x64xf32>
    %cst = arith.constant 5.000000e-01 : f32
    %90 = vector.broadcast %cst : f32 to vector<64x32xf32>
    %91 = arith.cmpf ogt, %88, %90 : vector<64x32xf32>
    %92 = arith.truncf %72 : vector<32x64xf32> to vector<32x64xbf16>
    %93 = arith.truncf %1 : vector<64x128xf32> to vector<64x128xbf16>
    %cst_60 = arith.constant dense<0.000000e+00> : vector<32x128xf32>
    %94 = tpu.matmul %92, %93, %cst_60 {dimension_numbers = #tpu.dot_dimension_numbers<[1], [0], [0], [1], [0, 0, 1, 1], [], []>} : vector<32x64xbf16>, vector<64x128xbf16>, vector<32x128xf32> -> vector<32x128xf32>
    %95 = vector.broadcast %30 : vector<1x128xf32> to vector<32x128xf32>
    %96 = arith.addf %94, %95 : vector<32x128xf32>
    %cst_61 = arith.constant 0.000000e+00 : f32
    %97 = vector.broadcast %cst_61 : f32 to vector<32x128xf32>
    %98 = arith.cmpf ogt, %96, %97 : vector<32x128xf32>
    %cst_62 = arith.constant 0.00999999977 : f32
    %99 = vector.broadcast %cst_62 : f32 to vector<32x128xf32>
    %100 = arith.mulf %99, %96 : vector<32x128xf32>
    %101 = arith.select %98, %96, %100 : vector<32x128xi1>, vector<32x128xf32>
    %102 = arith.truncf %83 : vector<64x32xf32> to vector<64x32xbf16>
    %103 = arith.truncf %72 : vector<32x64xf32> to vector<32x64xbf16>
    %cst_63 = arith.constant dense<0.000000e+00> : vector<64x64xf32>
    %104 = tpu.matmul %102, %103, %cst_63 {dimension_numbers = #tpu.dot_dimension_numbers<[1], [0], [0], [1], [0, 0, 1, 1], [], []>} : vector<64x32xbf16>, vector<32x64xbf16>, vector<64x64xf32> -> vector<64x64xf32>
    %105 = tpu.concatenate %104, %73 in 1 : vector<64x64xf32>, vector<64x64xf32> -> vector<64x128xf32>
    %106 = arith.truncf %105 : vector<64x128xf32> to vector<64x128xbf16>
    %107 = arith.truncf %3 : vector<128x128xf32> to vector<128x128xbf16>
    %cst_64 = arith.constant dense<0.000000e+00> : vector<64x128xf32>
    %108 = tpu.matmul %106, %107, %cst_64 {dimension_numbers = #tpu.dot_dimension_numbers<[1], [0], [0], [1], [0, 0, 1, 1], [], []>} : vector<64x128xbf16>, vector<128x128xbf16>, vector<64x128xf32> -> vector<64x128xf32>
    %109 = vector.broadcast %31 : vector<1x128xf32> to vector<64x128xf32>
    %110 = arith.addf %108, %109 : vector<64x128xf32>
    %cst_65 = arith.constant 0.000000e+00 : f32
    %111 = vector.broadcast %cst_65 : f32 to vector<64x128xf32>
    %112 = arith.cmpf ogt, %110, %111 : vector<64x128xf32>
    %cst_66 = arith.constant 0.00999999977 : f32
    %113 = vector.broadcast %cst_66 : f32 to vector<64x128xf32>
    %114 = arith.mulf %113, %110 : vector<64x128xf32>
    %115 = arith.select %112, %110, %114 : vector<64x128xi1>, vector<64x128xf32>
    %116 = arith.truncf %88 : vector<64x32xf32> to vector<64x32xbf16>
    %117 = arith.truncf %101 : vector<32x128xf32> to vector<32x128xbf16>
    %cst_67 = arith.constant dense<0.000000e+00> : vector<64x128xf32>
    %118 = tpu.matmul %116, %117, %cst_67 {dimension_numbers = #tpu.dot_dimension_numbers<[1], [0], [0], [1], [0, 0, 1, 1], [], []>} : vector<64x32xbf16>, vector<32x128xbf16>, vector<64x128xf32> -> vector<64x128xf32>
    %119 = vector.extract_strided_slice %32 {offsets = [0, 0], sizes = [1, 128], strides = [1, 1]} : vector<1x256xf32> to vector<1x128xf32>
    %120 = vector.broadcast %119 : vector<1x128xf32> to vector<64x128xf32>
    %121 = arith.mulf %118, %120 : vector<64x128xf32>
    %122 = vector.extract_strided_slice %32 {offsets = [0, 128], sizes = [1, 128], strides = [1, 1]} : vector<1x256xf32> to vector<1x128xf32>
    %123 = vector.broadcast %122 : vector<1x128xf32> to vector<64x128xf32>
    %124 = arith.mulf %115, %123 : vector<64x128xf32>
    %125 = arith.addf %121, %124 : vector<64x128xf32>
    %cst_68 = arith.constant dense<0.000000e+00> : vector<64xf32>
    %126 = vector.multi_reduction <add>, %125, %cst_68 [1] : vector<64x128xf32> to vector<64xf32>
    %127 = vector.shape_cast %126 : vector<64xf32> to vector<64x1xf32>
    %128 = vector.broadcast %64 : f32 to vector<64x1xf32>
    %129 = arith.addf %127, %128 : vector<64x1xf32>
    %cst_69 = arith.constant 0.000000e+00 : f32
    %130 = vector.broadcast %cst_69 : f32 to vector<64x1xf32>
    %131 = arith.cmpf ogt, %129, %130 : vector<64x1xf32>
    %cst_70 = arith.constant 0.00999999977 : f32
    %132 = vector.broadcast %cst_70 : f32 to vector<64x1xf32>
    %133 = arith.mulf %132, %129 : vector<64x1xf32>
    %134 = arith.select %131, %129, %133 : vector<64x1xi1>, vector<64x1xf32>
    %cst_71 = arith.constant -1.000000e+30 : f32
    %135 = vector.shape_cast %134 : vector<64x1xf32> to vector<64x1xf32>
    %136 = vector.broadcast %135 : vector<64x1xf32> to vector<64x32xf32>
    %137 = vector.broadcast %cst_71 : f32 to vector<64x32xf32>
    %138 = arith.select %91, %136, %137 : vector<64x32xi1>, vector<64x32xf32>
    %cst_72 = arith.constant dense<0xFF800000> : vector<32xf32>
    %139 = vector.multi_reduction <maximumf>, %138, %cst_72 [0] : vector<64x32xf32> to vector<32xf32>
    %140 = vector.shape_cast %139 : vector<32xf32> to vector<1x32xf32>
    %141 = vector.broadcast %140 : vector<1x32xf32> to vector<64x32xf32>
    %142 = arith.mulf %88, %141 : vector<64x32xf32>
    %cst_73 = arith.constant dense<0.000000e+00> : vector<64xf32>
    %143 = vector.multi_reduction <add>, %142, %cst_73 [1] : vector<64x32xf32> to vector<64xf32>
    %144 = vector.shape_cast %143 : vector<64xf32> to vector<64x1xf32>
    %145 = arith.subf %134, %144 : vector<64x1xf32>
    %146 = math.exp %145 : vector<64x1xf32>
    %147 = vector.broadcast %146 : vector<64x1xf32> to vector<64x32xf32>
    %148 = arith.mulf %88, %147 : vector<64x32xf32>
    %cst_74 = arith.constant dense<0.000000e+00> : vector<32xf32>
    %149 = vector.multi_reduction <add>, %148, %cst_74 [0] : vector<64x32xf32> to vector<32xf32>
    %150 = vector.shape_cast %149 : vector<32xf32> to vector<1x32xf32>
    %151 = vector.broadcast %150 : vector<1x32xf32> to vector<64x32xf32>
    %152 = arith.mulf %88, %151 : vector<64x32xf32>
    %cst_75 = arith.constant dense<0.000000e+00> : vector<64xf32>
    %153 = vector.multi_reduction <add>, %152, %cst_75 [1] : vector<64x32xf32> to vector<64xf32>
    %154 = vector.shape_cast %153 : vector<64xf32> to vector<64x1xf32>
    %155 = tpu.reciprocal %154 {approx = true} : vector<64x1xf32> -> vector<64x1xf32>
    %156 = arith.mulf %146, %155 : vector<64x1xf32>
    %157 = arith.truncf %115 : vector<64x128xf32> to vector<64x128xbf16>
    %158 = arith.truncf %5 : vector<128x128xf32> to vector<128x128xbf16>
    %cst_76 = arith.constant dense<0.000000e+00> : vector<64x128xf32>
    %159 = tpu.matmul %157, %158, %cst_76 {dimension_numbers = #tpu.dot_dimension_numbers<[1], [0], [0], [1], [0, 0, 1, 1], [], []>} : vector<64x128xbf16>, vector<128x128xbf16>, vector<64x128xf32> -> vector<64x128xf32>
    %160 = vector.broadcast %33 : vector<1x128xf32> to vector<64x128xf32>
    %161 = arith.addf %159, %160 : vector<64x128xf32>
    %162 = vector.broadcast %156 : vector<64x1xf32> to vector<64x128xf32>
    %163 = arith.mulf %162, %161 : vector<64x128xf32>
    %164 = arith.truncf %89 : vector<32x64xf32> to vector<32x64xbf16>
    %165 = arith.truncf %163 : vector<64x128xf32> to vector<64x128xbf16>
    %cst_77 = arith.constant dense<0.000000e+00> : vector<32x128xf32>
    %166 = tpu.matmul %164, %165, %cst_77 {dimension_numbers = #tpu.dot_dimension_numbers<[1], [0], [0], [1], [0, 0, 1, 1], [], []>} : vector<32x64xbf16>, vector<64x128xbf16>, vector<32x128xf32> -> vector<32x128xf32>
    %cst_78 = arith.constant 0.000000e+00 : f32
    %167 = vector.broadcast %cst_78 : f32 to vector<32x128xf32>
    %168 = arith.cmpf ogt, %166, %167 : vector<32x128xf32>
    %cst_79 = arith.constant 0.000000e+00 : f32
    %169 = vector.broadcast %cst_79 : f32 to vector<32x128xf32>
    %170 = arith.minimumf %166, %169 : vector<32x128xf32>
    %171 = math.exp %170 : vector<32x128xf32>
    %cst_80 = arith.constant 1.000000e+00 : f32
    %172 = vector.broadcast %cst_80 : f32 to vector<32x128xf32>
    %173 = arith.subf %171, %172 : vector<32x128xf32>
    %174 = arith.select %168, %166, %173 : vector<32x128xi1>, vector<32x128xf32>
    %175 = arith.truncf %174 : vector<32x128xf32> to vector<32x128xbf16>
    %176 = arith.truncf %19 : vector<128x384xf32> to vector<128x384xbf16>
    %cst_81 = arith.constant dense<0.000000e+00> : vector<32x384xf32>
    %177 = tpu.matmul %175, %176, %cst_81 {dimension_numbers = #tpu.dot_dimension_numbers<[1], [0], [0], [1], [0, 0, 1, 1], [], []>} : vector<32x128xbf16>, vector<128x384xbf16>, vector<32x384xf32> -> vector<32x384xf32>
    %178 = vector.broadcast %34 : vector<1x384xf32> to vector<32x384xf32>
    %179 = arith.addf %177, %178 : vector<32x384xf32>
    %180 = arith.truncf %101 : vector<32x128xf32> to vector<32x128xbf16>
    %181 = arith.truncf %21 : vector<128x384xf32> to vector<128x384xbf16>
    %cst_82 = arith.constant dense<0.000000e+00> : vector<32x384xf32>
    %182 = tpu.matmul %180, %181, %cst_82 {dimension_numbers = #tpu.dot_dimension_numbers<[1], [0], [0], [1], [0, 0, 1, 1], [], []>} : vector<32x128xbf16>, vector<128x384xbf16>, vector<32x384xf32> -> vector<32x384xf32>
    %183 = vector.broadcast %35 : vector<1x384xf32> to vector<32x384xf32>
    %184 = arith.addf %182, %183 : vector<32x384xf32>
    %185 = vector.extract_strided_slice %179 {offsets = [0, 0], sizes = [32, 128], strides = [1, 1]} : vector<32x384xf32> to vector<32x128xf32>
    %186 = vector.extract_strided_slice %184 {offsets = [0, 0], sizes = [32, 128], strides = [1, 1]} : vector<32x384xf32> to vector<32x128xf32>
    %187 = arith.addf %185, %186 : vector<32x128xf32>
    %cst_83 = arith.constant 5.000000e-01 : f32
    %188 = vector.broadcast %cst_83 : f32 to vector<32x128xf32>
    %189 = arith.mulf %188, %187 : vector<32x128xf32>
    %190 = math.tanh %189 : vector<32x128xf32>
    %cst_84 = arith.constant 1.000000e+00 : f32
    %191 = vector.broadcast %cst_84 : f32 to vector<32x128xf32>
    %192 = arith.addf %190, %191 : vector<32x128xf32>
    %cst_85 = arith.constant 5.000000e-01 : f32
    %193 = vector.broadcast %cst_85 : f32 to vector<32x128xf32>
    %194 = arith.mulf %193, %192 : vector<32x128xf32>
    %195 = vector.extract_strided_slice %179 {offsets = [0, 128], sizes = [32, 128], strides = [1, 1]} : vector<32x384xf32> to vector<32x128xf32>
    %196 = vector.extract_strided_slice %184 {offsets = [0, 128], sizes = [32, 128], strides = [1, 1]} : vector<32x384xf32> to vector<32x128xf32>
    %197 = arith.addf %195, %196 : vector<32x128xf32>
    %cst_86 = arith.constant 5.000000e-01 : f32
    %198 = vector.broadcast %cst_86 : f32 to vector<32x128xf32>
    %199 = arith.mulf %198, %197 : vector<32x128xf32>
    %200 = math.tanh %199 : vector<32x128xf32>
    %cst_87 = arith.constant 1.000000e+00 : f32
    %201 = vector.broadcast %cst_87 : f32 to vector<32x128xf32>
    %202 = arith.addf %200, %201 : vector<32x128xf32>
    %cst_88 = arith.constant 5.000000e-01 : f32
    %203 = vector.broadcast %cst_88 : f32 to vector<32x128xf32>
    %204 = arith.mulf %203, %202 : vector<32x128xf32>
    %205 = vector.extract_strided_slice %179 {offsets = [0, 256], sizes = [32, 128], strides = [1, 1]} : vector<32x384xf32> to vector<32x128xf32>
    %206 = vector.extract_strided_slice %184 {offsets = [0, 256], sizes = [32, 128], strides = [1, 1]} : vector<32x384xf32> to vector<32x128xf32>
    %207 = arith.mulf %194, %206 : vector<32x128xf32>
    %208 = arith.addf %205, %207 : vector<32x128xf32>
    %209 = math.tanh %208 : vector<32x128xf32>
    %cst_89 = arith.constant 1.000000e+00 : f32
    %210 = vector.broadcast %cst_89 : f32 to vector<32x128xf32>
    %211 = arith.subf %210, %204 : vector<32x128xf32>
    %212 = arith.mulf %211, %209 : vector<32x128xf32>
    %213 = arith.mulf %204, %101 : vector<32x128xf32>
    %214 = arith.addf %212, %213 : vector<32x128xf32>
    %cst_90 = arith.constant 0.000000e+00 : f32
    %215 = vector.broadcast %cst_90 : f32 to vector<32x128xf32>
    %216 = arith.maximumf %214, %215 : vector<32x128xf32>
    %217 = arith.truncf %88 : vector<64x32xf32> to vector<64x32xbf16>
    %218 = arith.truncf %216 : vector<32x128xf32> to vector<32x128xbf16>
    %cst_91 = arith.constant dense<0.000000e+00> : vector<64x128xf32>
    %219 = tpu.matmul %217, %218, %cst_91 {dimension_numbers = #tpu.dot_dimension_numbers<[1], [0], [0], [1], [0, 0, 1, 1], [], []>} : vector<64x32xbf16>, vector<32x128xbf16>, vector<64x128xf32> -> vector<64x128xf32>
    %220 = arith.truncf %83 : vector<64x32xf32> to vector<64x32xbf16>
    %221 = arith.truncf %216 : vector<32x128xf32> to vector<32x128xbf16>
    %cst_92 = arith.constant dense<0.000000e+00> : vector<64x128xf32>
    %222 = tpu.matmul %220, %221, %cst_92 {dimension_numbers = #tpu.dot_dimension_numbers<[1], [0], [0], [1], [0, 0, 1, 1], [], []>} : vector<64x32xbf16>, vector<32x128xbf16>, vector<64x128xf32> -> vector<64x128xf32>
    %223 = vector.extract_strided_slice %36 {offsets = [0, 0], sizes = [1, 128], strides = [1, 1]} : vector<1x256xf32> to vector<1x128xf32>
    %224 = vector.broadcast %223 : vector<1x128xf32> to vector<64x128xf32>
    %225 = arith.mulf %219, %224 : vector<64x128xf32>
    %226 = vector.extract_strided_slice %36 {offsets = [0, 128], sizes = [1, 128], strides = [1, 1]} : vector<1x256xf32> to vector<1x128xf32>
    %227 = vector.broadcast %226 : vector<1x128xf32> to vector<64x128xf32>
    %228 = arith.mulf %222, %227 : vector<64x128xf32>
    %229 = arith.addf %225, %228 : vector<64x128xf32>
    %cst_93 = arith.constant dense<0.000000e+00> : vector<64xf32>
    %230 = vector.multi_reduction <add>, %229, %cst_93 [1] : vector<64x128xf32> to vector<64xf32>
    %231 = vector.shape_cast %230 : vector<64xf32> to vector<64x1xf32>
    %232 = vector.broadcast %65 : f32 to vector<64x1xf32>
    %233 = arith.addf %231, %232 : vector<64x1xf32>
    %cst_94 = arith.constant 0.000000e+00 : f32
    %234 = vector.broadcast %cst_94 : f32 to vector<64x1xf32>
    %235 = arith.cmpf ogt, %233, %234 : vector<64x1xf32>
    %cst_95 = arith.constant 0.00999999977 : f32
    %236 = vector.broadcast %cst_95 : f32 to vector<64x1xf32>
    %237 = arith.mulf %236, %233 : vector<64x1xf32>
    %238 = arith.select %235, %233, %237 : vector<64x1xi1>, vector<64x1xf32>
    %cst_96 = arith.constant -1.000000e+30 : f32
    %239 = vector.shape_cast %238 : vector<64x1xf32> to vector<64x1xf32>
    %240 = vector.broadcast %239 : vector<64x1xf32> to vector<64x32xf32>
    %241 = vector.broadcast %cst_96 : f32 to vector<64x32xf32>
    %242 = arith.select %91, %240, %241 : vector<64x32xi1>, vector<64x32xf32>
    %cst_97 = arith.constant dense<0xFF800000> : vector<32xf32>
    %243 = vector.multi_reduction <maximumf>, %242, %cst_97 [0] : vector<64x32xf32> to vector<32xf32>
    %244 = vector.shape_cast %243 : vector<32xf32> to vector<1x32xf32>
    %245 = vector.broadcast %244 : vector<1x32xf32> to vector<64x32xf32>
    %246 = arith.mulf %88, %245 : vector<64x32xf32>
    %cst_98 = arith.constant dense<0.000000e+00> : vector<64xf32>
    %247 = vector.multi_reduction <add>, %246, %cst_98 [1] : vector<64x32xf32> to vector<64xf32>
    %248 = vector.shape_cast %247 : vector<64xf32> to vector<64x1xf32>
    %249 = arith.subf %238, %248 : vector<64x1xf32>
    %250 = math.exp %249 : vector<64x1xf32>
    %251 = vector.broadcast %250 : vector<64x1xf32> to vector<64x32xf32>
    %252 = arith.mulf %88, %251 : vector<64x32xf32>
    %cst_99 = arith.constant dense<0.000000e+00> : vector<32xf32>
    %253 = vector.multi_reduction <add>, %252, %cst_99 [0] : vector<64x32xf32> to vector<32xf32>
    %254 = vector.shape_cast %253 : vector<32xf32> to vector<1x32xf32>
    %255 = vector.broadcast %254 : vector<1x32xf32> to vector<64x32xf32>
    %256 = arith.mulf %88, %255 : vector<64x32xf32>
    %cst_100 = arith.constant dense<0.000000e+00> : vector<64xf32>
    %257 = vector.multi_reduction <add>, %256, %cst_100 [1] : vector<64x32xf32> to vector<64xf32>
    %258 = vector.shape_cast %257 : vector<64xf32> to vector<64x1xf32>
    %259 = tpu.reciprocal %258 {approx = true} : vector<64x1xf32> -> vector<64x1xf32>
    %260 = arith.mulf %250, %259 : vector<64x1xf32>
    %261 = arith.truncf %216 : vector<32x128xf32> to vector<32x128xbf16>
    %262 = arith.truncf %7 : vector<128x128xf32> to vector<128x128xbf16>
    %cst_101 = arith.constant dense<0.000000e+00> : vector<32x128xf32>
    %263 = tpu.matmul %261, %262, %cst_101 {dimension_numbers = #tpu.dot_dimension_numbers<[1], [0], [0], [1], [0, 0, 1, 1], [], []>} : vector<32x128xbf16>, vector<128x128xbf16>, vector<32x128xf32> -> vector<32x128xf32>
    %264 = vector.broadcast %37 : vector<1x128xf32> to vector<32x128xf32>
    %265 = arith.addf %263, %264 : vector<32x128xf32>
    %266 = arith.truncf %83 : vector<64x32xf32> to vector<64x32xbf16>
    %267 = arith.truncf %265 : vector<32x128xf32> to vector<32x128xbf16>
    %cst_102 = arith.constant dense<0.000000e+00> : vector<64x128xf32>
    %268 = tpu.matmul %266, %267, %cst_102 {dimension_numbers = #tpu.dot_dimension_numbers<[1], [0], [0], [1], [0, 0, 1, 1], [], []>} : vector<64x32xbf16>, vector<32x128xbf16>, vector<64x128xf32> -> vector<64x128xf32>
    %269 = vector.broadcast %260 : vector<64x1xf32> to vector<64x128xf32>
    %270 = arith.mulf %269, %268 : vector<64x128xf32>
    %271 = arith.truncf %89 : vector<32x64xf32> to vector<32x64xbf16>
    %272 = arith.truncf %270 : vector<64x128xf32> to vector<64x128xbf16>
    %cst_103 = arith.constant dense<0.000000e+00> : vector<32x128xf32>
    %273 = tpu.matmul %271, %272, %cst_103 {dimension_numbers = #tpu.dot_dimension_numbers<[1], [0], [0], [1], [0, 0, 1, 1], [], []>} : vector<32x64xbf16>, vector<64x128xbf16>, vector<32x128xf32> -> vector<32x128xf32>
    %cst_104 = arith.constant 0.000000e+00 : f32
    %274 = vector.broadcast %cst_104 : f32 to vector<32x128xf32>
    %275 = arith.cmpf ogt, %273, %274 : vector<32x128xf32>
    %cst_105 = arith.constant 0.000000e+00 : f32
    %276 = vector.broadcast %cst_105 : f32 to vector<32x128xf32>
    %277 = arith.minimumf %273, %276 : vector<32x128xf32>
    %278 = math.exp %277 : vector<32x128xf32>
    %cst_106 = arith.constant 1.000000e+00 : f32
    %279 = vector.broadcast %cst_106 : f32 to vector<32x128xf32>
    %280 = arith.subf %278, %279 : vector<32x128xf32>
    %281 = arith.select %275, %273, %280 : vector<32x128xi1>, vector<32x128xf32>
    %282 = arith.truncf %281 : vector<32x128xf32> to vector<32x128xbf16>
    %283 = arith.truncf %23 : vector<128x384xf32> to vector<128x384xbf16>
    %cst_107 = arith.constant dense<0.000000e+00> : vector<32x384xf32>
    %284 = tpu.matmul %282, %283, %cst_107 {dimension_numbers = #tpu.dot_dimension_numbers<[1], [0], [0], [1], [0, 0, 1, 1], [], []>} : vector<32x128xbf16>, vector<128x384xbf16>, vector<32x384xf32> -> vector<32x384xf32>
    %285 = vector.broadcast %38 : vector<1x384xf32> to vector<32x384xf32>
    %286 = arith.addf %284, %285 : vector<32x384xf32>
    %287 = arith.truncf %216 : vector<32x128xf32> to vector<32x128xbf16>
    %288 = arith.truncf %25 : vector<128x384xf32> to vector<128x384xbf16>
    %cst_108 = arith.constant dense<0.000000e+00> : vector<32x384xf32>
    %289 = tpu.matmul %287, %288, %cst_108 {dimension_numbers = #tpu.dot_dimension_numbers<[1], [0], [0], [1], [0, 0, 1, 1], [], []>} : vector<32x128xbf16>, vector<128x384xbf16>, vector<32x384xf32> -> vector<32x384xf32>
    %290 = vector.broadcast %39 : vector<1x384xf32> to vector<32x384xf32>
    %291 = arith.addf %289, %290 : vector<32x384xf32>
    %292 = vector.extract_strided_slice %286 {offsets = [0, 0], sizes = [32, 128], strides = [1, 1]} : vector<32x384xf32> to vector<32x128xf32>
    %293 = vector.extract_strided_slice %291 {offsets = [0, 0], sizes = [32, 128], strides = [1, 1]} : vector<32x384xf32> to vector<32x128xf32>
    %294 = arith.addf %292, %293 : vector<32x128xf32>
    %cst_109 = arith.constant 5.000000e-01 : f32
    %295 = vector.broadcast %cst_109 : f32 to vector<32x128xf32>
    %296 = arith.mulf %295, %294 : vector<32x128xf32>
    %297 = math.tanh %296 : vector<32x128xf32>
    %cst_110 = arith.constant 1.000000e+00 : f32
    %298 = vector.broadcast %cst_110 : f32 to vector<32x128xf32>
    %299 = arith.addf %297, %298 : vector<32x128xf32>
    %cst_111 = arith.constant 5.000000e-01 : f32
    %300 = vector.broadcast %cst_111 : f32 to vector<32x128xf32>
    %301 = arith.mulf %300, %299 : vector<32x128xf32>
    %302 = vector.extract_strided_slice %286 {offsets = [0, 128], sizes = [32, 128], strides = [1, 1]} : vector<32x384xf32> to vector<32x128xf32>
    %303 = vector.extract_strided_slice %291 {offsets = [0, 128], sizes = [32, 128], strides = [1, 1]} : vector<32x384xf32> to vector<32x128xf32>
    %304 = arith.addf %302, %303 : vector<32x128xf32>
    %cst_112 = arith.constant 5.000000e-01 : f32
    %305 = vector.broadcast %cst_112 : f32 to vector<32x128xf32>
    %306 = arith.mulf %305, %304 : vector<32x128xf32>
    %307 = math.tanh %306 : vector<32x128xf32>
    %cst_113 = arith.constant 1.000000e+00 : f32
    %308 = vector.broadcast %cst_113 : f32 to vector<32x128xf32>
    %309 = arith.addf %307, %308 : vector<32x128xf32>
    %cst_114 = arith.constant 5.000000e-01 : f32
    %310 = vector.broadcast %cst_114 : f32 to vector<32x128xf32>
    %311 = arith.mulf %310, %309 : vector<32x128xf32>
    %312 = vector.extract_strided_slice %286 {offsets = [0, 256], sizes = [32, 128], strides = [1, 1]} : vector<32x384xf32> to vector<32x128xf32>
    %313 = vector.extract_strided_slice %291 {offsets = [0, 256], sizes = [32, 128], strides = [1, 1]} : vector<32x384xf32> to vector<32x128xf32>
    %314 = arith.mulf %301, %313 : vector<32x128xf32>
    %315 = arith.addf %312, %314 : vector<32x128xf32>
    %316 = math.tanh %315 : vector<32x128xf32>
    %cst_115 = arith.constant 1.000000e+00 : f32
    %317 = vector.broadcast %cst_115 : f32 to vector<32x128xf32>
    %318 = arith.subf %317, %311 : vector<32x128xf32>
    %319 = arith.mulf %318, %316 : vector<32x128xf32>
    %320 = arith.mulf %311, %216 : vector<32x128xf32>
    %321 = arith.addf %319, %320 : vector<32x128xf32>
    %cst_116 = arith.constant 0.000000e+00 : f32
    %322 = vector.broadcast %cst_116 : f32 to vector<32x128xf32>
    %323 = arith.maximumf %321, %322 : vector<32x128xf32>
    %cst_117 = arith.constant dense<0.000000e+00> : vector<128xf32>
    %324 = vector.multi_reduction <add>, %323, %cst_117 [0] : vector<32x128xf32> to vector<128xf32>
    %325 = vector.shape_cast %324 : vector<128xf32> to vector<1x128xf32>
    %cst_118 = arith.constant 3.200000e+01 : f32
    %326 = vector.broadcast %cst_118 : f32 to vector<1x128xf32>
    %327 = arith.divf %325, %326 : vector<1x128xf32>
    %328 = vector.broadcast %327 : vector<1x128xf32> to vector<32x128xf32>
    %329 = arith.subf %323, %328 : vector<32x128xf32>
    %330 = arith.mulf %329, %329 : vector<32x128xf32>
    %cst_119 = arith.constant dense<0.000000e+00> : vector<128xf32>
    %331 = vector.multi_reduction <add>, %330, %cst_119 [0] : vector<32x128xf32> to vector<128xf32>
    %332 = vector.shape_cast %331 : vector<128xf32> to vector<1x128xf32>
    %cst_120 = arith.constant 3.200000e+01 : f32
    %333 = vector.broadcast %cst_120 : f32 to vector<1x128xf32>
    %334 = arith.divf %332, %333 : vector<1x128xf32>
    %335 = vector.broadcast %327 : vector<1x128xf32> to vector<32x128xf32>
    %336 = arith.subf %323, %335 : vector<32x128xf32>
    %337 = vector.broadcast %40 : vector<1x128xf32> to vector<32x128xf32>
    %338 = arith.mulf %337, %336 : vector<32x128xf32>
    %cst_121 = arith.constant 9.99999974E-6 : f32
    %339 = vector.broadcast %cst_121 : f32 to vector<1x128xf32>
    %340 = arith.addf %334, %339 : vector<1x128xf32>
    %341 = math.rsqrt %340 : vector<1x128xf32>
    %342 = vector.broadcast %341 : vector<1x128xf32> to vector<32x128xf32>
    %343 = arith.mulf %338, %342 : vector<32x128xf32>
    %344 = vector.broadcast %41 : vector<1x128xf32> to vector<32x128xf32>
    %345 = arith.addf %343, %344 : vector<32x128xf32>
    %346 = arith.addf %216, %345 : vector<32x128xf32>
    %347 = tpu.iota {dimensions = array<i32: 1>} : vector<64x32xi32>
    %348 = vector.broadcast %77 : vector<64x1xi32> to vector<64x32xi32>
    %349 = arith.cmpi eq, %347, %348 : vector<64x32xi32>
    %350 = arith.extui %349 : vector<64x32xi1> to vector<64x32xi32>
    %351 = arith.sitofp %350 : vector<64x32xi32> to vector<64x32xf32>
    %352 = tpu.iota {dimensions = array<i32: 1>} : vector<64x32xi32>
    %353 = vector.broadcast %78 : vector<64x1xi32> to vector<64x32xi32>
    %354 = arith.cmpi eq, %352, %353 : vector<64x32xi32>
    %355 = arith.extui %354 : vector<64x32xi1> to vector<64x32xi32>
    %356 = arith.sitofp %355 : vector<64x32xi32> to vector<64x32xf32>
    %357 = arith.addf %351, %356 : vector<64x32xf32>
    %358 = arith.truncf %357 : vector<64x32xf32> to vector<64x32xbf16>
    %359 = arith.truncf %346 : vector<32x128xf32> to vector<32x128xbf16>
    %cst_122 = arith.constant dense<0.000000e+00> : vector<64x128xf32>
    %360 = tpu.matmul %358, %359, %cst_122 {dimension_numbers = #tpu.dot_dimension_numbers<[1], [0], [0], [1], [0, 0, 1, 1], [], []>} : vector<64x32xbf16>, vector<32x128xbf16>, vector<64x128xf32> -> vector<64x128xf32>
    %361 = arith.truncf %360 : vector<64x128xf32> to vector<64x128xbf16>
    %362 = arith.truncf %9 : vector<128x128xf32> to vector<128x128xbf16>
    %cst_123 = arith.constant dense<0.000000e+00> : vector<64x128xf32>
    %363 = tpu.matmul %361, %362, %cst_123 {dimension_numbers = #tpu.dot_dimension_numbers<[1], [0], [0], [1], [0, 0, 1, 1], [], []>} : vector<64x128xbf16>, vector<128x128xbf16>, vector<64x128xf32> -> vector<64x128xf32>
    %364 = vector.broadcast %74 : vector<64x1xf32> to vector<64x128xf32>
    %365 = vector.broadcast %42 : vector<1x128xf32> to vector<64x128xf32>
    %366 = arith.mulf %364, %365 : vector<64x128xf32>
    %367 = arith.addf %363, %366 : vector<64x128xf32>
    %368 = vector.broadcast %43 : vector<1x128xf32> to vector<64x128xf32>
    %369 = arith.addf %367, %368 : vector<64x128xf32>
    %cst_124 = arith.constant 0.000000e+00 : f32
    %370 = vector.broadcast %cst_124 : f32 to vector<64x128xf32>
    %371 = arith.cmpf ogt, %369, %370 : vector<64x128xf32>
    %cst_125 = arith.constant 0.00999999977 : f32
    %372 = vector.broadcast %cst_125 : f32 to vector<64x128xf32>
    %373 = arith.mulf %372, %369 : vector<64x128xf32>
    %374 = arith.select %371, %369, %373 : vector<64x128xi1>, vector<64x128xf32>
    %375 = arith.truncf %374 : vector<64x128xf32> to vector<64x128xbf16>
    %376 = arith.truncf %11 : vector<128x128xf32> to vector<128x128xbf16>
    %cst_126 = arith.constant dense<0.000000e+00> : vector<64x128xf32>
    %377 = tpu.matmul %375, %376, %cst_126 {dimension_numbers = #tpu.dot_dimension_numbers<[1], [0], [0], [1], [0, 0, 1, 1], [], []>} : vector<64x128xbf16>, vector<128x128xbf16>, vector<64x128xf32> -> vector<64x128xf32>
    %378 = vector.broadcast %44 : vector<1x128xf32> to vector<64x128xf32>
    %379 = arith.addf %377, %378 : vector<64x128xf32>
    %cst_127 = arith.constant 0.000000e+00 : f32
    %380 = vector.broadcast %cst_127 : f32 to vector<64x128xf32>
    %381 = arith.cmpf ogt, %379, %380 : vector<64x128xf32>
    %cst_128 = arith.constant 0.00999999977 : f32
    %382 = vector.broadcast %cst_128 : f32 to vector<64x128xf32>
    %383 = arith.mulf %382, %379 : vector<64x128xf32>
    %384 = arith.select %381, %379, %383 : vector<64x128xi1>, vector<64x128xf32>
    %385 = arith.truncf %384 : vector<64x128xf32> to vector<64x128xbf16>
    %386 = arith.truncf %13 : vector<128x128xf32> to vector<128x128xbf16>
    %cst_129 = arith.constant dense<0.000000e+00> : vector<64x128xf32>
    %387 = tpu.matmul %385, %386, %cst_129 {dimension_numbers = #tpu.dot_dimension_numbers<[1], [0], [0], [1], [0, 0, 1, 1], [], []>} : vector<64x128xbf16>, vector<128x128xbf16>, vector<64x128xf32> -> vector<64x128xf32>
    %388 = vector.broadcast %45 : vector<1x128xf32> to vector<64x128xf32>
    %389 = arith.addf %387, %388 : vector<64x128xf32>
    %cst_130 = arith.constant 0.000000e+00 : f32
    %390 = vector.broadcast %cst_130 : f32 to vector<64x128xf32>
    %391 = arith.cmpf ogt, %389, %390 : vector<64x128xf32>
    %cst_131 = arith.constant 0.00999999977 : f32
    %392 = vector.broadcast %cst_131 : f32 to vector<64x128xf32>
    %393 = arith.mulf %392, %389 : vector<64x128xf32>
    %394 = arith.select %391, %389, %393 : vector<64x128xi1>, vector<64x128xf32>
    %cst_132 = arith.constant dense<0.000000e+00> : vector<128xf32>
    %395 = vector.multi_reduction <add>, %394, %cst_132 [0] : vector<64x128xf32> to vector<128xf32>
    %396 = vector.shape_cast %395 : vector<128xf32> to vector<1x128xf32>
    %cst_133 = arith.constant 6.400000e+01 : f32
    %397 = vector.broadcast %cst_133 : f32 to vector<1x128xf32>
    %398 = arith.divf %396, %397 : vector<1x128xf32>
    %399 = vector.broadcast %398 : vector<1x128xf32> to vector<64x128xf32>
    %400 = arith.subf %394, %399 : vector<64x128xf32>
    %401 = arith.mulf %400, %400 : vector<64x128xf32>
    %cst_134 = arith.constant dense<0.000000e+00> : vector<128xf32>
    %402 = vector.multi_reduction <add>, %401, %cst_134 [0] : vector<64x128xf32> to vector<128xf32>
    %403 = vector.shape_cast %402 : vector<128xf32> to vector<1x128xf32>
    %cst_135 = arith.constant 6.400000e+01 : f32
    %404 = vector.broadcast %cst_135 : f32 to vector<1x128xf32>
    %405 = arith.divf %403, %404 : vector<1x128xf32>
    %406 = vector.broadcast %398 : vector<1x128xf32> to vector<64x128xf32>
    %407 = arith.subf %394, %406 : vector<64x128xf32>
    %408 = vector.broadcast %46 : vector<1x128xf32> to vector<64x128xf32>
    %409 = arith.mulf %408, %407 : vector<64x128xf32>
    %cst_136 = arith.constant 9.99999974E-6 : f32
    %410 = vector.broadcast %cst_136 : f32 to vector<1x128xf32>
    %411 = arith.addf %405, %410 : vector<1x128xf32>
    %412 = math.rsqrt %411 : vector<1x128xf32>
    %413 = vector.broadcast %412 : vector<1x128xf32> to vector<64x128xf32>
    %414 = arith.mulf %409, %413 : vector<64x128xf32>
    %415 = vector.broadcast %47 : vector<1x128xf32> to vector<64x128xf32>
    %416 = arith.addf %414, %415 : vector<64x128xf32>
    %417 = vector.broadcast %48 : vector<1x128xf32> to vector<64x128xf32>
    %418 = arith.mulf %416, %417 : vector<64x128xf32>
    %cst_137 = arith.constant dense<0.000000e+00> : vector<64xf32>
    %419 = vector.multi_reduction <add>, %418, %cst_137 [1] : vector<64x128xf32> to vector<64xf32>
    %420 = vector.shape_cast %419 : vector<64xf32> to vector<64x1xf32>
    %421 = vector.broadcast %66 : f32 to vector<64x1xf32>
    %422 = arith.addf %420, %421 : vector<64x1xf32>
    %423 = math.tanh %422 : vector<64x1xf32>
    %424 = vector.broadcast %49 : vector<1x128xf32> to vector<32x128xf32>
    %425 = arith.mulf %346, %424 : vector<32x128xf32>
    %cst_138 = arith.constant dense<0.000000e+00> : vector<32xf32>
    %426 = vector.multi_reduction <add>, %425, %cst_138 [1] : vector<32x128xf32> to vector<32xf32>
    %427 = vector.shape_cast %426 : vector<32xf32> to vector<32x1xf32>
    %428 = vector.broadcast %67 : f32 to vector<32x1xf32>
    %429 = arith.addf %427, %428 : vector<32x1xf32>
    %cst_139 = arith.constant 5.000000e-01 : f32
    %430 = vector.broadcast %cst_139 : f32 to vector<32x1xf32>
    %431 = arith.mulf %430, %429 : vector<32x1xf32>
    %432 = math.tanh %431 : vector<32x1xf32>
    %cst_140 = arith.constant 1.000000e+00 : f32
    %433 = vector.broadcast %cst_140 : f32 to vector<32x1xf32>
    %434 = arith.addf %432, %433 : vector<32x1xf32>
    %cst_141 = arith.constant 5.000000e-01 : f32
    %435 = vector.broadcast %cst_141 : f32 to vector<32x1xf32>
    %436 = arith.mulf %435, %434 : vector<32x1xf32>
    %437 = vector.broadcast %423 : vector<64x1xf32> to vector<64x128xf32>
    %438 = arith.mulf %437, %416 : vector<64x128xf32>
    %439 = vector.broadcast %436 : vector<32x1xf32> to vector<32x128xf32>
    %440 = arith.mulf %439, %346 : vector<32x128xf32>
    %441 = vector.extract_strided_slice %438 {offsets = [0, 0], sizes = [32, 128], strides = [1, 1]} : vector<64x128xf32> to vector<32x128xf32>
    %cst_142 = arith.constant dense<0.000000e+00> : vector<128xf32>
    %442 = vector.multi_reduction <add>, %441, %cst_142 [0] : vector<32x128xf32> to vector<128xf32>
    %443 = vector.shape_cast %442 : vector<128xf32> to vector<1x128xf32>
    %444 = vector.extract_strided_slice %416 {offsets = [0, 0], sizes = [32, 128], strides = [1, 1]} : vector<64x128xf32> to vector<32x128xf32>
    %cst_143 = arith.constant dense<0xFF800000> : vector<128xf32>
    %445 = vector.multi_reduction <maximumf>, %444, %cst_143 [0] : vector<32x128xf32> to vector<128xf32>
    %446 = vector.shape_cast %445 : vector<128xf32> to vector<1x128xf32>
    %447 = vector.extract_strided_slice %440 {offsets = [0, 0], sizes = [16, 128], strides = [1, 1]} : vector<32x128xf32> to vector<16x128xf32>
    %cst_144 = arith.constant dense<0.000000e+00> : vector<128xf32>
    %448 = vector.multi_reduction <add>, %447, %cst_144 [0] : vector<16x128xf32> to vector<128xf32>
    %449 = vector.shape_cast %448 : vector<128xf32> to vector<1x128xf32>
    %450 = vector.extract_strided_slice %346 {offsets = [0, 0], sizes = [16, 128], strides = [1, 1]} : vector<32x128xf32> to vector<16x128xf32>
    %cst_145 = arith.constant dense<0xFF800000> : vector<128xf32>
    %451 = vector.multi_reduction <maximumf>, %450, %cst_145 [0] : vector<16x128xf32> to vector<128xf32>
    %452 = vector.shape_cast %451 : vector<128xf32> to vector<1x128xf32>
    %453 = vector.extract_strided_slice %438 {offsets = [32, 0], sizes = [32, 128], strides = [1, 1]} : vector<64x128xf32> to vector<32x128xf32>
    %cst_146 = arith.constant dense<0.000000e+00> : vector<128xf32>
    %454 = vector.multi_reduction <add>, %453, %cst_146 [0] : vector<32x128xf32> to vector<128xf32>
    %455 = vector.shape_cast %454 : vector<128xf32> to vector<1x128xf32>
    %456 = vector.extract_strided_slice %416 {offsets = [32, 0], sizes = [32, 128], strides = [1, 1]} : vector<64x128xf32> to vector<32x128xf32>
    %cst_147 = arith.constant dense<0xFF800000> : vector<128xf32>
    %457 = vector.multi_reduction <maximumf>, %456, %cst_147 [0] : vector<32x128xf32> to vector<128xf32>
    %458 = vector.shape_cast %457 : vector<128xf32> to vector<1x128xf32>
    %459 = vector.extract_strided_slice %440 {offsets = [16, 0], sizes = [16, 128], strides = [1, 1]} : vector<32x128xf32> to vector<16x128xf32>
    %cst_148 = arith.constant dense<0.000000e+00> : vector<128xf32>
    %460 = vector.multi_reduction <add>, %459, %cst_148 [0] : vector<16x128xf32> to vector<128xf32>
    %461 = vector.shape_cast %460 : vector<128xf32> to vector<1x128xf32>
    %462 = vector.extract_strided_slice %346 {offsets = [16, 0], sizes = [16, 128], strides = [1, 1]} : vector<32x128xf32> to vector<16x128xf32>
    %cst_149 = arith.constant dense<0xFF800000> : vector<128xf32>
    %463 = vector.multi_reduction <maximumf>, %462, %cst_149 [0] : vector<16x128xf32> to vector<128xf32>
    %464 = vector.shape_cast %463 : vector<128xf32> to vector<1x128xf32>
    %465 = tpu.concatenate %443, %455 in 0 : vector<1x128xf32>, vector<1x128xf32> -> vector<2x128xf32>
    %466 = tpu.concatenate %446, %458 in 0 : vector<1x128xf32>, vector<1x128xf32> -> vector<2x128xf32>
    %467 = tpu.concatenate %465, %466 in 1 : vector<2x128xf32>, vector<2x128xf32> -> vector<2x256xf32>
    %468 = tpu.concatenate %449, %461 in 0 : vector<1x128xf32>, vector<1x128xf32> -> vector<2x128xf32>
    %469 = tpu.concatenate %452, %464 in 0 : vector<1x128xf32>, vector<1x128xf32> -> vector<2x128xf32>
    %470 = tpu.concatenate %468, %469 in 1 : vector<2x128xf32>, vector<2x128xf32> -> vector<2x256xf32>
    %471 = arith.truncf %467 : vector<2x256xf32> to vector<2x256xbf16>
    %472 = arith.truncf %27 : vector<256x128xf32> to vector<256x128xbf16>
    %cst_150 = arith.constant dense<0.000000e+00> : vector<2x128xf32>
    %473 = tpu.matmul %471, %472, %cst_150 {dimension_numbers = #tpu.dot_dimension_numbers<[1], [0], [0], [1], [0, 0, 1, 1], [], []>} : vector<2x256xbf16>, vector<256x128xbf16>, vector<2x128xf32> -> vector<2x128xf32>
    %474 = vector.broadcast %50 : vector<1x128xf32> to vector<2x128xf32>
    %475 = arith.addf %473, %474 : vector<2x128xf32>
    %cst_151 = arith.constant 0.000000e+00 : f32
    %476 = vector.broadcast %cst_151 : f32 to vector<2x128xf32>
    %477 = arith.cmpf ogt, %475, %476 : vector<2x128xf32>
    %cst_152 = arith.constant 0.00999999977 : f32
    %478 = vector.broadcast %cst_152 : f32 to vector<2x128xf32>
    %479 = arith.mulf %478, %475 : vector<2x128xf32>
    %480 = arith.select %477, %475, %479 : vector<2x128xi1>, vector<2x128xf32>
    %cst_153 = arith.constant dense<0.000000e+00> : vector<128xf32>
    %481 = vector.multi_reduction <add>, %480, %cst_153 [0] : vector<2x128xf32> to vector<128xf32>
    %482 = vector.shape_cast %481 : vector<128xf32> to vector<1x128xf32>
    %cst_154 = arith.constant 2.000000e+00 : f32
    %483 = vector.broadcast %cst_154 : f32 to vector<1x128xf32>
    %484 = arith.divf %482, %483 : vector<1x128xf32>
    %485 = vector.broadcast %484 : vector<1x128xf32> to vector<2x128xf32>
    %486 = arith.subf %480, %485 : vector<2x128xf32>
    %487 = arith.mulf %486, %486 : vector<2x128xf32>
    %cst_155 = arith.constant dense<0.000000e+00> : vector<128xf32>
    %488 = vector.multi_reduction <add>, %487, %cst_155 [0] : vector<2x128xf32> to vector<128xf32>
    %489 = vector.shape_cast %488 : vector<128xf32> to vector<1x128xf32>
    %cst_156 = arith.constant 2.000000e+00 : f32
    %490 = vector.broadcast %cst_156 : f32 to vector<1x128xf32>
    %491 = arith.divf %489, %490 : vector<1x128xf32>
    %492 = vector.broadcast %484 : vector<1x128xf32> to vector<2x128xf32>
    %493 = arith.subf %480, %492 : vector<2x128xf32>
    %494 = vector.broadcast %51 : vector<1x128xf32> to vector<2x128xf32>
    %495 = arith.mulf %494, %493 : vector<2x128xf32>
    %cst_157 = arith.constant 9.99999974E-6 : f32
    %496 = vector.broadcast %cst_157 : f32 to vector<1x128xf32>
    %497 = arith.addf %491, %496 : vector<1x128xf32>
    %498 = math.rsqrt %497 : vector<1x128xf32>
    %499 = vector.broadcast %498 : vector<1x128xf32> to vector<2x128xf32>
    %500 = arith.mulf %495, %499 : vector<2x128xf32>
    %501 = vector.broadcast %52 : vector<1x128xf32> to vector<2x128xf32>
    %502 = arith.addf %500, %501 : vector<2x128xf32>
    %503 = arith.truncf %502 : vector<2x128xf32> to vector<2x128xbf16>
    %504 = arith.truncf %15 : vector<128x128xf32> to vector<128x128xbf16>
    %cst_158 = arith.constant dense<0.000000e+00> : vector<2x128xf32>
    %505 = tpu.matmul %503, %504, %cst_158 {dimension_numbers = #tpu.dot_dimension_numbers<[1], [0], [0], [1], [0, 0, 1, 1], [], []>} : vector<2x128xbf16>, vector<128x128xbf16>, vector<2x128xf32> -> vector<2x128xf32>
    %506 = vector.broadcast %53 : vector<1x128xf32> to vector<2x128xf32>
    %507 = arith.addf %505, %506 : vector<2x128xf32>
    %cst_159 = arith.constant 0.000000e+00 : f32
    %508 = vector.broadcast %cst_159 : f32 to vector<2x128xf32>
    %509 = arith.cmpf ogt, %507, %508 : vector<2x128xf32>
    %cst_160 = arith.constant 0.00999999977 : f32
    %510 = vector.broadcast %cst_160 : f32 to vector<2x128xf32>
    %511 = arith.mulf %510, %507 : vector<2x128xf32>
    %512 = arith.select %509, %507, %511 : vector<2x128xi1>, vector<2x128xf32>
    %cst_161 = arith.constant dense<0.000000e+00> : vector<128xf32>
    %513 = vector.multi_reduction <add>, %512, %cst_161 [0] : vector<2x128xf32> to vector<128xf32>
    %514 = vector.shape_cast %513 : vector<128xf32> to vector<1x128xf32>
    %cst_162 = arith.constant 2.000000e+00 : f32
    %515 = vector.broadcast %cst_162 : f32 to vector<1x128xf32>
    %516 = arith.divf %514, %515 : vector<1x128xf32>
    %517 = vector.broadcast %516 : vector<1x128xf32> to vector<2x128xf32>
    %518 = arith.subf %512, %517 : vector<2x128xf32>
    %519 = arith.mulf %518, %518 : vector<2x128xf32>
    %cst_163 = arith.constant dense<0.000000e+00> : vector<128xf32>
    %520 = vector.multi_reduction <add>, %519, %cst_163 [0] : vector<2x128xf32> to vector<128xf32>
    %521 = vector.shape_cast %520 : vector<128xf32> to vector<1x128xf32>
    %cst_164 = arith.constant 2.000000e+00 : f32
    %522 = vector.broadcast %cst_164 : f32 to vector<1x128xf32>
    %523 = arith.divf %521, %522 : vector<1x128xf32>
    %524 = vector.broadcast %516 : vector<1x128xf32> to vector<2x128xf32>
    %525 = arith.subf %512, %524 : vector<2x128xf32>
    %526 = vector.broadcast %54 : vector<1x128xf32> to vector<2x128xf32>
    %527 = arith.mulf %526, %525 : vector<2x128xf32>
    %cst_165 = arith.constant 9.99999974E-6 : f32
    %528 = vector.broadcast %cst_165 : f32 to vector<1x128xf32>
    %529 = arith.addf %523, %528 : vector<1x128xf32>
    %530 = math.rsqrt %529 : vector<1x128xf32>
    %531 = vector.broadcast %530 : vector<1x128xf32> to vector<2x128xf32>
    %532 = arith.mulf %527, %531 : vector<2x128xf32>
    %533 = vector.broadcast %55 : vector<1x128xf32> to vector<2x128xf32>
    %534 = arith.addf %532, %533 : vector<2x128xf32>
    %535 = vector.broadcast %56 : vector<1x128xf32> to vector<2x128xf32>
    %536 = arith.mulf %534, %535 : vector<2x128xf32>
    %cst_166 = arith.constant dense<0.000000e+00> : vector<2xf32>
    %537 = vector.multi_reduction <add>, %536, %cst_166 [1] : vector<2x128xf32> to vector<2xf32>
    %538 = vector.shape_cast %537 : vector<2xf32> to vector<2x1xf32>
    %539 = vector.broadcast %68 : f32 to vector<2x1xf32>
    %540 = arith.addf %538, %539 : vector<2x1xf32>
    %541 = arith.truncf %470 : vector<2x256xf32> to vector<2x256xbf16>
    %542 = arith.truncf %29 : vector<256x128xf32> to vector<256x128xbf16>
    %cst_167 = arith.constant dense<0.000000e+00> : vector<2x128xf32>
    %543 = tpu.matmul %541, %542, %cst_167 {dimension_numbers = #tpu.dot_dimension_numbers<[1], [0], [0], [1], [0, 0, 1, 1], [], []>} : vector<2x256xbf16>, vector<256x128xbf16>, vector<2x128xf32> -> vector<2x128xf32>
    %544 = vector.broadcast %57 : vector<1x128xf32> to vector<2x128xf32>
    %545 = arith.addf %543, %544 : vector<2x128xf32>
    %cst_168 = arith.constant 0.000000e+00 : f32
    %546 = vector.broadcast %cst_168 : f32 to vector<2x128xf32>
    %547 = arith.cmpf ogt, %545, %546 : vector<2x128xf32>
    %cst_169 = arith.constant 0.00999999977 : f32
    %548 = vector.broadcast %cst_169 : f32 to vector<2x128xf32>
    %549 = arith.mulf %548, %545 : vector<2x128xf32>
    %550 = arith.select %547, %545, %549 : vector<2x128xi1>, vector<2x128xf32>
    %cst_170 = arith.constant dense<0.000000e+00> : vector<128xf32>
    %551 = vector.multi_reduction <add>, %550, %cst_170 [0] : vector<2x128xf32> to vector<128xf32>
    %552 = vector.shape_cast %551 : vector<128xf32> to vector<1x128xf32>
    %cst_171 = arith.constant 2.000000e+00 : f32
    %553 = vector.broadcast %cst_171 : f32 to vector<1x128xf32>
    %554 = arith.divf %552, %553 : vector<1x128xf32>
    %555 = vector.broadcast %554 : vector<1x128xf32> to vector<2x128xf32>
    %556 = arith.subf %550, %555 : vector<2x128xf32>
    %557 = arith.mulf %556, %556 : vector<2x128xf32>
    %cst_172 = arith.constant dense<0.000000e+00> : vector<128xf32>
    %558 = vector.multi_reduction <add>, %557, %cst_172 [0] : vector<2x128xf32> to vector<128xf32>
    %559 = vector.shape_cast %558 : vector<128xf32> to vector<1x128xf32>
    %cst_173 = arith.constant 2.000000e+00 : f32
    %560 = vector.broadcast %cst_173 : f32 to vector<1x128xf32>
    %561 = arith.divf %559, %560 : vector<1x128xf32>
    %562 = vector.broadcast %554 : vector<1x128xf32> to vector<2x128xf32>
    %563 = arith.subf %550, %562 : vector<2x128xf32>
    %564 = vector.broadcast %58 : vector<1x128xf32> to vector<2x128xf32>
    %565 = arith.mulf %564, %563 : vector<2x128xf32>
    %cst_174 = arith.constant 9.99999974E-6 : f32
    %566 = vector.broadcast %cst_174 : f32 to vector<1x128xf32>
    %567 = arith.addf %561, %566 : vector<1x128xf32>
    %568 = math.rsqrt %567 : vector<1x128xf32>
    %569 = vector.broadcast %568 : vector<1x128xf32> to vector<2x128xf32>
    %570 = arith.mulf %565, %569 : vector<2x128xf32>
    %571 = vector.broadcast %59 : vector<1x128xf32> to vector<2x128xf32>
    %572 = arith.addf %570, %571 : vector<2x128xf32>
    %573 = arith.truncf %572 : vector<2x128xf32> to vector<2x128xbf16>
    %574 = arith.truncf %17 : vector<128x128xf32> to vector<128x128xbf16>
    %cst_175 = arith.constant dense<0.000000e+00> : vector<2x128xf32>
    %575 = tpu.matmul %573, %574, %cst_175 {dimension_numbers = #tpu.dot_dimension_numbers<[1], [0], [0], [1], [0, 0, 1, 1], [], []>} : vector<2x128xbf16>, vector<128x128xbf16>, vector<2x128xf32> -> vector<2x128xf32>
    %576 = vector.broadcast %60 : vector<1x128xf32> to vector<2x128xf32>
    %577 = arith.addf %575, %576 : vector<2x128xf32>
    %cst_176 = arith.constant 0.000000e+00 : f32
    %578 = vector.broadcast %cst_176 : f32 to vector<2x128xf32>
    %579 = arith.cmpf ogt, %577, %578 : vector<2x128xf32>
    %cst_177 = arith.constant 0.00999999977 : f32
    %580 = vector.broadcast %cst_177 : f32 to vector<2x128xf32>
    %581 = arith.mulf %580, %577 : vector<2x128xf32>
    %582 = arith.select %579, %577, %581 : vector<2x128xi1>, vector<2x128xf32>
    %cst_178 = arith.constant dense<0.000000e+00> : vector<128xf32>
    %583 = vector.multi_reduction <add>, %582, %cst_178 [0] : vector<2x128xf32> to vector<128xf32>
    %584 = vector.shape_cast %583 : vector<128xf32> to vector<1x128xf32>
    %cst_179 = arith.constant 2.000000e+00 : f32
    %585 = vector.broadcast %cst_179 : f32 to vector<1x128xf32>
    %586 = arith.divf %584, %585 : vector<1x128xf32>
    %587 = vector.broadcast %586 : vector<1x128xf32> to vector<2x128xf32>
    %588 = arith.subf %582, %587 : vector<2x128xf32>
    %589 = arith.mulf %588, %588 : vector<2x128xf32>
    %cst_180 = arith.constant dense<0.000000e+00> : vector<128xf32>
    %590 = vector.multi_reduction <add>, %589, %cst_180 [0] : vector<2x128xf32> to vector<128xf32>
    %591 = vector.shape_cast %590 : vector<128xf32> to vector<1x128xf32>
    %cst_181 = arith.constant 2.000000e+00 : f32
    %592 = vector.broadcast %cst_181 : f32 to vector<1x128xf32>
    %593 = arith.divf %591, %592 : vector<1x128xf32>
    %594 = vector.broadcast %586 : vector<1x128xf32> to vector<2x128xf32>
    %595 = arith.subf %582, %594 : vector<2x128xf32>
    %596 = vector.broadcast %61 : vector<1x128xf32> to vector<2x128xf32>
    %597 = arith.mulf %596, %595 : vector<2x128xf32>
    %cst_182 = arith.constant 9.99999974E-6 : f32
    %598 = vector.broadcast %cst_182 : f32 to vector<1x128xf32>
    %599 = arith.addf %593, %598 : vector<1x128xf32>
    %600 = math.rsqrt %599 : vector<1x128xf32>
    %601 = vector.broadcast %600 : vector<1x128xf32> to vector<2x128xf32>
    %602 = arith.mulf %597, %601 : vector<2x128xf32>
    %603 = vector.broadcast %62 : vector<1x128xf32> to vector<2x128xf32>
    %604 = arith.addf %602, %603 : vector<2x128xf32>
    %605 = vector.broadcast %63 : vector<1x128xf32> to vector<2x128xf32>
    %606 = arith.mulf %604, %605 : vector<2x128xf32>
    %cst_183 = arith.constant dense<0.000000e+00> : vector<2xf32>
    %607 = vector.multi_reduction <add>, %606, %cst_183 [1] : vector<2x128xf32> to vector<2xf32>
    %608 = vector.shape_cast %607 : vector<2xf32> to vector<2x1xf32>
    %609 = vector.broadcast %69 : f32 to vector<2x1xf32>
    %610 = arith.addf %608, %609 : vector<2x1xf32>
    %611 = vector.broadcast %70 : f32 to vector<2x1xf32>
    %612 = arith.mulf %611, %540 : vector<2x1xf32>
    %613 = vector.broadcast %71 : f32 to vector<2x1xf32>
    %614 = arith.mulf %613, %610 : vector<2x1xf32>
    %615 = arith.addf %612, %614 : vector<2x1xf32>
    %c0_184 = arith.constant 0 : index
    %c0_185 = arith.constant 0 : index
    %616 = vector.load %arg13[%c0_184, %c0_185] : memref<2x1xf32, #tpu.memory_space<vmem>>, vector<2x1xf32>
    tpu.vector_store %arg13[%c0_184, %c0_185], %615 {strides = array<i32>} : memref<2x1xf32, #tpu.memory_space<vmem>>, vector<2x1xf32>,
    return
  }
}

</mosaic_0001>

<bundles_post_ra>
// kernel: tpu_custom_call.1
= control target key start
LH: loop header
LB: loop body
LE: loop exit
PB: predicated region body
PF: predicated region fallthrough
CT: control target
= control target key end

     0   :  { %18 = vsyncpa [#allocation3], 0  ;;  %s6269_s0 = inlined_call_operand.vmem [shape: f32[32,64], index: 0, kind: input, shape index: {}]   ;;  %s6270_s1 = inlined_call_operand.vmem [shape: f32[64,64], index: 1, kind: input, shape index: {}]   ;;  %s6271_s2 = inlined_call_operand.vmem [shape: f32[64,1], index: 2, kind: input, shape index: {}]   ;;  %s6272_s3 = inlined_call_operand.vmem [shape: s32[64,1], index: 3, kind: input, shape index: {}]   ;;  %s6273_s4 = inlined_call_operand.vmem [shape: s32[64,1], index: 4, kind: input, shape index: {}]   ;;  %s6274_s5 = inlined_call_operand.vmem [shape: s32[64,1], index: 5, kind: input, shape index: {}]   ;;  %s6275_s6 = inlined_call_operand.vmem [shape: s32[64,1], index: 6, kind: input, shape index: {}]   ;;  %s6276_s7 = inlined_call_operand.vmem [shape: f32[64,128], index: 7, kind: input, shape index: {}]   ;;  %s6277_s8 = inlined_call_operand.hbm [shape: f32[8,128,128], index: 8, kind: input, shape index: {}]   ;;  %s6278_s9 = inlined_call_operand.hbm [shape: f32[4,128,384], index: 9, kind: input, shape index: {}]   ;;  %s6279_s10 = inlined_call_operand.hbm [shape: f32[2,256,128], index: 10, kind: input, shape index: {}]   ;;  %s6280_s11 = inlined_call_operand.vmem [shape: f32[34,384], index: 11, kind: input, shape index: {}]   ;;  %s6281_s12 = inlined_call_operand.vmem [shape: f32[8], index: 12, kind: input, shape index: {}]   ;;  %s6282_s13 = inlined_call_operand.vmem [shape: f32[2,1], index: 13, kind: output, shape index: {}]  }
   0x1   :  { %19 = vsyncpa [#allocation6], 0 }
   0x2   :  { %20 = vsyncpa [#allocation4], 0  ;;  %s5066_s25 = smov [#allocation5]   ;;  %s4982_s29 = scalar_lea.hbm %s6278_s9, 24576 }
   0x3   :  { %s54_s26 = sshll.u32 %s5066_s25, 4  ;;  %p4983_p0 = scmp.ne.s32.totalorder %s6278_s9, %s4982_s29  ;;  %s55_s26 = int_to_ptr.vmem [resolvable:$true] %s54_s26 }
   0x4   :  { %p4986_p1 = scmp.lt.u32.totalorder %s4982_s29, %s6278_s9 }
   0x6   :  { %p4988_p2 = pnand %p4986_p1, %p4983_p0 }
   0x8   :  { %4991 = shalt.err (!%p4988_p2)
}
   0x9   :  { %s4992_s17 = scalar_lea.vmem %s55_s26, 24576  ;;  %p4997_p4 = scmp.lt.s32.totalorder %s55_s26, %s55_s26 }
   0xa   :  { %p4993_p3 = scmp.ne.s32.totalorder %s55_s26, %s4992_s17  ;;  %p4998_p5 = scmp.lt.s32.totalorder %s4992_s17, %s4992_s17 }
   0xc   :  { %p4999_p6 = por %p4998_p5, %p4997_p4 }
   0xe   :  { %p5000_p7 = pnand %p4999_p6, %p4993_p3 }
  0x10   :  { %5003 = shalt.err (!%p5000_p7)
}
  0x11   :  { %s5067_s18 = smov 384   ;;  %s5068_s19 = smov 24  }
  0x12   :  { %60 = dma.hbm_to_vmem [thread:$0]  %s6278_s9, 24576, %s55_s26, [#allocation6], %s5067_s18, %s5067_s18, %s5068_s19  }
  0x13   :  { %s5069_s22 = smov [#allocation2]   ;;  %s5004_s27 = scalar_lea.hbm %s6277_s8, 16384 }
  0x14   :  { %s42_s23 = sshll.u32 %s5069_s22, 4  ;;  %p5005_p8 = scmp.ne.s32.totalorder %s6277_s8, %s5004_s27  ;;  %s43_s23 = int_to_ptr.vmem [resolvable:$true] %s42_s23 }
  0x15   :  { %p5008_p9 = scmp.lt.u32.totalorder %s5004_s27, %s6277_s8 }
  0x17   :  { %p5010_p10 = pnand %p5008_p9, %p5005_p8 }
  0x19   :  { %5013 = shalt.err (!%p5010_p10)
}
  0x1a   :  { %s5014_s15 = scalar_lea.vmem %s43_s23, 16384  ;;  %p5019_p12 = scmp.lt.s32.totalorder %s43_s23, %s43_s23 }
  0x1b   :  { %p5015_p11 = scmp.ne.s32.totalorder %s43_s23, %s5014_s15  ;;  %p5020_p13 = scmp.lt.s32.totalorder %s5014_s15, %s5014_s15 }
  0x1d   :  { %p5021_p0 = por %p5020_p13, %p5019_p12 }
  0x1f   :  { %p5022_p1 = pnand %p5021_p0, %p5015_p11 }
  0x21   :  { %5025 = shalt.err (!%p5022_p1)
}
  0x22   :  { %s5070_s9 = smov 128   ;;  %s5071_s26 = smov 8  }
  0x23   :  { %48 = dma.hbm_to_vmem [thread:$0]  %s6277_s8, 16384, %s43_s23, [#allocation3], %s5070_s9, %s5070_s9, %s5071_s26  }
  0x24   :  { %s81_s20 = sshll.u32 %s6281_s12, 4  ;;  %s5072_s21 = smov [#allocation7]   ;;  %s82_s20 = int_to_ptr.vmem [resolvable:$true] %s81_s20 }
  0x25   :  { %s66_s22 = sshll.u32 %s5072_s21, 4  ;;  %s5026_s27 = scalar_lea.hbm %s6279_s10, 8192  ;;  %s67_s22 = int_to_ptr.vmem [resolvable:$true] %s66_s22 }
  0x26   :  { %p5027_p2 = scmp.ne.s32.totalorder %s6279_s10, %s5026_s27  ;;  %p5030_p3 = scmp.lt.u32.totalorder %s5026_s27, %s6279_s10 }
  0x28   :  { %p5032_p4 = pnand %p5030_p3, %p5027_p2 }
  0x2a   :  { %5035 = shalt.err (!%p5032_p4)
}
  0x2b   :  { %s5036_s8 = scalar_lea.vmem %s67_s22, 8192  ;;  %p5041_p6 = scmp.lt.s32.totalorder %s67_s22, %s67_s22 }
  0x2c   :  { %p5037_p5 = scmp.ne.s32.totalorder %s67_s22, %s5036_s8  ;;  %p5042_p7 = scmp.lt.s32.totalorder %s5036_s8, %s5036_s8 }
  0x2e   :  { %p5043_p8 = por %p5042_p7, %p5041_p6 }
  0x30   :  { %p5044_p9 = pnand %p5043_p8, %p5037_p5 }
  0x32   :  { %5047 = shalt.err (!%p5044_p9)
}
  0x33   :  { %72 = dma.hbm_to_vmem [thread:$0]  %s6279_s10, 8192, %s67_s22, [#allocation6], %s5070_s9, %s5070_s9, %s5071_s26  }
  0x34   :  { %s5048_s15 = scalar_lea.vmem %s82_s20, 16  ;;  %p5053_p11 = scmp.lt.s32.totalorder %s82_s20, %s82_s20 }
  0x35   :  { %p5049_p10 = scmp.ne.s32.totalorder %s82_s20, %s5048_s15  ;;  %p5054_p12 = scmp.lt.s32.totalorder %s5048_s15, %s5048_s15 }
  0x37   :  { %p5055_p13 = por %p5054_p12, %p5053_p11 }
  0x39   :  { %p5056_p0 = pnand %p5055_p13, %p5049_p10 }
  0x3b   :  { %5059 = shalt.err (!%p5056_p0)
}
  0x3c   :  { %s5073_s16 = smov [#allocation8]  }
  0x3d   :  { %84 = dma.vmem_to_smem %s82_s20, 16, %s5073_s16, [#allocation4]  }
  0x3e   :  { %5060 = dma.done.wait [#allocation3], 16384  }
  0x3f   :  { %5061 = vsyncadd [#allocation3], 4294950912 }
  0x40   :  { %5062 = dma.done.wait [#allocation6], 32768  }
  0x41   :  { %5063 = vsyncadd [#allocation6], 4294934528 }
  0x42   :  { %5064 = dma.done.wait [#allocation4], 16  }
  0x43   :  { %5065 = vsyncadd [#allocation4], 4294967280 }
  0x44   :  { %97 = sfence }
  0x45   :  { %v541_v0 = vld [vmem:[%s6272_s3 + $0x10] sm:$0xff]  ;;  %v539_v1 = vld [vmem:[%s6272_s3] sm:$0xff]  ;;  %v5074_v3 = vmov 0   ;;  %v109_v4 = vld [vmem:[%s6276_s7 + $0x8] sm:$0xff]  ;;  %vm6283_vm0 = vcmask 523264   ;;  %s5075_s27 = smov 64   ;;  %v571_v47 = vlaneseq }
  0x46   :  { %v108_v2 = vld [vmem:[%s6276_s7] sm:$0xff]  ;;  %4795 = vset.pattern.permute.xlu1 %v5074_v3  ;;  %4794 = vset.pattern.permute.xlu0 %v5074_v3  ;;  %v110_v6 = vld [vmem:[%s6276_s7 + $0x10] sm:$0xff]  ;;  %v111_v7 = vld [vmem:[%s6276_s7 + $0x18] sm:$0xff]  ;;  %vm791_vm5 = vcmask 261120   ;;  %v5076_v58 = vmov 0.0   ;;  %s511_s20 = sld [smem:[#allocation8]] }
  0x47   :  { %580 = vperm.xlu1 %4795, %v541_v0   ;;  %574 = vperm.xlu0 %4794, %v539_v1   ;;  %v695_v5 = vpack.c.bf16 %v109_v4, %v108_v2  ;;  %v542_v8 = vld [vmem:[%s6272_s3 + $0x18] sm:$0xff]  ;;  %v540_v9 = vld [vmem:[%s6272_s3 + $0x8] sm:$0xff]  ;;  %v696_v10 = vpack.c.bf16 %v111_v7, %v110_v6  ;;  %v112_v11 = vld [vmem:[%s6276_s7 + $0x20] sm:$0xff]  ;;  %v5300_v48 = vand.u32 127, %v571_v47  ;;  %s4063_s29 = sld [smem:[#allocation8 + $0x1]]  ;;  %s4064_s14 = sld [smem:[#allocation8 + $0x2]] }
  0x48   :  { %v113_v12 = vld [vmem:[%s6276_s7 + $0x28] sm:$0xff]  ;;  %v519_v13 = vld [vmem:[%s6269_s0] sm:$0xff]  ;;  %v114_v18 = vld [vmem:[%s6276_s7 + $0x30] sm:$0xff]  ;;  %s4065_s8 = sld [smem:[#allocation8 + $0x3]]  ;;  %s4066_s15 = sld [smem:[#allocation8 + $0x4]] }
  0x49   :  { %4366 = vmatprep.subr.bf16.mxu0 %v695_v5  ;;  %v520_v14 = vld [vmem:[%s6269_s0 + $0x8] sm:$0xff]  ;;  %v543_v16 = vld [vmem:[%s6272_s3 + $0x20] sm:$0xff]  ;;  %v697_v17 = vpack.c.bf16 %v113_v12, %v112_v11  ;;  %v115_v20 = vld [vmem:[%s6276_s7 + $0x38] sm:$0xff]  ;;  %s4067_s16 = sld [smem:[#allocation8 + $0x5]]  ;;  %s4069_s17 = sld [smem:[#allocation8 + $0x7]] }
  0x4a   :  { %4367 = vmatpush3.bf16.msra.mxu0 %v695_v5  ;;  %v544_v15 = vld [vmem:[%s6272_s3 + $0x28] sm:$0xff]  ;;  %v693_v19 = vpack.c.bf16 %v520_v14, %v519_v13  ;;  %v521_v21 = vld [vmem:[%s6269_s0 + $0x10] sm:$0xff]  ;;  %v522_v22 = vld [vmem:[%s6269_s0 + $0x18] sm:$0xff]  ;;  %v698_v25 = vpack.c.bf16 %v115_v20, %v114_v18 }
  0x4b   :  { %583 = vperm.xlu1 %4795, %v542_v8   ;;  %577 = vperm.xlu0 %4794, %v540_v9   ;;  %v546_v23 = vld [vmem:[%s6272_s3 + $0x38] sm:$0xff]  ;;  %v545_v24 = vld [vmem:[%s6272_s3 + $0x30] sm:$0xff]  ;;  %v694_v26 = vpack.c.bf16 %v522_v22, %v521_v21  ;;  %v548_v27 = vld [vmem:[%s6273_s4 + $0x8] sm:$0xff]  ;;  %s4068_s3 = sld [smem:[#allocation8 + $0x6]] }
  0x4c   :  { %4368 = vmatprep.subr.bf16.mxu0 %v696_v10  ;;  %4374 = vmatprep.mubr.msk.bf16.mxu0 %vm6283_vm0, %v693_v19  ;;  %v547_v28 = vld [vmem:[%s6273_s4] sm:$0xff]  ;;  %v550_v29 = vld [vmem:[%s6273_s4 + $0x18] sm:$0xff]  ;;  %v549_v30 = vld [vmem:[%s6273_s4 + $0x10] sm:$0xff] }
  0x4d   :  { %4378 = vmatprep.subr.bf16.mxu1 %v693_v19  ;;  %v525_v31 = vld [vmem:[%s6270_s1 + $0x10] sm:$0xff]  ;;  %v526_v32 = vld [vmem:[%s6270_s1 + $0x18] sm:$0xff]  ;;  %v523_v33 = vld [vmem:[%s6270_s1] sm:$0xff] }
  0x4e   :  { %4369 = vmatpush3.bf16.msra.mxu0 %v696_v10  ;;  %4379 = vmatpush3.bf16.msra.mxu1 %v693_v19  ;;  %v524_v34 = vld [vmem:[%s6270_s1 + $0x8] sm:$0xff]  ;;  %v4801_v35 = vpack.i.bf16 %v526_v32, %v525_v31  ;;  %v551_v38 = vld [vmem:[%s6273_s4 + $0x20] sm:$0xff]  ;;  %v554_v39 = vld [vmem:[%s6273_s4 + $0x38] sm:$0xff]  ;;  %v5349_v32 = vshrl.u32 %v571_v47, 7 }
  0x4f   :  { %589 = vperm.xlu1 %4795, %v544_v15   ;;  %586 = vperm.xlu0 %4794, %v543_v16   ;;  %v4796_v36 = vpack.i.bf16 %v524_v34, %v523_v33  ;;  %v552_v37 = vld [vmem:[%s6273_s4 + $0x28] sm:$0xff]  ;;  %v553_v40 = vld [vmem:[%s6273_s4 + $0x30] sm:$0xff]  ;;  %v530_v42 = vld [vmem:[%s6270_s1 + $0x38] sm:$0xff] }
  0x50   :  { %4370 = vmatprep.subr.bf16.mxu0 %v697_v17  ;;  %4380 = vmatprep.subr.bf16.mxu1 %v694_v26  ;;  %v529_v41 = vld [vmem:[%s6270_s1 + $0x30] sm:$0xff]  ;;  %v527_v44 = vld [vmem:[%s6270_s1 + $0x20] sm:$0xff]  ;;  %v528_v45 = vld [vmem:[%s6270_s1 + $0x28] sm:$0xff] }
  0x51   :  { %v4811_v43 = vpack.i.bf16 %v530_v42, %v529_v41  ;;  %v4806_v46 = vpack.i.bf16 %v528_v45, %v527_v44  ;;  %v116_v51 = vld [vmem:[#allocation2] sm:$0xff]  ;;  %v117_v52 = vld [vmem:[#allocation2 + $0x8] sm:$0xff]  ;;  %v118_v56 = vld [vmem:[#allocation2 + $0x10] sm:$0xff] }
  0x52   :  { %4371 = vmatpush3.bf16.msra.mxu0 %v697_v17  ;;  %4381 = vmatpush3.bf16.msra.mxu1 %v694_v26  ;;  %v913_v53 = vpack.c.bf16 %v117_v52, %v116_v51  ;;  %v119_v57 = vld [vmem:[#allocation2 + $0x18] sm:$0xff]  ;;  %v120_v5 = vld [vmem:[#allocation2 + $0x20] sm:$0xff]  ;;  %v121_v6 = vld [vmem:[#allocation2 + $0x28] sm:$0xff] }
  0x53   :  { %595 = vperm.xlu1 %4795, %v546_v23   ;;  %592 = vperm.xlu0 %4794, %v545_v24   ;;  %v914_v4 = vpack.c.bf16 %v119_v57, %v118_v56  ;;  %v915_v12 = vpack.c.bf16 %v121_v6, %v120_v5  ;;  %v122_v13 = vld [vmem:[#allocation2 + $0x30] sm:$0xff]  ;;  %v123_v14 = vld [vmem:[#allocation2 + $0x38] sm:$0xff]  ;;  %v124_v21 = vld [vmem:[#allocation2 + $0x40] sm:$0xff] }
  0x54   :  { %4372 = vmatprep.subr.bf16.mxu0 %v698_v25  ;;  %4390 = vmatprep.subr.bf16.mxu1 %v913_v53  ;;  %v916_v20 = vpack.c.bf16 %v123_v14, %v122_v13  ;;  %v125_v22 = vld [vmem:[#allocation2 + $0x48] sm:$0xff]  ;;  %v130_v34 = vld [vmem:[#allocation2 + $0x70] sm:$0xff] }
  0x55   :  { %v129_v31 = vld [vmem:[#allocation2 + $0x68] sm:$0xff] }
  0x56   :  { %4373 = vmatpush3.bf16.msra.mxu0 %v698_v25 }
  0x57   :  { %609 = vperm.xlu1 %4795, %v548_v27   ;;  %606 = vperm.xlu0 %4794, %v547_v28   ;;  %v126_v27 = vld [vmem:[#allocation2 + $0x50] sm:$0xff]  ;;  %v127_v28 = vld [vmem:[#allocation2 + $0x58] sm:$0xff] }
  0x59   :  { %4375 = vmatmul.mubr.msk.bf16.vlgmr.msra.gmra.mrb[0].mxu0 %vm6283_vm0, %v694_v26  ;;  %v917_v26 = vpack.c.bf16 %v125_v22, %v124_v21  ;;  %v136_v22 = vld [vmem:[#allocation2 + $0x98] sm:$0xff] }
  0x5b   :  { %615 = vperm.xlu1 %4795, %v550_v29   ;;  %612 = vperm.xlu0 %4794, %v549_v30   ;;  %v918_v29 = vpack.c.bf16 %v127_v28, %v126_v27  ;;  %v128_v30 = vld [vmem:[#allocation2 + $0x60] sm:$0xff]  ;;  %v138_v28 = vld [vmem:[#allocation2 + $0xa8] sm:$0xff] }
  0x5c   :  { %v919_v33 = vpack.c.bf16 %v129_v31, %v128_v30  ;;  %v137_v27 = vld [vmem:[#allocation2 + $0xa0] sm:$0xff] }
  0x5d   :  { %v1346_v31 = vpack.c.bf16 %v138_v28, %v137_v27 }
  0x5f   :  { %4802 = vrot.lane.b32.xlu1 %v4801_v35, %s5075_s27  ;;  %4797 = vrot.lane.b32.xlu0 %v4796_v36, %s5075_s27  ;;  %v131_v35 = vld [vmem:[#allocation2 + $0x78] sm:$0xff]  ;;  %v5352_v36 = vsub.s32 0, %v5349_v32 }
  0x63   :  { %621 = vperm.xlu1 %4795, %v552_v37   ;;  %618 = vperm.xlu0 %4794, %v551_v38   ;;  %v920_v37 = vpack.c.bf16 %v131_v35, %v130_v34  ;;  %v5357_v38 = vld [vmem:[%s6280_s11] sm:$0xff] }
  0x64   :  { %v702_v41 = vrot.slane %v5357_v38, %v5352_v36 }
  0x67   :  { %627 = vperm.xlu1 %4795, %v554_v39   ;;  %624 = vperm.xlu0 %4794, %v553_v40  }
  0x6b   :  { %4812 = vrot.lane.b32.xlu1 %v4811_v43, %s5075_s27  ;;  %4807 = vrot.lane.b32.xlu0 %v4806_v46, %s5075_s27 }
  0xc6   :  { %v581_v49 = vpop.permute.xlu1 %580  ;;  %v575_v50 = vpop.permute.xlu0 %574 }
  0xc7   :  { %vm599_vm1 = vcmp.eq.s32.totalorder %v5300_v48, %v581_v49  ;;  %vm597_vm2 = vcmp.eq.s32.totalorder %v5300_v48, %v575_v50 }
  0xc8   :  { %v4082_v59 = vsel %vm599_vm1, 1.0, %v5076_v58  ;;  %v4080_v60 = vsel %vm597_vm2, 1.0, %v5076_v58 }
  0xca   :  { %v584_v54 = vpop.permute.xlu1 %583  ;;  %v578_v55 = vpop.permute.xlu0 %577 }
  0xcb   :  { %vm600_vm3 = vcmp.eq.s32.totalorder %v5300_v48, %v584_v54  ;;  %vm598_vm4 = vcmp.eq.s32.totalorder %v5300_v48, %v578_v55 }
  0xcc   :  { %v4083_v61 = vsel %vm600_vm3, 1.0, %v5076_v58  ;;  %v4081_v62 = vsel %vm598_vm4, 1.0, %v5076_v58 }
  0xcd   :  { %v5310_v63 = vpack.c.bf16 %v4083_v61, %v4082_v59  ;;  %v5312_v0 = vpack.c.bf16 %v4081_v62, %v4080_v60 }
  0xce   :  { %v590_v1 = vpop.permute.xlu1 %589  ;;  %v587_v2 = vpop.permute.xlu0 %586 }
  0xcf   :  { %vm602_vm6 = vcmp.eq.s32.totalorder %v5300_v48, %v590_v1  ;;  %vm601_vm7 = vcmp.eq.s32.totalorder %v5300_v48, %v587_v2  ;;  %4382 = vmatprep.mubr.msk.bf16.mxu1 %vm791_vm5, %v5312_v0 }
  0xd0   :  { %v4085_v7 = vsel %vm602_vm6, 1.0, %v5076_v58  ;;  %v4084_v8 = vsel %vm601_vm7, 1.0, %v5076_v58  ;;  %4383 = vmatmul.mubr.msk.bf16.vlgmr.msra.gmra.mrb[0].mxu1 %vm791_vm5, %v5310_v63 }
  0xd1   :  { %v5322_v9 = vpack.c.bf16 %v4085_v7, %v4084_v8  ;;  %4391 = vmatpush3.bf16.msra.mxu1 %v913_v53 }
  0xd2   :  { %v596_v10 = vpop.permute.xlu1 %595  ;;  %v593_v11 = vpop.permute.xlu0 %592  ;;  %4392 = vmatprep.subr.bf16.mxu1 %v914_v4 }
  0xd3   :  { %vm604_vm8 = vcmp.eq.s32.totalorder %v5300_v48, %v596_v10  ;;  %vm603_vm9 = vcmp.eq.s32.totalorder %v5300_v48, %v593_v11  ;;  %4386 = vmatprep.mubr.msk.bf16.mxu1 %vm791_vm5, %v5322_v9 }
  0xd4   :  { %v4087_v15 = vsel %vm604_vm8, 1.0, %v5076_v58  ;;  %v4086_v16 = vsel %vm603_vm9, 1.0, %v5076_v58 }
  0xd5   :  { %v5330_v17 = vpack.c.bf16 %v4087_v15, %v4086_v16  ;;  %4393 = vmatpush3.bf16.msra.mxu1 %v914_v4 }
  0xd6   :  { %v610_v18 = vpop.permute.xlu1 %609  ;;  %v607_v19 = vpop.permute.xlu0 %606  ;;  %4394 = vmatprep.subr.bf16.mxu1 %v915_v12 }
  0xd7   :  { %vm630_vm10 = vcmp.eq.s32.totalorder %v5300_v48, %v610_v18  ;;  %vm629_vm11 = vcmp.eq.s32.totalorder %v5300_v48, %v607_v19  ;;  %v133_v18 = vld [vmem:[#allocation2 + $0x80] sm:$0xff]  ;;  %v134_v19 = vld [vmem:[#allocation2 + $0x88] sm:$0xff] }
  0xd8   :  { %v5335_v23 = vsel %vm630_vm10, 1.0, %v5076_v58  ;;  %v5338_v24 = vsel %vm629_vm11, 1.0, %v5076_v58  ;;  %4387 = vmatmul.mubr.msk.bf16.gmra.mrb[4].mxu1 %vm791_vm5, %v5330_v17  ;;  %v1344_v21 = vpack.c.bf16 %v134_v19, %v133_v18 }
  0xd9   :  { %v5344_v25 = vpack.c.bf16 %v5335_v23, %v5338_v24  ;;  %4395 = vmatpush3.bf16.msra.mxu1 %v915_v12 }
  0xda   :  { %4396 = vmatprep.subr.bf16.mxu1 %v916_v20  ;;  %v616_v39 = vpop.permute.xlu1 %615  ;;  %v613_v40 = vpop.permute.xlu0 %612 }
  0xdb   :  { %4418 = vmatprep.mubr.msk.bf16.mxu0 %vm791_vm5, %v5344_v25  ;;  %vm632_vm1 = vcmp.eq.s32.totalorder %v5300_v48, %v616_v39  ;;  %vm631_vm2 = vcmp.eq.s32.totalorder %v5300_v48, %v613_v40  ;;  %v140_v39 = vld [vmem:[#allocation2 + $0xb8] sm:$0xff] }
  0xdc   :  { %v5389_v5 = vsel %vm632_vm1, 1.0, %v5076_v58  ;;  %v5392_v6 = vsel %vm631_vm2, 1.0, %v5076_v58  ;;  %vm686_vm1 = vcmp.gt.f32.partialorder %v5335_v23, 0.5 }
  0xdd   :  { %4397 = vmatpush3.bf16.msra.mxu1 %v916_v20  ;;  %v5403_v12 = vpack.c.bf16 %v5389_v5, %v5392_v6  ;;  %v135_v20 = vld [vmem:[#allocation2 + $0x90] sm:$0xff]  ;;  %vm687_vm2 = vcmp.gt.f32.partialorder %v5392_v6, 0.5 }
  0xde   :  { %4398 = vmatprep.subr.bf16.mxu1 %v917_v26  ;;  %v5361_v45 = vpop.permute.xlu1 %4802  ;;  %v5363_v49 = vpop.permute.xlu0 %4797 }
  0xdf   :  { %v4800_v40 = vunpack.i.h.bf16 %v5363_v49 }
  0xe1   :  { %4399 = vmatpush3.bf16.msra.mxu1 %v917_v26  ;;  %v1345_v26 = vpack.c.bf16 %v136_v22, %v135_v20 }
  0xe2   :  { %4400 = vmatprep.subr.bf16.mxu1 %v918_v29  ;;  %v622_v62 = vpop.permute.xlu1 %621  ;;  %v619_v1 = vpop.permute.xlu0 %618 }
  0xe3   :  { %vm634_vm3 = vcmp.eq.s32.totalorder %v5300_v48, %v622_v62  ;;  %vm633_vm4 = vcmp.eq.s32.totalorder %v5300_v48, %v619_v1 }
  0xe4   :  { %v5395_v7 = vsel %vm634_vm3, 1.0, %v5076_v58  ;;  %v5398_v8 = vsel %vm633_vm4, 1.0, %v5076_v58  ;;  %vm685_vm3 = vcmp.gt.f32.partialorder %v5338_v24, 0.5  ;;  %vm688_vm4 = vcmp.gt.f32.partialorder %v5389_v5, 0.5 }
  0xe5   :  { %4401 = vmatpush3.bf16.msra.mxu1 %v918_v29  ;;  %v5407_v13 = vpack.c.bf16 %v5395_v7, %v5398_v8  ;;  %v4804_v29 = vunpack.i.l.bf16 %v5361_v45 }
  0xe6   :  { %4402 = vmatprep.subr.bf16.mxu1 %v919_v33  ;;  %v628_v10 = vpop.permute.xlu1 %627  ;;  %v625_v11 = vpop.permute.xlu0 %624 }
  0xe7   :  { %vm636_vm6 = vcmp.eq.s32.totalorder %v5300_v48, %v628_v10  ;;  %vm635_vm7 = vcmp.eq.s32.totalorder %v5300_v48, %v625_v11 }
  0xe8   :  { %v5416_v14 = vsel %vm636_vm6, 1.0, %v5076_v58  ;;  %v5419_v15 = vsel %vm635_vm7, 1.0, %v5076_v58  ;;  %vm689_vm6 = vcmp.gt.f32.partialorder %v5398_v8, 0.5  ;;  %vm690_vm7 = vcmp.gt.f32.partialorder %v5395_v7, 0.5 }
  0xe9   :  { %4403 = vmatpush3.bf16.msra.mxu1 %v919_v33  ;;  %v5423_v16 = vpack.c.bf16 %v5416_v14, %v5419_v15  ;;  %v4805_v33 = vunpack.i.h.bf16 %v5361_v45 }
  0xea   :  { %4404 = vmatprep.subr.bf16.mxu1 %v920_v37  ;;  %v4813_v45 = vpop.permute.xlu1 %4812 }
  0xeb   :  { %v4814_v62 = vunpack.i.l.bf16 %v4813_v45 }
  0xed   :  { %4405 = vmatpush3.bf16.msra.mxu1 %v920_v37  ;;  %v139_v37 = vld [vmem:[#allocation2 + $0xb0] sm:$0xff] }
 0x12c   :  { %v4376_v42 = vpop.f32.mrb[0].mxu0 }
 0x12d   :  { %v753_v43 = vadd.f32 %v4376_v42, %v702_v41  ;;  %v744_v44 = vpop.f32.mrb[1].mxu0 }
 0x12e   :  { %v745_v46 = vadd.f32 %v744_v44, %v702_v41  ;;  %v4377_v47 = vpop.f32.mrb[2].mxu0 }
 0x12f   :  { %vm761_vm12 = vcmp.gt.f32.partialorder %v753_v43, 0.0  ;;  %v765_v50 = vmul.f32 0.01, %v753_v43  ;;  %v756_v51 = vadd.f32 %v4377_v47, %v702_v41  ;;  %v747_v52 = vpop.f32.mrb[3].mxu0 }
 0x130   :  { %vm759_vm13 = vcmp.gt.f32.partialorder %v745_v46, 0.0  ;;  %v763_v53 = vmul.f32 0.01, %v745_v46  ;;  %v748_v54 = vadd.f32 %v747_v52, %v702_v41  ;;  %v4799_v41 = vunpack.i.l.bf16 %v5363_v49 }
 0x131   :  { %vm762_vm14 = vcmp.gt.f32.partialorder %v756_v51, 0.0  ;;  %v766_v55 = vmul.f32 0.01, %v756_v51  ;;  %v5365_v56 = vsel %vm761_vm12, %v753_v43, %v765_v50 }
 0x132   :  { %v5367_v57 = vsel %vm759_vm13, %v745_v46, %v763_v53  ;;  %vm760_vm15 = vcmp.gt.f32.partialorder %v748_v54, 0.0  ;;  %v764_v59 = vmul.f32 0.01, %v748_v54  ;;  %v4808_v53 = vpop.permute.xlu0 %4807 }
 0x133   :  { %v5369_v60 = vsel %vm762_vm14, %v756_v51, %v766_v55  ;;  %v1347_v51 = vpack.c.bf16 %v140_v39, %v139_v37  ;;  %v142_v55 = vld [vmem:[#allocation2 + $0xc8] sm:$0xff]  ;;  %v4810_v49 = vunpack.i.h.bf16 %v4808_v53  ;;  %v4809_v1 = vunpack.i.l.bf16 %v4808_v53  ;;  %v147_v39 = vld [vmem:[#allocation2 + $0xf0] sm:$0xff] }
 0x134   :  { %v5371_v61 = vsel %vm760_vm15, %v748_v54, %v764_v59  ;;  %v5375_v2 = vpack.c.bf16 %v5369_v60, %v5365_v56  ;;  %v141_v54 = vld [vmem:[#allocation2 + $0xc0] sm:$0xff]  ;;  %v4815_v59 = vunpack.i.h.bf16 %v4813_v45  ;;  %v5449_v53 = vsub.s32 2, %v5349_v32 }
 0x135   :  { %v5379_v4 = vpack.c.bf16 %v5371_v61, %v5367_v57  ;;  %v1348_v11 = vpack.c.bf16 %v142_v55, %v141_v54  ;;  %v100_v55 = vld [vmem:[%s6280_s11 + $0x8] sm:$0xff] }
 0x137   :  { %4414 = vmatprep.subr.bf16.mxu0 %v5379_v4 }
 0x138   :  { %4415 = vmatpush3.bf16.msra.mxu0 %v5379_v4 }
 0x139   :  { %4416 = vmatprep.subr.bf16.mxu0 %v5375_v2 }
 0x13c   :  { %4417 = vmatpush3.bf16.msra.mxu0 %v5375_v2 }
 0x13d   :  { %4426 = vmatprep.subr.bf16.mxu0 %v1344_v21 }
 0x13f   :  { %4419 = vmatmul.mubr.msk.bf16.vlgmr.msra.gmra.mrb[4].mxu0 %vm791_vm5, %v5403_v12 }
 0x140   :  { %4422 = vmatprep.mubr.msk.bf16.mxu0 %vm791_vm5, %v5407_v13  ;;  %4427 = vmatpush3.bf16.msra.mxu0 %v1344_v21 }
 0x141   :  { %4428 = vmatprep.subr.bf16.mxu0 %v1345_v26 }
 0x144   :  { %4429 = vmatpush3.bf16.msra.mxu0 %v1345_v26 }
 0x145   :  { %4430 = vmatprep.subr.bf16.mxu0 %v1346_v31 }
 0x147   :  { %4423 = vmatmul.mubr.msk.bf16.gmra.mrb[8].mxu0 %vm791_vm5, %v5423_v16 }
 0x148   :  { %4431 = vmatpush3.bf16.msra.mxu0 %v1346_v31  ;;  %v144_v31 = vld [vmem:[#allocation2 + $0xd8] sm:$0xff] }
 0x149   :  { %4432 = vmatprep.subr.bf16.mxu0 %v1347_v51 }
 0x14c   :  { %4433 = vmatpush3.bf16.msra.mxu0 %v1347_v51 }
 0x14d   :  { %4434 = vmatprep.subr.bf16.mxu0 %v1348_v11 }
 0x150   :  { %4435 = vmatpush3.bf16.msra.mxu0 %v1348_v11 }
 0x1a3   :  { %v4384_v30 = vpop.f32.mrb[0].mxu1 }
 0x1a4   :  { %v903_v34 = vsel %vm6283_vm0, %v4384_v30, %v4804_v29  ;;  %v838_v35 = vpop.f32.mrb[1].mxu1  ;;  %v143_v30 = vld [vmem:[#allocation2 + $0xd0] sm:$0xff] }
 0x1a5   :  { %v4385_v42 = vpop.f32.mrb[2].mxu1  ;;  %v901_v46 = vsel %vm6283_vm0, %v838_v35, %v4799_v41  ;;  %v146_v35 = vld [vmem:[#allocation2 + $0xe8] sm:$0xff] }
 0x1a6   :  { %v904_v43 = vsel %vm6283_vm0, %v4385_v42, %v4805_v33  ;;  %v841_v44 = vpop.f32.mrb[3].mxu1  ;;  %v1349_v33 = vpack.c.bf16 %v144_v31, %v143_v30 }
 0x1a7   :  { %v910_v47 = vpack.c.bf16 %v904_v43, %v903_v34  ;;  %v902_v50 = vsel %vm6283_vm0, %v841_v44, %v4800_v40  ;;  %v145_v34 = vld [vmem:[#allocation2 + $0xe0] sm:$0xff]  ;;  %v148_v40 = vld [vmem:[#allocation2 + $0xf8] sm:$0xff] }
 0x1a8   :  { %v909_v52 = vpack.c.bf16 %v902_v50, %v901_v46  ;;  %4436 = vmatprep.subr.bf16.mxu0 %v1349_v33  ;;  %v1350_v37 = vpack.c.bf16 %v146_v35, %v145_v34  ;;  %v1351_v41 = vpack.c.bf16 %v148_v40, %v147_v39 }
 0x1a9   :  { %4437 = vmatpush3.bf16.msra.mxu0 %v1349_v33 }
 0x1aa   :  { %4406 = vmatprep.mubr.bf16.mxu1 %v909_v52  ;;  %4438 = vmatprep.subr.bf16.mxu0 %v1350_v37  ;;  %v5446_v52 = vsub.s32 1, %v5349_v32 }
 0x1ab   :  { %v4388_v10 = vpop.f32.mrb[4].mxu1  ;;  %4407 = vmatmul.mubr.bf16.vlgmr.msra.gmra.mrb[8].mxu1 %v910_v47 }
 0x1ac   :  { %v854_v18 = vpop.f32.mrb[5].mxu1  ;;  %v907_v20 = vsel %vm6283_vm0, %v4388_v10, %v4814_v62  ;;  %v924_v54 = vrot.slane %v5357_v38, %v5446_v52 }
 0x1ad   :  { %v4389_v19 = vpop.f32.mrb[6].mxu1  ;;  %v905_v26 = vsel %vm6283_vm0, %v854_v18, %v4809_v1  ;;  %4439 = vmatpush3.bf16.msra.mxu0 %v1350_v37  ;;  %v5461_v18 = vrot.slane %v100_v55, %v5449_v53 }
 0x1ae   :  { %v908_v21 = vsel %vm6283_vm0, %v4389_v19, %v4815_v59  ;;  %v857_v22 = vpop.f32.mrb[7].mxu1  ;;  %4440 = vmatprep.subr.bf16.mxu0 %v1351_v41  ;;  %v5458_v59 = vrot.slane %v5357_v38, %v5449_v53 }
 0x1af   :  { %v912_v27 = vpack.c.bf16 %v908_v21, %v907_v20  ;;  %v906_v28 = vsel %vm6283_vm0, %v857_v22, %v4810_v49  ;;  %vm692_vm0 = vcmp.gt.f32.partialorder %v5416_v14, 0.5 }
 0x1b0   :  { %v911_v29 = vpack.c.bf16 %v906_v28, %v905_v26 }
 0x1b1   :  { %4441 = vmatpush3.bf16.msra.mxu0 %v1351_v41 }
 0x1b2   :  { %4410 = vmatprep.mubr.bf16.mxu1 %v911_v29 }
 0x1b3   :  { %4411 = vmatmul.mubr.bf16.gmra.mrb[12].mxu1 %v912_v27 }
 0x212   :  { %v4420_v42 = vpop.f32.mrb[4].mxu0 }
 0x213   :  { %v1066_v43 = vpop.f32.mrb[5].mxu0  ;;  %v1103_v22 = vmul.f32 %v4420_v42, %v5458_v59 }
 0x214   :  { %v4421_v44 = vpop.f32.mrb[6].mxu0  ;;  %v1101_v28 = vmul.f32 %v5458_v59, %v1066_v43 }
 0x215   :  { %v1069_v46 = vpop.f32.mrb[7].mxu0  ;;  %v1104_v35 = vmul.f32 %v4421_v44, %v5458_v59 }
 0x216   :  { %v1102_v37 = vmul.f32 %v5458_v59, %v1069_v46 }
 0x21a   :  { %v4424_v47 = vpop.f32.mrb[8].mxu0 }
 0x21b   :  { %v5439_v50 = vpop.f32.mrb[9].mxu0 }
 0x21c   :  { %v5441_v45 = vpop.f32.mrb[10].mxu0 }
 0x21d   :  { %v5443_v51 = vpop.f32.mrb[11].mxu0 }
 0x27e   :  { %v4408_v62 = vpop.f32.mrb[8].mxu1 }
 0x27f   :  { %v968_v49 = vadd.f32 %v4408_v62, %v924_v54  ;;  %v959_v1 = vpop.f32.mrb[9].mxu1 }
 0x280   :  { %v960_v10 = vadd.f32 %v959_v1, %v924_v54  ;;  %v4409_v11 = vpop.f32.mrb[10].mxu1 }
 0x281   :  { %vm992_vm8 = vcmp.gt.f32.partialorder %v968_v49, 0.0  ;;  %v1000_v19 = vmul.f32 0.01, %v968_v49  ;;  %v971_v20 = vadd.f32 %v4409_v11, %v924_v54  ;;  %v962_v21 = vpop.f32.mrb[11].mxu1 }
 0x282   :  { %vm990_vm9 = vcmp.gt.f32.partialorder %v960_v10, 0.0  ;;  %v998_v26 = vmul.f32 0.01, %v960_v10  ;;  %v963_v27 = vadd.f32 %v962_v21, %v924_v54 }
 0x283   :  { %vm993_vm10 = vcmp.gt.f32.partialorder %v971_v20, 0.0  ;;  %v1001_v29 = vmul.f32 0.01, %v971_v20  ;;  %v1008_v30 = vsel %vm992_vm8, %v968_v49, %v1000_v19 }
 0x284   :  { %vm991_vm11 = vcmp.gt.f32.partialorder %v963_v27, 0.0  ;;  %v999_v31 = vmul.f32 0.01, %v963_v27  ;;  %v1115_v33 = vmul.f32 %v5461_v18, %v1008_v30  ;;  %v1006_v34 = vsel %vm990_vm9, %v960_v10, %v998_v26 }
 0x285   :  { %v1009_v39 = vsel %vm993_vm10, %v971_v20, %v1001_v29  ;;  %v1113_v40 = vmul.f32 %v5461_v18, %v1006_v34 }
 0x286   :  { %v4412_v41 = vpop.f32.mrb[12].mxu1  ;;  %v1123_v42 = vadd.f32 %v1115_v33, %v1103_v22  ;;  %v1341_v55 = vpack.c.bf16 %v1009_v39, %v1008_v30  ;;  %v1007_v62 = vsel %vm991_vm11, %v963_v27, %v999_v31  ;;  %v1116_v43 = vmul.f32 %v5461_v18, %v1009_v39 }
 0x287   :  { %v984_v1 = vadd.f32 %v4412_v41, %v924_v54  ;;  %v975_v49 = vpop.f32.mrb[13].mxu1  ;;  %v1340_v11 = vpack.c.bf16 %v1007_v62, %v1006_v34  ;;  %v1114_v19 = vmul.f32 %v5461_v18, %v1007_v62  ;;  %v1121_v21 = vadd.f32 %v1113_v40, %v1101_v28 }
 0x288   :  { %v976_v10 = vadd.f32 %v975_v49, %v924_v54  ;;  %v4413_v26 = vpop.f32.mrb[14].mxu1  ;;  %1133 = vadd.xlane.f32.xlu0 %v1123_v42  ;;  %v1124_v44 = vadd.f32 %v1116_v43, %v1104_v35  ;;  %v1107_v31 = vmul.f32 %v4424_v47, %v5458_v59  ;;  %v1105_v40 = vmul.f32 %v5458_v59, %v5439_v50 }
 0x289   :  { %vm996_vm12 = vcmp.gt.f32.partialorder %v984_v1, 0.0  ;;  %v1004_v46 = vmul.f32 0.01, %v984_v1  ;;  %v987_v20 = vadd.f32 %v4413_v26, %v924_v54  ;;  %v978_v29 = vpop.f32.mrb[15].mxu1  ;;  %4442 = vmatprep.mubr.bf16.mxu0 %v1340_v11  ;;  %v1122_v22 = vadd.f32 %v1114_v19, %v1102_v37 }
 0x28a   :  { %vm994_vm13 = vcmp.gt.f32.partialorder %v976_v10, 0.0  ;;  %v1002_v27 = vmul.f32 0.01, %v976_v10  ;;  %v979_v30 = vadd.f32 %v978_v29, %v924_v54  ;;  %4443 = vmatmul.mubr.bf16.vlgmr.msra.gmra.mrb[12].mxu0 %v1341_v55  ;;  %v1108_v37 = vmul.f32 %v5441_v45, %v5458_v59 }
 0x28b   :  { %vm997_vm14 = vcmp.gt.f32.partialorder %v987_v20, 0.0  ;;  %v1005_v33 = vmul.f32 0.01, %v987_v20  ;;  %1131 = vadd.xlane.f32.xlu1 %v1122_v22  ;;  %v1012_v28 = vsel %vm996_vm12, %v984_v1, %v1004_v46  ;;  %v1106_v43 = vmul.f32 %v5458_v59, %v5443_v51 }
 0x28c   :  { %vm995_vm15 = vcmp.gt.f32.partialorder %v979_v30, 0.0  ;;  %v1003_v34 = vmul.f32 0.01, %v979_v30  ;;  %1129 = vadd.xlane.f32.xlu0 %v1121_v21  ;;  %v1010_v35 = vsel %vm994_vm13, %v976_v10, %v1002_v27  ;;  %v1119_v39 = vmul.f32 %v5461_v18, %v1012_v28 }
 0x28d   :  { %v1117_v54 = vmul.f32 %v5461_v18, %v1010_v35  ;;  %v1013_v41 = vsel %vm997_vm14, %v987_v20, %v1005_v33  ;;  %v1145_v51 = vstv %s511_s20  ;;  %vm691_vm13 = vcmp.gt.f32.partialorder %v5419_v15, 0.5 }
 0x28e   :  { %v1011_v47 = vsel %vm995_vm15, %v979_v30, %v1003_v34  ;;  %v1343_v42 = vpack.c.bf16 %v1013_v41, %v1012_v28  ;;  %v1127_v55 = vadd.f32 %v1119_v39, %v1107_v31  ;;  %v1120_v62 = vmul.f32 %v5461_v18, %v1013_v41 }
 0x28f   :  { %v1342_v1 = vpack.c.bf16 %v1011_v47, %v1010_v35  ;;  %v1125_v49 = vadd.f32 %v1117_v54, %v1105_v40  ;;  %v1118_v11 = vmul.f32 %v5461_v18, %v1011_v47 }
 0x290   :  { %1135 = vadd.xlane.f32.xlu0 %v1124_v44  ;;  %v1128_v50 = vadd.f32 %v1120_v62, %v1108_v37 }
 0x291   :  { %4446 = vmatprep.mubr.bf16.mxu0 %v1342_v1  ;;  %1137 = vadd.xlane.f32.xlu1 %v1125_v49  ;;  %v1126_v45 = vadd.f32 %v1118_v11, %v1106_v43 }
 0x292   :  { %4447 = vmatmul.mubr.bf16.gmra.mrb[16].mxu0 %v1343_v42 }
 0x293   :  { %1584 = vmatprep.mubr.bf16.mxu0 %v5074_v3 }
 0x294   :  { %1139 = vadd.xlane.f32.xlu0 %v1126_v45 }
 0x295   :  { %1141 = vadd.xlane.f32.xlu1 %v1127_v55 }
 0x298   :  { %1143 = vadd.xlane.f32.xlu0 %v1128_v50 }
 0x315   :  { %v1134_v19 = vpop.xlane.xlu0 %1133 }
 0x316   :  { %v1148_v26 = vadd.f32 %v1145_v51, %v1134_v19 }
 0x318   :  { %v1132_v21 = vpop.xlane.xlu1 %1131  ;;  %v1164_v27 = vmul.f32 0.01, %v1148_v26  ;;  %vm1156_vm10 = vcmp.gt.f32.partialorder %v1148_v26, 0.0 }
 0x319   :  { %v1130_v10 = vpop.xlane.xlu0 %1129  ;;  %v1147_v59 = vadd.f32 %v1145_v51, %v1132_v21 }
 0x31a   :  { %v1146_v18 = vadd.f32 %v1145_v51, %v1130_v10  ;;  %v5494_v41 = vsel %vm1156_vm10, %v1148_v26, %v1164_v27 }
 0x31b   :  { %v1163_v22 = vmul.f32 0.01, %v1147_v59  ;;  %vm1155_vm8 = vcmp.gt.f32.partialorder %v1147_v59, 0.0 }
 0x31c   :  { %v1162_v33 = vmul.f32 0.01, %v1146_v18  ;;  %vm1154_vm11 = vcmp.gt.f32.partialorder %v1146_v18, 0.0 }
 0x31d   :  { %v1136_v46 = vpop.xlane.xlu0 %1135  ;;  %v5490_v40 = vsel %vm1155_vm8, %v1147_v59, %v1163_v22 }
 0x31e   :  { %v1149_v44 = vadd.f32 %v1145_v51, %v1136_v46  ;;  %v1138_v20 = vpop.xlane.xlu1 %1137  ;;  %v5497_v55 = vsel %vm1154_vm11, %v1146_v18, %v1162_v33  ;;  %v1179_v49 = vsel %vm686_vm1, %v5490_v40, -1e+30 }
 0x31f   :  { %v1150_v29 = vadd.f32 %v1145_v51, %v1138_v20  ;;  %v1178_v59 = vsel %vm685_vm3, %v5497_v55, -1e+30  ;;  %v1187_v46 = vsel %vm791_vm5, %v1179_v49, -inf }
 0x320   :  { %v1165_v28 = vmul.f32 0.01, %v1149_v44  ;;  %vm1157_vm12 = vcmp.gt.f32.partialorder %v1149_v44, 0.0 }
 0x321   :  { %vm1158_vm9 = vcmp.gt.f32.partialorder %v1150_v29, 0.0  ;;  %v1166_v30 = vmul.f32 0.01, %v1150_v29  ;;  %v1140_v31 = vpop.xlane.xlu0 %1139 }
 0x322   :  { %v1151_v34 = vadd.f32 %v1145_v51, %v1140_v31  ;;  %v1142_v35 = vpop.xlane.xlu1 %1141  ;;  %v5499_v62 = vsel %vm1157_vm12, %v1149_v44, %v1165_v28 }
 0x323   :  { %v1152_v39 = vadd.f32 %v1145_v51, %v1142_v35  ;;  %v5492_v37 = vsel %vm1158_vm9, %v1150_v29, %v1166_v30  ;;  %v1181_v26 = vsel %vm688_vm4, %v5499_v62, -1e+30  ;;  %v1186_v30 = vsel %vm791_vm5, %v1178_v59, -inf }
 0x324   :  { %vm1159_vm14 = vcmp.gt.f32.partialorder %v1151_v34, 0.0  ;;  %v1167_v54 = vmul.f32 0.01, %v1151_v34  ;;  %v1182_v11 = vsel %vm689_vm6, %v5492_v37, -1e+30  ;;  %v1189_v31 = vsel %vm791_vm5, %v1181_v26, -inf }
 0x325   :  { %vm1160_vm15 = vcmp.gt.f32.partialorder %v1152_v39, 0.0  ;;  %v1168_v47 = vmul.f32 0.01, %v1152_v39  ;;  %v1144_v42 = vpop.xlane.xlu0 %1143  ;;  %v1190_v18 = vsel %vm791_vm5, %v1182_v11, -inf  ;;  %vm6284_vm9 = vcmask 523264  }
 0x326   :  { %v5501_v43 = vsel %vm1159_vm14, %v1151_v34, %v1167_v54  ;;  %v1153_v1 = vadd.f32 %v1145_v51, %v1144_v42  ;;  %v1180_v51 = vsel %vm687_vm2, %v5494_v41, -1e+30  ;;  %v1191_v28 = vmax.f32 %v1186_v30, %v1190_v18  ;;  %vm6285_vm10 = vmmov %vm6284_vm9 }
 0x327   :  { %v1183_v50 = vsel %vm690_vm7, %v5501_v43, -1e+30  ;;  %v5512_v45 = vsel %vm1160_vm15, %v1152_v39, %v1168_v47  ;;  %v1188_v27 = vsel %vm791_vm5, %v1180_v51, -inf }
 0x328   :  { %v1192_v19 = vsel %vm791_vm5, %v1183_v50, -inf  ;;  %v1184_v21 = vsel %vm691_vm13, %v5512_v45, -1e+30  ;;  %vm1161_vm8 = vcmp.gt.f32.partialorder %v1153_v1, 0.0  ;;  %v1169_v10 = vmul.f32 0.01, %v1153_v1 }
 0x329   :  { %v1194_v44 = vsel %vm791_vm5, %v1184_v21, -inf  ;;  %v1193_v29 = vmax.f32 %v1187_v46, %v1192_v19 }
 0x32a   :  { %v5530_v20 = vsel %vm1161_vm8, %v1153_v1, %v1169_v10  ;;  %v1195_v34 = vmax.f32 %v1188_v27, %v1194_v44  ;;  %vm6286_vm8 = vmmov %vm6284_vm9 }
 0x32b   :  { %v1185_v22 = vsel %vm692_vm0, %v5530_v20, -1e+30  ;;  %v1198_v39 = vmax.f32 %v1191_v28, %v1193_v29 }
 0x32c   :  { %v1196_v33 = vsel %vm791_vm5, %v1185_v22, -inf }
 0x32d   :  { %v1197_v35 = vmax.f32 %v1189_v31, %v1196_v33 }
 0x32f   :  { %v1199_v54 = vmax.f32 %v1195_v34, %v1197_v35 }
 0x331   :  { %v1200_v47 = vmax.f32 %v1198_v39, %v1199_v54 }
 0x333   :  { %v1201_v42 = vrot.slane %v1200_v47, 4 }
 0x335   :  { %v1202_v1 = vmax.f32 %v1200_v47, %v1201_v42 }
 0x337   :  { %v1203_v49 = vrot.slane %v1202_v1, 2 }
 0x339   :  { %v1204_v11 = vmax.f32 %v1202_v1, %v1203_v49 }
 0x33b   :  { %v1205_v50 = vrot.slane %v1204_v11, 1 }
 0x33d   :  { %v1206_v19 = vmax.f32 %v1204_v11, %v1205_v50 }
 0x33f   :  { %v1208_v21 = vmul.f32 %v5335_v23, %v1206_v19  ;;  %v1207_v10 = vmul.f32 %v5338_v24, %v1206_v19  ;;  %v1210_v26 = vmul.f32 %v5389_v5, %v1206_v19  ;;  %v1209_v46 = vmul.f32 %v5392_v6, %v1206_v19 }
 0x340   :  { %v1212_v29 = vmul.f32 %v5395_v7, %v1206_v19  ;;  %v1211_v22 = vmul.f32 %v5398_v8, %v1206_v19  ;;  %v1214_v31 = vmul.f32 %v5416_v14, %v1206_v19  ;;  %v1213_v33 = vmul.f32 %v5419_v15, %v1206_v19 }
 0x341   :  { %v1218_v51 = vsel %vm791_vm5, %v1208_v21, 0.0  ;;  %v1215_v59 = vsel %vm791_vm5, %v1207_v10, 0.0  ;;  %v1224_v18 = vsel %vm791_vm5, %v1210_v26, 0.0  ;;  %v1221_v44 = vsel %vm791_vm5, %v1209_v46, 0.0 }
 0x342   :  { %1219 = vadd.xlane.f32.xlu0 %v1218_v51  ;;  %1216 = vadd.xlane.f32.xlu1 %v1215_v59  ;;  %v1230_v27 = vsel %vm791_vm5, %v1212_v29, 0.0  ;;  %v1227_v30 = vsel %vm791_vm5, %v1211_v22, 0.0  ;;  %v1236_v28 = vsel %vm791_vm5, %v1214_v31, 0.0  ;;  %v1233_v34 = vsel %vm791_vm5, %v1213_v33, 0.0 }
 0x346   :  { %1225 = vadd.xlane.f32.xlu0 %v1224_v18  ;;  %1222 = vadd.xlane.f32.xlu1 %v1221_v44 }
 0x34a   :  { %1231 = vadd.xlane.f32.xlu0 %v1230_v27  ;;  %1228 = vadd.xlane.f32.xlu1 %v1227_v30 }
 0x34e   :  { %1237 = vadd.xlane.f32.xlu0 %v1236_v28  ;;  %1234 = vadd.xlane.f32.xlu1 %v1233_v34 }
 0x35d   :  { %v5555_v35 = vpop.f32.mrb[12].mxu0 }
 0x35e   :  { %v5557_v39 = vpop.f32.mrb[13].mxu0 }
 0x35f   :  { %v5559_v54 = vpop.f32.mrb[14].mxu0 }
 0x360   :  { %v5561_v47 = vpop.f32.mrb[15].mxu0 }
 0x365   :  { %v5563_v42 = vpop.f32.mrb[16].mxu0 }
 0x366   :  { %v5565_v1 = vpop.f32.mrb[17].mxu0 }
 0x367   :  { %v5567_v49 = vpop.f32.mrb[18].mxu0 }
 0x368   :  { %v5569_v11 = vpop.f32.mrb[19].mxu0 }
 0x3cf   :  { %v1220_v50 = vpop.xlane.xlu0 %1219  ;;  %v1217_v19 = vpop.xlane.xlu1 %1216 }
 0x3d0   :  { %v1240_v21 = vsub.f32 %v5490_v40, %v1220_v50  ;;  %v1239_v10 = vsub.f32 %v5497_v55, %v1217_v19 }
 0x3d2   :  { %v1249_v51 = vmul.f32 1.442695, %v1240_v21  ;;  %v1247_v59 = vmul.f32 1.442695, %v1239_v10 }
 0x3d3   :  { %v1226_v26 = vpop.xlane.xlu0 %1225  ;;  %v1223_v46 = vpop.xlane.xlu1 %1222 }
 0x3d4   :  { %4816 = vpow2.f32 %v1249_v51  ;;  %v1242_v18 = vsub.f32 %v5499_v62, %v1226_v26  ;;  %v1241_v44 = vsub.f32 %v5494_v41, %v1223_v46 }
 0x3d5   :  { %4818 = vpow2.f32 %v1247_v59 }
 0x3d6   :  { %v1253_v29 = vmul.f32 1.442695, %v1242_v18  ;;  %v1251_v22 = vmul.f32 1.442695, %v1241_v44 }
 0x3d7   :  { %v1232_v27 = vpop.xlane.xlu0 %1231  ;;  %v1229_v30 = vpop.xlane.xlu1 %1228 }
 0x3d8   :  { %4820 = vpow2.f32 %v1253_v29  ;;  %v1244_v31 = vsub.f32 %v5501_v43, %v1232_v27  ;;  %v1243_v40 = vsub.f32 %v5492_v37, %v1229_v30 }
 0x3d9   :  { %4822 = vpow2.f32 %v1251_v22 }
 0x3da   :  { %v1257_v55 = vmul.f32 1.442695, %v1244_v31  ;;  %v1255_v33 = vmul.f32 1.442695, %v1243_v40 }
 0x3db   :  { %v1238_v28 = vpop.xlane.xlu0 %1237  ;;  %v1235_v34 = vpop.xlane.xlu1 %1234 }
 0x3dc   :  { %4824 = vpow2.f32 %v1257_v55  ;;  %v1246_v62 = vsub.f32 %v5530_v20, %v1238_v28  ;;  %v1245_v41 = vsub.f32 %v5512_v45, %v1235_v34 }
 0x3dd   :  { %4826 = vpow2.f32 %v1255_v33 }
 0x3de   :  { %v5579_v50 = vpop.eup %4816  ;;  %v1261_v19 = vmul.f32 1.442695, %v1246_v62  ;;  %v1259_v21 = vmul.f32 1.442695, %v1245_v41 }
 0x3df   :  { %v5581_v10 = vpop.eup %4818  ;;  %v1264_v37 = vmul.f32 %v5579_v50, %v5335_v23 }
 0x3e0   :  { %v1263_v43 = vmul.f32 %v5581_v10, %v5338_v24  ;;  %4828 = vpow2.f32 %v1261_v19 }
 0x3e1   :  { %4830 = vpow2.f32 %v1259_v21  ;;  %v1272_v20 = vsel %vm791_vm5, %v1264_v37, 0.0 }
 0x3e2   :  { %v5587_v51 = vpop.eup %4820  ;;  %v1271_v45 = vsel %vm791_vm5, %v1263_v43, 0.0 }
 0x3e3   :  { %v5591_v59 = vpop.eup %4822  ;;  %v1266_v26 = vmul.f32 %v5587_v51, %v5389_v5  ;;  %v1273_v18 = vadd.f32 %v1272_v20, %v1271_v45 }
 0x3e4   :  { %v1265_v46 = vmul.f32 %v5591_v59, %v5392_v6 }
 0x3e5   :  { %v1276_v30 = vsel %vm791_vm5, %v1266_v26, 0.0 }
 0x3e6   :  { %v5597_v44 = vpop.eup %4824  ;;  %v1274_v29 = vsel %vm791_vm5, %v1265_v46, 0.0 }
 0x3e7   :  { %v5600_v22 = vpop.eup %4826  ;;  %v1275_v27 = vadd.f32 %v1274_v29, %v1273_v18  ;;  %v1268_v31 = vmul.f32 %v5597_v44, %v5395_v7 }
 0x3e8   :  { %v1267_v40 = vmul.f32 %v5600_v22, %v5398_v8 }
 0x3e9   :  { %v1277_v55 = vadd.f32 %v1276_v30, %v1275_v27  ;;  %v1280_v41 = vsel %vm791_vm5, %v1268_v31, 0.0 }
 0x3ea   :  { %v5607_v33 = vpop.eup %4828  ;;  %v1278_v28 = vsel %vm791_vm5, %v1267_v40, 0.0 }
 0x3eb   :  { %v5610_v34 = vpop.eup %4830  ;;  %v1279_v62 = vadd.f32 %v1278_v28, %v1277_v55  ;;  %v1270_v19 = vmul.f32 %v5607_v33, %v5416_v14 }
 0x3ec   :  { %v1269_v21 = vmul.f32 %v5610_v34, %v5419_v15 }
 0x3ed   :  { %v1281_v37 = vadd.f32 %v1280_v41, %v1279_v62  ;;  %v1284_v45 = vsel %vm791_vm5, %v1270_v19, 0.0 }
 0x3ee   :  { %v1282_v43 = vsel %vm791_vm5, %v1269_v21, 0.0 }
 0x3ef   :  { %v1283_v20 = vadd.f32 %v1282_v43, %v1281_v37 }
 0x3f1   :  { %v1285_v26 = vadd.f32 %v1284_v45, %v1283_v20 }
 0x3f3   :  { %v1286_v46 = vrot.slane %v1285_v26, 4 }
 0x3f5   :  { %v1287_v18 = vadd.f32 %v1286_v46, %v1285_v26 }
 0x3f7   :  { %v1288_v29 = vrot.slane %v1287_v18, 2 }
 0x3f9   :  { %v1289_v27 = vadd.f32 %v1288_v29, %v1287_v18 }
 0x3fb   :  { %v1290_v30 = vrot.slane %v1289_v27, 1 }
 0x3fd   :  { %v1291_v40 = vadd.f32 %v1290_v30, %v1289_v27  ;;  %v252_v30 = vld [vmem:[#allocation5 + $0x8] sm:$0xff] }
 0x3ff   :  { %v1293_v31 = vmul.f32 %v5335_v23, %v1291_v40  ;;  %v1292_v55 = vmul.f32 %v5338_v24, %v1291_v40  ;;  %v1295_v41 = vmul.f32 %v5389_v5, %v1291_v40  ;;  %v1294_v21 = vmul.f32 %v5392_v6, %v1291_v40 }
 0x400   :  { %v1297_v43 = vmul.f32 %v5395_v7, %v1291_v40  ;;  %v1296_v20 = vmul.f32 %v5398_v8, %v1291_v40  ;;  %v1299_v46 = vmul.f32 %v5416_v14, %v1291_v40  ;;  %v1298_v18 = vmul.f32 %v5419_v15, %v1291_v40 }
 0x401   :  { %v1303_v28 = vsel %vm791_vm5, %v1293_v31, 0.0  ;;  %v1300_v62 = vsel %vm791_vm5, %v1292_v55, 0.0  ;;  %v1309_v19 = vsel %vm791_vm5, %v1295_v41, 0.0  ;;  %v1306_v37 = vsel %vm791_vm5, %v1294_v21, 0.0  ;;  %v255_v31 = vld [vmem:[#allocation5 + $0x20] sm:$0xff]  ;;  %v258_v41 = vld [vmem:[#allocation5 + $0x38] sm:$0xff] }
 0x402   :  { %1304 = vadd.xlane.f32.xlu0 %v1303_v28  ;;  %1301 = vadd.xlane.f32.xlu1 %v1300_v62  ;;  %v1315_v45 = vsel %vm791_vm5, %v1297_v43, 0.0  ;;  %v1312_v26 = vsel %vm791_vm5, %v1296_v20, 0.0  ;;  %v1321_v29 = vsel %vm791_vm5, %v1299_v46, 0.0  ;;  %v1318_v27 = vsel %vm791_vm5, %v1298_v18, 0.0  ;;  %v251_v55 = vld [vmem:[#allocation5] sm:$0xff]  ;;  %v254_v28 = vld [vmem:[#allocation5 + $0x18] sm:$0xff] }
 0x403   :  { %v1517_v40 = vpack.c.bf16 %v255_v31, %v252_v30  ;;  %v1516_v62 = vpack.c.bf16 %v254_v28, %v251_v55  ;;  %v261_v21 = vld [vmem:[#allocation5 + $0x50] sm:$0xff]  ;;  %v260_v43 = vld [vmem:[#allocation5 + $0x48] sm:$0xff]  ;;  %v5644_v31 = vsub.s32 3, %v5349_v32 }
 0x405   :  { %1552 = vmatprep.subr.bf16.mxu0 %v1517_v40  ;;  %v1355_v28 = vrot.slane %v5357_v38, %v5644_v31 }
 0x406   :  { %1310 = vadd.xlane.f32.xlu0 %v1309_v19  ;;  %1307 = vadd.xlane.f32.xlu1 %v1306_v37  ;;  %v257_v19 = vld [vmem:[#allocation5 + $0x30] sm:$0xff]  ;;  %v1520_v37 = vpack.c.bf16 %v261_v21, %v258_v41 }
 0x407   :  { %1553 = vmatpush1.bf16.msra.mxu0 %v1516_v62  ;;  %v1519_v20 = vpack.c.bf16 %v260_v43, %v257_v19  ;;  %v1394_v21 = vadd.f32 %v5561_v47, %v1355_v28  ;;  %v1399_v47 = vadd.f32 %v5555_v35, %v1355_v28 }
 0x408   :  { %1554 = vmatprep.subr.bf16.mxu0 %v1520_v37 }
 0x40a   :  { %1316 = vadd.xlane.f32.xlu0 %v1315_v45  ;;  %1313 = vadd.xlane.f32.xlu1 %v1312_v26  ;;  %v264_v45 = vld [vmem:[#allocation5 + $0x68] sm:$0xff]  ;;  %v267_v26 = vld [vmem:[#allocation5 + $0x80] sm:$0xff] }
 0x40b   :  { %v1523_v46 = vpack.c.bf16 %v267_v26, %v264_v45  ;;  %1555 = vmatpush1.bf16.msra.mxu0 %v1519_v20  ;;  %v1391_v20 = vadd.f32 %v5557_v39, %v1355_v28 }
 0x40d   :  { %1556 = vmatprep.subr.bf16.mxu0 %v1523_v46 }
 0x40e   :  { %1322 = vadd.xlane.f32.xlu0 %v1321_v29  ;;  %1319 = vadd.xlane.f32.xlu1 %v1318_v27 }
 0x441   :  { %653 = vxpose.xlu1.b32.start [1/8] (short) (narrow) %v5338_v24, 32 }
 0x445   :  { %654 = vxpose.xlu1.b32.cont [2/8] (short) (narrow) %v5335_v23, 32 }
 0x449   :  { %655 = vxpose.xlu1.b32.cont [3/8] (short) (narrow) %v5392_v6, 32 }
 0x44d   :  { %656 = vxpose.xlu1.b32.cont [4/8] (short) (narrow) %v5389_v5, 32 }
 0x451   :  { %657 = vxpose.xlu1.b32.cont [5/8] (short) (narrow) %v5398_v8, 32 }
 0x455   :  { %658 = vxpose.xlu1.b32.cont [6/8] (short) (narrow) %v5395_v7, 32 }
 0x459   :  { %659 = vxpose.xlu1.b32.cont [7/8] (short) (narrow) %v5419_v15, 32 }
 0x45d   :  { %660 = vxpose.xlu1.b32.end [8/8] (short) (narrow) %v5416_v14, 32 }
 0x48f   :  { %v1305_v18 = vpop.xlane.xlu0 %1304  ;;  %v1302_v29 = vpop.xlane.xlu1 %1301 }
 0x490   :  { %4832 = vrcp.f32 %v1305_v18 }
 0x491   :  { %4834 = vrcp.f32 %v1302_v29  ;;  %v1402_v29 = vadd.f32 %v5559_v54, %v1355_v28 }
 0x493   :  { %v1311_v27 = vpop.xlane.xlu0 %1310  ;;  %v1308_v30 = vpop.xlane.xlu1 %1307 }
 0x494   :  { %4836 = vrcp.f32 %v1311_v27 }
 0x495   :  { %4838 = vrcp.f32 %v1308_v30 }
 0x497   :  { %v1317_v55 = vpop.xlane.xlu0 %1316  ;;  %v1314_v40 = vpop.xlane.xlu1 %1313 }
 0x498   :  { %4840 = vrcp.f32 %v1317_v55 }
 0x499   :  { %4842 = vrcp.f32 %v1314_v40 }
 0x49a   :  { %v4833_v62 = vpop.eup %4832 }
 0x49b   :  { %v4835_v41 = vpop.eup %4834  ;;  %v1323_v19 = vpop.xlane.xlu0 %1322  ;;  %v1333_v43 = vmul.f32 %v4833_v62, %v5579_v50 }
 0x49c   :  { %v1320_v37 = vpop.xlane.xlu1 %1319  ;;  %4844 = vrcp.f32 %v1323_v19  ;;  %v1332_v45 = vmul.f32 %v4835_v41, %v5581_v10  ;;  %v1410_v10 = vadd.f32 %v5569_v11, %v1355_v28  ;;  %v1415_v11 = vadd.f32 %v5563_v42, %v1355_v28 }
 0x49d   :  { %4846 = vrcp.f32 %v1320_v37  ;;  %v1422_v26 = vmul.f32 %v1394_v21, %v1333_v43  ;;  %v1407_v21 = vadd.f32 %v5565_v1, %v1355_v28  ;;  %v1418_v43 = vadd.f32 %v5567_v49, %v1355_v28  ;;  %v253_v1 = vld [vmem:[#allocation5 + $0x10] sm:$0xff] }
 0x49e   :  { %v4837_v46 = vpop.eup %4836  ;;  %v1421_v18 = vmul.f32 %v1391_v20, %v1332_v45 }
 0x49f   :  { %v4839_v38 = vpop.eup %4838  ;;  %v1335_v27 = vmul.f32 %v4837_v46, %v5587_v51  ;;  %v256_v46 = vld [vmem:[#allocation5 + $0x28] sm:$0xff] }
 0x4a0   :  { %v1431_v30 = vpack.c.bf16 %v1422_v26, %v1421_v18  ;;  %v1334_v55 = vmul.f32 %v4839_v38, %v5591_v59  ;;  %v1518_v38 = vpack.c.bf16 %v256_v46, %v253_v1  ;;  %v277_v1 = vld [vmem:[#allocation5 + $0xd0] sm:$0xff] }
 0x4a1   :  { %v1424_v50 = vmul.f32 %v1402_v29, %v1335_v27 }
 0x4a2   :  { %v4841_v40 = vpop.eup %4840  ;;  %4450 = vmatprep.subr.bf16.mxu1 %v1431_v30  ;;  %v1423_v39 = vmul.f32 %v1399_v47, %v1334_v55  ;;  %v263_v55 = vld [vmem:[#allocation5 + $0x60] sm:$0xff] }
 0x4a3   :  { %v4843_v62 = vpop.eup %4842  ;;  %4451 = vmatpush3.bf16.msra.mxu1 %v1431_v30  ;;  %v1337_v41 = vmul.f32 %v4841_v40, %v5597_v44  ;;  %v265_v40 = vld [vmem:[#allocation5 + $0x70] sm:$0xff] }
 0x4a4   :  { %v1432_v54 = vpack.c.bf16 %v1424_v50, %v1423_v39  ;;  %v1336_v51 = vmul.f32 %v4843_v62, %v5600_v22  ;;  %v266_v50 = vld [vmem:[#allocation5 + $0x78] sm:$0xff]  ;;  %v268_v62 = vld [vmem:[#allocation5 + $0x88] sm:$0xff] }
 0x4a5   :  { %v1426_v19 = vmul.f32 %v1410_v10, %v1337_v41  ;;  %v1522_v39 = vpack.c.bf16 %v266_v50, %v263_v55  ;;  %v1524_v10 = vpack.c.bf16 %v268_v62, %v265_v40  ;;  %v270_v41 = vld [vmem:[#allocation5 + $0x98] sm:$0xff]  ;;  %v288_v50 = vld [vmem:[#allocation5 + $0x128] sm:$0xff]  ;;  %v291_v40 = vld [vmem:[#allocation5 + $0x140] sm:$0xff] }
 0x4a6   :  { %v4845_v35 = vpop.eup %4844  ;;  %4452 = vmatprep.subr.bf16.mxu1 %v1432_v54  ;;  %v1425_v37 = vmul.f32 %v1407_v21, %v1336_v51  ;;  %v273_v21 = vld [vmem:[#allocation5 + $0xb0] sm:$0xff]  ;;  %v287_v62 = vld [vmem:[#allocation5 + $0x120] sm:$0xff] }
 0x4a7   :  { %v4847_v59 = vpop.eup %4846  ;;  %4453 = vmatpush3.bf16.msra.mxu1 %v1432_v54  ;;  %v1339_v20 = vmul.f32 %v4845_v35, %v5607_v33  ;;  %v259_v33 = vld [vmem:[#allocation5 + $0x40] sm:$0xff]  ;;  %1557 = vmatpush1.bf16.msra.mxu0 %v1522_v39  ;;  %v1526_v54 = vpack.c.bf16 %v273_v21, %v270_v41  ;;  %v269_v51 = vld [vmem:[#allocation5 + $0x90] sm:$0xff]  ;;  %v1535_v39 = vpack.c.bf16 %v291_v40, %v288_v50 }
 0x4a8   :  { %v1433_v45 = vpack.c.bf16 %v1426_v19, %v1425_v37  ;;  %v1338_v44 = vmul.f32 %v4847_v59, %v5610_v34  ;;  %v262_v34 = vld [vmem:[#allocation5 + $0x58] sm:$0xff]  ;;  %v272_v19 = vld [vmem:[#allocation5 + $0xa8] sm:$0xff]  ;;  %v271_v35 = vld [vmem:[#allocation5 + $0xa0] sm:$0xff] }
 0x4a9   :  { %v1428_v26 = vmul.f32 %v1418_v43, %v1339_v20  ;;  %v1521_v30 = vpack.c.bf16 %v262_v34, %v259_v33  ;;  %v1525_v37 = vpack.c.bf16 %v272_v19, %v269_v51  ;;  %v274_v59 = vld [vmem:[#allocation5 + $0xb8] sm:$0xff]  ;;  %1558 = vmatprep.subr.bf16.mxu0 %v1526_v54  ;;  %v276_v20 = vld [vmem:[#allocation5 + $0xc8] sm:$0xff]  ;;  %v283_v34 = vld [vmem:[#allocation5 + $0x100] sm:$0xff] }
 0x4aa   :  { %4454 = vmatprep.subr.bf16.mxu1 %v1433_v45  ;;  %v1427_v22 = vmul.f32 %v1415_v11, %v1338_v44  ;;  %v1527_v43 = vpack.c.bf16 %v274_v59, %v271_v35  ;;  %v279_v11 = vld [vmem:[#allocation5 + $0xe0] sm:$0xff]  ;;  %v284_v33 = vld [vmem:[#allocation5 + $0x108] sm:$0xff]  ;;  %v289_v41 = vld [vmem:[#allocation5 + $0x130] sm:$0xff] }
 0x4ab   :  { %4455 = vmatpush3.bf16.msra.mxu1 %v1433_v45  ;;  %1559 = vmatpush1.bf16.msra.mxu0 %v1525_v37  ;;  %v1529_v45 = vpack.c.bf16 %v279_v11, %v276_v20  ;;  %v275_v44 = vld [vmem:[#allocation5 + $0xc0] sm:$0xff]  ;;  %v292_v54 = vld [vmem:[#allocation5 + $0x148] sm:$0xff]  ;;  %v294_v19 = vld [vmem:[#allocation5 + $0x158] sm:$0xff] }
 0x4ac   :  { %v1434_v18 = vpack.c.bf16 %v1428_v26, %v1427_v22  ;;  %v278_v26 = vld [vmem:[#allocation5 + $0xd8] sm:$0xff]  ;;  %v280_v22 = vld [vmem:[#allocation5 + $0xe8] sm:$0xff]  ;;  %v1536_v51 = vpack.c.bf16 %v292_v54, %v289_v41  ;;  %v297_v35 = vld [vmem:[#allocation5 + $0x170] sm:$0xff] }
 0x4ad   :  { %v1528_v46 = vpack.c.bf16 %v278_v26, %v275_v44  ;;  %1560 = vmatprep.subr.bf16.mxu0 %v1529_v45  ;;  %v1538_v37 = vpack.c.bf16 %v297_v35, %v294_v19  ;;  %v293_v59 = vld [vmem:[#allocation5 + $0x150] sm:$0xff]  ;;  %v295_v20 = vld [vmem:[#allocation5 + $0x160] sm:$0xff]  ;;  %v298_v45 = vld [vmem:[#allocation5 + $0x178] sm:$0xff] }
 0x4ae   :  { %4456 = vmatprep.subr.bf16.mxu1 %v1434_v18  ;;  %v1539_v44 = vpack.c.bf16 %v298_v45, %v295_v20  ;;  %v301_v26 = vld [vmem:[#allocation5 + $0x188] sm:$0xff]  ;;  %v307_v20 = vld [vmem:[#allocation5 + $0x1b8] sm:$0xff] }
 0x4af   :  { %4457 = vmatpush3.bf16.msra.mxu1 %v1434_v18  ;;  %v1530_v18 = vpack.c.bf16 %v280_v22, %v277_v1  ;;  %1561 = vmatpush1.bf16.msra.mxu0 %v1528_v46  ;;  %v304_v1 = vld [vmem:[#allocation5 + $0x1a0] sm:$0xff]  ;;  %v302_v22 = vld [vmem:[#allocation5 + $0x190] sm:$0xff] }
 0x4b0   :  { %4462 = vmatprep.subr.bf16.mxu1 %v1518_v38  ;;  %v1655_v46 = vpack.c.bf16 %v304_v1, %v301_v26  ;;  %v308_v26 = vld [vmem:[#allocation5 + $0x1c0] sm:$0xff]  ;;  %v311_v1 = vld [vmem:[#allocation5 + $0x1d8] sm:$0xff] }
 0x4c1   :  { %v669_v49 = vpop.trf.xlu1 }
 0x4c5   :  { %v670_v29 = vpop.trf.xlu1 }
 0x4c6   :  { %v5664_v27 = vpack.c.bf16 %v670_v29, %v669_v49  ;;  %v285_v49 = vld [vmem:[#allocation5 + $0x110] sm:$0xff] }
 0x4c8   :  { %4458 = vmatprep.mubr.msk.bf16.mxu1 %vm6284_vm9, %v5664_v27 }
 0x4c9   :  { %v671_v42 = vpop.trf.xlu1 }
 0x4cd   :  { %v672_v28 = vpop.trf.xlu1 }
 0x4ce   :  { %v5668_v47 = vpack.c.bf16 %v672_v28, %v671_v42  ;;  %v281_v42 = vld [vmem:[#allocation5 + $0xf0] sm:$0xff] }
 0x4cf   :  { %v1531_v28 = vpack.c.bf16 %v284_v33, %v281_v42 }
 0x4d0   :  { %4459 = vmatmul.mubr.msk.bf16.vlgmr.msra.gmra.mrb[16].mxu1 %vm6285_vm10, %v5668_v47 }
 0x4d1   :  { %4463 = vmatpush3.bf16.msra.mxu1 %v1518_v38  ;;  %v282_v38 = vld [vmem:[#allocation5 + $0xf8] sm:$0xff] }
 0x4d2   :  { %4464 = vmatprep.subr.bf16.mxu1 %v1521_v30  ;;  %v1532_v29 = vpack.c.bf16 %v285_v49, %v282_v38 }
 0x4d4   :  { %1562 = vmatprep.subr.bf16.mxu0 %v1532_v29 }
 0x4d5   :  { %4465 = vmatpush3.bf16.msra.mxu1 %v1521_v30  ;;  %v286_v30 = vld [vmem:[#allocation5 + $0x118] sm:$0xff]  ;;  %1563 = vmatpush1.bf16.msra.mxu0 %v1531_v28 }
 0x4d6   :  { %4466 = vmatprep.subr.bf16.mxu1 %v1524_v10  ;;  %v1533_v55 = vpack.c.bf16 %v286_v30, %v283_v34  ;;  %1564 = vmatprep.subr.bf16.mxu0 %v1535_v39 }
 0x4d9   :  { %4467 = vmatpush3.bf16.msra.mxu1 %v1524_v10  ;;  %v290_v10 = vld [vmem:[#allocation5 + $0x138] sm:$0xff] }
 0x4da   :  { %4468 = vmatprep.subr.bf16.mxu1 %v1527_v43  ;;  %v1534_v21 = vpack.c.bf16 %v290_v10, %v287_v62 }
 0x4dc   :  { %1565 = vmatpush1.bf16.msra.mxu0 %v1534_v21 }
 0x4dd   :  { %4469 = vmatpush3.bf16.msra.mxu1 %v1527_v43  ;;  %v296_v43 = vld [vmem:[#allocation5 + $0x168] sm:$0xff]  ;;  %1566 = vmatprep.subr.bf16.mxu0 %v1538_v37  ;;  %v300_v37 = vld [vmem:[#allocation5 + $0x180] sm:$0xff] }
 0x4de   :  { %4470 = vmatprep.subr.bf16.mxu1 %v1530_v18  ;;  %v1537_v11 = vpack.c.bf16 %v296_v43, %v293_v59  ;;  %v303_v59 = vld [vmem:[#allocation5 + $0x198] sm:$0xff] }
 0x4e0   :  { %1567 = vmatpush1.bf16.msra.mxu0 %v1537_v11 }
 0x4e1   :  { %4471 = vmatpush3.bf16.msra.mxu1 %v1530_v18  ;;  %v305_v18 = vld [vmem:[#allocation5 + $0x1a8] sm:$0xff]  ;;  %1690 = vmatprep.subr.bf16.mxu0 %v1655_v46 }
 0x4e2   :  { %4472 = vmatprep.subr.bf16.mxu1 %v1533_v55  ;;  %v1656_v38 = vpack.c.bf16 %v305_v18, %v302_v22 }
 0x4e5   :  { %4473 = vmatpush3.bf16.msra.mxu1 %v1533_v55 }
 0x4e6   :  { %4474 = vmatprep.subr.bf16.mxu1 %v1536_v51 }
 0x4e9   :  { %4475 = vmatpush3.bf16.msra.mxu1 %v1536_v51 }
 0x4ea   :  { %4476 = vmatprep.subr.bf16.mxu1 %v1539_v44 }
 0x4ed   :  { %4477 = vmatpush3.bf16.msra.mxu1 %v1539_v44  ;;  %v310_v44 = vld [vmem:[#allocation5 + $0x1d0] sm:$0xff] }
 0x4ee   :  { %4482 = vmatprep.subr.bf16.mxu1 %v1656_v38 }
 0x5a3   :  { %v4460_v49 = vpop.f32.mrb[16].mxu1 }
 0x5a4   :  { %v1496_v29 = vmin.f32 %v4460_v49, 0.0  ;;  %v1475_v42 = vpop.f32.mrb[17].mxu1  ;;  %vm1492_vm11 = vcmp.gt.f32.partialorder %v4460_v49, 0.0 }
 0x5a5   :  { %v1494_v33 = vmin.f32 %v1475_v42, 0.0  ;;  %v4461_v34 = vpop.f32.mrb[18].mxu1  ;;  %vm1490_vm14 = vcmp.gt.f32.partialorder %v1475_v42, 0.0 }
 0x5a6   :  { %v1502_v28 = vmul.f32 1.442695, %v1496_v29  ;;  %v1497_v30 = vmin.f32 %v4461_v34, 0.0  ;;  %v1478_v55 = vpop.f32.mrb[19].mxu1  ;;  %vm1493_vm12 = vcmp.gt.f32.partialorder %v4461_v34, 0.0  ;;  %v1654_v29 = vpack.c.bf16 %v303_v59, %v300_v37 }
 0x5a7   :  { %v1498_v50 = vmul.f32 1.442695, %v1494_v33  ;;  %v1495_v40 = vmin.f32 %v1478_v55, 0.0  ;;  %vm1491_vm15 = vcmp.gt.f32.partialorder %v1478_v55, 0.0 }
 0x5a8   :  { %4848 = vpow2.f32 %v1502_v28  ;;  %v1504_v39 = vmul.f32 1.442695, %v1497_v30  ;;  %v306_v28 = vld [vmem:[#allocation5 + $0x1b0] sm:$0xff]  ;;  %v309_v30 = vld [vmem:[#allocation5 + $0x1c8] sm:$0xff] }
 0x5a9   :  { %4850 = vpow2.f32 %v1498_v50  ;;  %v1500_v62 = vmul.f32 1.442695, %v1495_v40  ;;  %v1658_v50 = vpack.c.bf16 %v310_v44, %v307_v20  ;;  %v1659_v40 = vpack.c.bf16 %v311_v1, %v308_v26  ;;  %v326_v44 = vld [vmem:[#allocation5 + $0x250] sm:$0xff]  ;;  %v329_v26 = vld [vmem:[#allocation5 + $0x268] sm:$0xff] }
 0x5aa   :  { %4852 = vpow2.f32 %v1504_v39  ;;  %v313_v39 = vld [vmem:[#allocation5 + $0x1e8] sm:$0xff] }
 0x5ab   :  { %4854 = vpow2.f32 %v1500_v62  ;;  %v316_v62 = vld [vmem:[#allocation5 + $0x200] sm:$0xff] }
 0x5b2   :  { %v4849_v10 = vpop.eup %4848 }
 0x5b3   :  { %v4851_v41 = vpop.eup %4850  ;;  %v4100_v21 = vadd.f32 -1.0, %v4849_v10  ;;  %v317_v10 = vld [vmem:[#allocation5 + $0x208] sm:$0xff] }
 0x5b4   :  { %v4853_v54 = vpop.eup %4852  ;;  %v4098_v51 = vadd.f32 -1.0, %v4851_v41  ;;  %v315_v41 = vld [vmem:[#allocation5 + $0x1f8] sm:$0xff] }
 0x5b5   :  { %v4855_v19 = vpop.eup %4854  ;;  %v4101_v35 = vadd.f32 -1.0, %v4853_v54  ;;  %v1512_v11 = vsel %vm1492_vm11, %v4460_v49, %v4100_v21  ;;  %v314_v49 = vld [vmem:[#allocation5 + $0x1f0] sm:$0xff]  ;;  %v319_v54 = vld [vmem:[#allocation5 + $0x218] sm:$0xff] }
 0x5b6   :  { %v4099_v43 = vadd.f32 -1.0, %v4855_v19  ;;  %v1510_v46 = vsel %vm1490_vm14, %v1475_v42, %v4098_v51  ;;  %v1661_v42 = vpack.c.bf16 %v316_v62, %v313_v39  ;;  %v1662_v21 = vpack.c.bf16 %v317_v10, %v314_v49  ;;  %v322_v51 = vld [vmem:[#allocation5 + $0x230] sm:$0xff]  ;;  %v320_v19 = vld [vmem:[#allocation5 + $0x220] sm:$0xff]  ;;  %v333_v49 = vld [vmem:[#allocation5 + $0x288] sm:$0xff] }
 0x5b7   :  { %v1513_v45 = vsel %vm1493_vm12, %v4461_v34, %v4101_v35  ;;  %v1657_v34 = vpack.c.bf16 %v309_v30, %v306_v28  ;;  %v323_v35 = vld [vmem:[#allocation5 + $0x238] sm:$0xff]  ;;  %v1664_v59 = vpack.c.bf16 %v322_v51, %v319_v54  ;;  %v334_v30 = vld [vmem:[#allocation5 + $0x290] sm:$0xff]  ;;  %v336_v51 = vld [vmem:[#allocation5 + $0x2a0] sm:$0xff] }
 0x5b8   :  { %v1515_v22 = vpack.c.bf16 %v1513_v45, %v1512_v11  ;;  %v1511_v18 = vsel %vm1491_vm15, %v1478_v55, %v4099_v43  ;;  %v312_v55 = vld [vmem:[#allocation5 + $0x1e0] sm:$0xff]  ;;  %v321_v43 = vld [vmem:[#allocation5 + $0x228] sm:$0xff]  ;;  %v1665_v20 = vpack.c.bf16 %v323_v35, %v320_v19  ;;  %v331_v28 = vld [vmem:[#allocation5 + $0x278] sm:$0xff] }
 0x5b9   :  { %v1514_v33 = vpack.c.bf16 %v1511_v18, %v1510_v46  ;;  %v1660_v37 = vpack.c.bf16 %v315_v41, %v312_v55  ;;  %v325_v11 = vld [vmem:[#allocation5 + $0x248] sm:$0xff]  ;;  %v328_v45 = vld [vmem:[#allocation5 + $0x260] sm:$0xff]  ;;  %v330_v62 = vld [vmem:[#allocation5 + $0x270] sm:$0xff] }
 0x5ba   :  { %v1667_v46 = vpack.c.bf16 %v328_v45, %v325_v11  ;;  %v324_v18 = vld [vmem:[#allocation5 + $0x240] sm:$0xff]  ;;  %v338_v55 = vld [vmem:[#allocation5 + $0x2b0] sm:$0xff]  ;;  %v341_v41 = vld [vmem:[#allocation5 + $0x2c8] sm:$0xff] }
 0x5bb   :  { %1585 = vmatmul.mubr.bf16.vlgmr.msra.gmra.mrb[20].mxu0 %v1514_v33  ;;  %4478 = vmatprep.mubr.bf16.mxu1 %v1514_v33  ;;  %v1668_v33 = vpack.c.bf16 %v329_v26, %v326_v44  ;;  %v339_v19 = vld [vmem:[#allocation5 + $0x2b8] sm:$0xff]  ;;  %v1674_v35 = vpack.c.bf16 %v341_v41, %v338_v55  ;;  %v342_v45 = vld [vmem:[#allocation5 + $0x2d0] sm:$0xff]  ;;  %v345_v44 = vld [vmem:[#allocation5 + $0x2e8] sm:$0xff] }
 0x5bc   :  { %1691 = vmatpush1.bf16.msra.mxu0 %v1654_v29  ;;  %4479 = vmatmul.mubr.bf16.vlgmr.msra.gmra.mrb[20].mxu1 %v1515_v22  ;;  %v327_v29 = vld [vmem:[#allocation5 + $0x258] sm:$0xff] }
 0x5bd   :  { %4483 = vmatpush3.bf16.msra.mxu1 %v1656_v38  ;;  %4498 = vmatprep.mubr.bf16.mxu1 %v5379_v4  ;;  %v318_v38 = vld [vmem:[#allocation5 + $0x210] sm:$0xff]  ;;  %v1666_v39 = vpack.c.bf16 %v327_v29, %v324_v18 }
 0x5be   :  { %1692 = vmatprep.subr.bf16.mxu0 %v1658_v50  ;;  %4484 = vmatprep.subr.bf16.mxu1 %v1659_v40  ;;  %v1663_v1 = vpack.c.bf16 %v321_v43, %v318_v38  ;;  %v332_v50 = vld [vmem:[#allocation5 + $0x280] sm:$0xff]  ;;  %v347_v43 = vld [vmem:[#allocation5 + $0x2f8] sm:$0xff] }
 0x5bf   :  { %1594 = vmatprep.mubr.bf16.mxu0 %v5074_v3  ;;  %v344_v38 = vld [vmem:[#allocation5 + $0x2e0] sm:$0xff] }
 0x5c0   :  { %1693 = vmatpush1.bf16.msra.mxu0 %v1657_v34  ;;  %v337_v34 = vld [vmem:[#allocation5 + $0x2a8] sm:$0xff]  ;;  %v1677_v26 = vpack.c.bf16 %v347_v43, %v344_v38 }
 0x5c1   :  { %4485 = vmatpush3.bf16.msra.mxu1 %v1659_v40  ;;  %1694 = vmatprep.subr.bf16.mxu0 %v1661_v42  ;;  %v335_v40 = vld [vmem:[#allocation5 + $0x298] sm:$0xff]  ;;  %v340_v42 = vld [vmem:[#allocation5 + $0x2c0] sm:$0xff] }
 0x5c2   :  { %4486 = vmatprep.subr.bf16.mxu1 %v1662_v21  ;;  %v1671_v10 = vpack.c.bf16 %v335_v40, %v332_v50  ;;  %v1673_v54 = vpack.c.bf16 %v340_v42, %v337_v34  ;;  %v5705_v50 = vld [vmem:[%s6280_s11 + $0x8] sm:$0xff] }
 0x5c3   :  { %1595 = vmatmul.mubr.bf16.gmra.mrb[24].mxu0 %v1515_v22  ;;  %v1670_v22 = vpack.c.bf16 %v334_v30, %v331_v28  ;;  %v5691_v28 = vsub.s32 4, %v5349_v32 }
 0x5c4   :  { %1695 = vmatpush1.bf16.msra.mxu0 %v1660_v37  ;;  %1722 = vmatprep.mubr.bf16.mxu0 %v5074_v3  ;;  %v343_v37 = vld [vmem:[#allocation5 + $0x2d8] sm:$0xff] }
 0x5c5   :  { %4487 = vmatpush3.bf16.msra.mxu1 %v1662_v21  ;;  %1696 = vmatprep.subr.bf16.mxu0 %v1664_v59  ;;  %v1669_v21 = vpack.c.bf16 %v333_v49, %v330_v62  ;;  %v346_v59 = vld [vmem:[#allocation5 + $0x2f0] sm:$0xff]  ;;  %v1547_v40 = vrot.slane %v5705_v50, %v5691_v28 }
 0x5c6   :  { %4488 = vmatprep.subr.bf16.mxu1 %v1665_v20  ;;  %v1676_v11 = vpack.c.bf16 %v346_v59, %v343_v37 }
 0x5c8   :  { %1697 = vmatpush1.bf16.msra.mxu0 %v1663_v1  ;;  %v1675_v1 = vpack.c.bf16 %v345_v44, %v342_v45 }
 0x5c9   :  { %4489 = vmatpush3.bf16.msra.mxu1 %v1665_v20  ;;  %1698 = vmatprep.subr.bf16.mxu0 %v1667_v46  ;;  %v1672_v20 = vpack.c.bf16 %v339_v19, %v336_v51 }
 0x5ca   :  { %4490 = vmatprep.subr.bf16.mxu1 %v1668_v33 }
 0x5cc   :  { %1699 = vmatpush1.bf16.msra.mxu0 %v1666_v39 }
 0x5cd   :  { %4491 = vmatpush3.bf16.msra.mxu1 %v1668_v33  ;;  %1700 = vmatprep.subr.bf16.mxu0 %v1670_v22 }
 0x5ce   :  { %4492 = vmatprep.subr.bf16.mxu1 %v1671_v10 }
 0x5d0   :  { %1701 = vmatpush1.bf16.msra.mxu0 %v1669_v21 }
 0x5d1   :  { %4493 = vmatpush3.bf16.msra.mxu1 %v1671_v10  ;;  %1702 = vmatprep.subr.bf16.mxu0 %v1673_v54 }
 0x5d2   :  { %4494 = vmatprep.subr.bf16.mxu1 %v1674_v35 }
 0x5d4   :  { %1703 = vmatpush1.bf16.msra.mxu0 %v1672_v20 }
 0x5d5   :  { %4495 = vmatpush3.bf16.msra.mxu1 %v1674_v35  ;;  %1704 = vmatprep.subr.bf16.mxu0 %v1676_v11 }
 0x5d6   :  { %4496 = vmatprep.subr.bf16.mxu1 %v1677_v26 }
 0x5d8   :  { %1705 = vmatpush1.bf16.msra.mxu0 %v1675_v1 }
 0x5d9   :  { %4497 = vmatpush3.bf16.msra.mxu1 %v1677_v26 }
 0x5db   :  { %1723 = vmatmul.mubr.bf16.vlgmr.msra.gmra.mrb[20].mxu0 %v5379_v4  ;;  %v5688_v4 = vsub.s32 5, %v5349_v32 }
 0x5dc   :  { %4499 = vmatmul.mubr.bf16.vlgmr.msra.gmra.mrb[24].mxu1 %v5375_v2  ;;  %1732 = vmatprep.mubr.bf16.mxu0 %v5074_v3 }
 0x5dd   :  { %4506 = vmatprep.mubr.msk.bf16.mxu1 %vm791_vm5, %v5344_v25  ;;  %v5696_v25 = vld [vmem:[%s6280_s11] sm:$0xff]  ;;  %v1685_v39 = vrot.slane %v5705_v50, %v5688_v4 }
 0x5de   :  { %v1681_v30 = vrot.slane %v5696_v25, %v5688_v4 }
 0x5df   :  { %v4736_v49 = vadd.f32 %v1685_v39, %v1547_v40  ;;  %v101_v40 = vld [vmem:[%s6280_s11 + $0x10] sm:$0xff] }
 0x5e3   :  { %1733 = vmatmul.mubr.bf16.gmra.mrb[24].mxu0 %v5375_v2  ;;  %v1543_v2 = vrot.slane %v5696_v25, %v5691_v28 }
 0x5e4   :  { %4518 = vmatprep.mubr.msk.bf16.mxu0 %vm791_vm5, %v5312_v0 }
 0x5e5   :  { %v4734_v22 = vadd.f32 %v1681_v30, %v1543_v2 }
 0x68f   :  { %v5683_v46 = vpop.f32.mrb[20].mxu1 }
 0x690   :  { %v1639_v18 = vpop.f32.mrb[21].mxu1 }
 0x691   :  { %v5685_v29 = vpop.f32.mrb[22].mxu1 }
 0x692   :  { %v1642_v33 = vpop.f32.mrb[23].mxu1 }
 0x6ae   :  { %v1724_v62 = vpop.f32.mrb[20].mxu0 }
 0x6af   :  { %v4735_v10 = vadd.f32 %v4734_v22, %v1724_v62  ;;  %v1726_v34 = vpop.f32.mrb[21].mxu0  ;;  %v4500_v42 = vpop.f32.mrb[24].mxu1 }
 0x6b0   :  { %v1728_v55 = vpop.f32.mrb[22].mxu0  ;;  %v1777_v41 = vpop.f32.mrb[25].mxu1  ;;  %v4737_v35 = vadd.f32 %v4736_v49, %v1726_v34 }
 0x6b1   :  { %v1796_v21 = vmul.f32 0.5, %v4735_v10  ;;  %v4739_v54 = vadd.f32 %v4734_v22, %v1728_v55  ;;  %v1730_v51 = vpop.f32.mrb[23].mxu0  ;;  %v4501_v19 = vpop.f32.mrb[26].mxu1  ;;  %v1689_v10 = vrot.slane %v101_v40, %v5688_v4 }
 0x6b2   :  { %v1780_v37 = vpop.f32.mrb[27].mxu1  ;;  %v4741_v38 = vadd.f32 %v4736_v49, %v1730_v51  ;;  %v1816_v43 = vmul.f32 0.5, %v4737_v35 }
 0x6b3   :  { %4856 = vtanh.f32 %v1796_v21  ;;  %v1797_v59 = vmul.f32 0.5, %v4739_v54  ;;  %v1551_v21 = vrot.slane %v101_v40, %v5691_v28 }
 0x6b4   :  { %v1817_v44 = vmul.f32 0.5, %v4741_v38 }
 0x6b5   :  { %4858 = vtanh.f32 %v1797_v59  ;;  %v1778_v59 = vadd.f32 %v1777_v41, %v1689_v10  ;;  %v1786_v41 = vadd.f32 %v4500_v42, %v1689_v10 }
 0x6b6   :  { %v1734_v20 = vpop.f32.mrb[24].mxu0  ;;  %4860 = vtanh.f32 %v1816_v43 }
 0x6b7   :  { %v4743_v11 = vadd.f32 %v4734_v22, %v1734_v20  ;;  %v1736_v45 = vpop.f32.mrb[25].mxu0 }
 0x6b8   :  { %v1738_v26 = vpop.f32.mrb[26].mxu0  ;;  %v4745_v39 = vadd.f32 %v4736_v49, %v1736_v45  ;;  %v1781_v45 = vadd.f32 %v1780_v37, %v1689_v10  ;;  %v1648_v37 = vadd.f32 %v5683_v46, %v1551_v21 }
 0x6b9   :  { %v1798_v1 = vmul.f32 0.5, %v4743_v11  ;;  %v4747_v2 = vadd.f32 %v4734_v22, %v1738_v26  ;;  %v1740_v30 = vpop.f32.mrb[27].mxu0  ;;  %v1640_v11 = vadd.f32 %v1639_v18, %v1551_v21 }
 0x6ba   :  { %v4749_v34 = vadd.f32 %v4736_v49, %v1740_v30  ;;  %v1818_v51 = vmul.f32 0.5, %v4745_v39 }
 0x6bb   :  { %4862 = vtanh.f32 %v1798_v1  ;;  %v1799_v62 = vmul.f32 0.5, %v4747_v2  ;;  %v1643_v2 = vadd.f32 %v1642_v33, %v1551_v21 }
 0x6bc   :  { %4864 = vtanh.f32 %v1817_v44  ;;  %v1819_v20 = vmul.f32 0.5, %v4749_v34 }
 0x6bd   :  { %v4857_v55 = vpop.eup %4856  ;;  %4866 = vtanh.f32 %v1799_v62 }
 0x6be   :  { %v1804_v54 = vadd.f32 1.0, %v4857_v55  ;;  %4868 = vtanh.f32 %v1818_v51  ;;  %v1789_v51 = vadd.f32 %v4501_v19, %v1689_v10 }
 0x6bf   :  { %v4859_v22 = vpop.eup %4858  ;;  %4870 = vtanh.f32 %v1819_v20  ;;  %v1651_v20 = vadd.f32 %v5685_v29, %v1551_v21 }
 0x6c0   :  { %v1805_v35 = vadd.f32 1.0, %v4859_v22  ;;  %v1808_v38 = vmul.f32 0.5, %v1804_v54  ;;  %v4861_v1 = vpop.eup %4860 }
 0x6c1   :  { %v1824_v22 = vadd.f32 1.0, %v4861_v1 }
 0x6c2   :  { %v1832_v43 = vmul.f32 %v1808_v38, %v1778_v59  ;;  %v1809_v26 = vmul.f32 0.5, %v1805_v35 }
 0x6c3   :  { %v1828_v59 = vmul.f32 0.5, %v1824_v22 }
 0x6c4   :  { %v1836_v44 = vadd.f32 %v1832_v43, %v1640_v11  ;;  %v1833_v49 = vmul.f32 %v1809_v26, %v1781_v45 }
 0x6c5   :  { %v4863_v30 = vpop.eup %4862  ;;  %v1844_v42 = vsub.f32 1.0, %v1828_v59 }
 0x6c6   :  { %v4865_v40 = vpop.eup %4864  ;;  %4872 = vtanh.f32 %v1836_v44  ;;  %v1837_v62 = vadd.f32 %v1833_v49, %v1643_v2  ;;  %v1806_v39 = vadd.f32 1.0, %v4863_v30  ;;  %v1852_v49 = vmul.f32 %v1828_v59, %v5367_v57 }
 0x6c7   :  { %v4867_v55 = vpop.eup %4866  ;;  %v1825_v54 = vadd.f32 1.0, %v4865_v40 }
 0x6c8   :  { %4874 = vtanh.f32 %v1837_v62  ;;  %v1810_v34 = vmul.f32 0.5, %v1806_v39  ;;  %v1807_v18 = vadd.f32 1.0, %v4867_v55  ;;  %v4869_v38 = vpop.eup %4868 }
 0x6c9   :  { %v1829_v45 = vmul.f32 0.5, %v1825_v54  ;;  %v4871_v26 = vpop.eup %4870  ;;  %v1826_v2 = vadd.f32 1.0, %v4869_v38 }
 0x6ca   :  { %v1834_v35 = vmul.f32 %v1810_v34, %v1786_v41  ;;  %v1811_v33 = vmul.f32 0.5, %v1807_v18  ;;  %v1827_v10 = vadd.f32 1.0, %v4871_v26  ;;  %v152_v26 = vld [vmem:[#allocation2 + $0x110] sm:$0xff] }
 0x6cb   :  { %v1845_v19 = vsub.f32 1.0, %v1829_v45  ;;  %v1853_v62 = vmul.f32 %v1829_v45, %v5371_v61  ;;  %v1830_v21 = vmul.f32 0.5, %v1826_v2  ;;  %v154_v2 = vld [vmem:[#allocation2 + $0x120] sm:$0xff] }
 0x6cc   :  { %v1838_v11 = vadd.f32 %v1834_v35, %v1648_v37  ;;  %v1835_v43 = vmul.f32 %v1811_v33, %v1789_v51  ;;  %v1831_v55 = vmul.f32 0.5, %v1827_v10 }
 0x6cd   :  { %v1846_v34 = vsub.f32 1.0, %v1830_v21  ;;  %v1854_v37 = vmul.f32 %v1830_v21, %v5365_v56  ;;  %v162_v21 = vld [vmem:[#allocation2 + $0x160] sm:$0xff] }
 0x6ce   :  { %4876 = vtanh.f32 %v1838_v11  ;;  %v1839_v1 = vadd.f32 %v1835_v43, %v1651_v20  ;;  %v1847_v51 = vsub.f32 1.0, %v1831_v55  ;;  %v1855_v59 = vmul.f32 %v1831_v55, %v5369_v60  ;;  %v150_v20 = vld [vmem:[#allocation2 + $0x100] sm:$0xff]  ;;  %v151_v11 = vld [vmem:[#allocation2 + $0x108] sm:$0xff]  ;;  %v164_v55 = vld [vmem:[#allocation2 + $0x170] sm:$0xff] }
 0x6cf   :  { %v2239_v60 = vpack.c.bf16 %v151_v11, %v150_v20 }
 0x6d0   :  { %v4873_v44 = vpop.eup %4872  ;;  %4878 = vtanh.f32 %v1839_v1  ;;  %v153_v1 = vld [vmem:[#allocation2 + $0x118] sm:$0xff] }
 0x6d1   :  { %v1848_v46 = vmul.f32 %v4873_v44, %v1844_v42  ;;  %v2240_v42 = vpack.c.bf16 %v153_v1, %v152_v26  ;;  %v155_v44 = vld [vmem:[#allocation2 + $0x128] sm:$0xff] }
 0x6d2   :  { %v4875_v30 = vpop.eup %4874 }
 0x6d3   :  { %v1856_v40 = vadd.f32 %v1852_v49, %v1848_v46  ;;  %v1849_v29 = vmul.f32 %v4875_v30, %v1845_v19  ;;  %v2241_v49 = vpack.c.bf16 %v155_v44, %v154_v2  ;;  %v156_v46 = vld [vmem:[#allocation2 + $0x130] sm:$0xff]  ;;  %v157_v19 = vld [vmem:[#allocation2 + $0x138] sm:$0xff]  ;;  %v159_v30 = vld [vmem:[#allocation2 + $0x148] sm:$0xff] }
 0x6d4   :  { %v2242_v10 = vpack.c.bf16 %v157_v19, %v156_v46 }
 0x6d5   :  { %v1857_v39 = vadd.f32 %v1853_v62, %v1849_v29  ;;  %v5720_v22 = vmax.f32 %v1856_v40, 0.0  ;;  %v160_v40 = vld [vmem:[#allocation2 + $0x150] sm:$0xff]  ;;  %v161_v62 = vld [vmem:[#allocation2 + $0x158] sm:$0xff] }
 0x6d6   :  { %v2244_v29 = vpack.c.bf16 %v161_v62, %v160_v40 }
 0x6d7   :  { %v5722_v41 = vmax.f32 %v1857_v39, 0.0 }
 0x6d8   :  { %v4877_v18 = vpop.eup %4876 }
 0x6d9   :  { %v5726_v57 = vpack.c.bf16 %v5722_v41, %v5720_v22  ;;  %v1850_v54 = vmul.f32 %v4877_v18, %v1846_v34  ;;  %v165_v34 = vld [vmem:[#allocation2 + $0x178] sm:$0xff] }
 0x6da   :  { %v4879_v35 = vpop.eup %4878  ;;  %v2246_v18 = vpack.c.bf16 %v165_v34, %v164_v55 }
 0x6db   :  { %v1858_v61 = vadd.f32 %v1854_v37, %v1850_v54  ;;  %v1851_v33 = vmul.f32 %v4879_v35, %v1847_v51  ;;  %4502 = vmatprep.subr.bf16.mxu1 %v5726_v57  ;;  %4514 = vmatprep.subr.bf16.mxu0 %v5726_v57 }
 0x6dc   :  { %4503 = vmatpush3.bf16.msra.mxu1 %v5726_v57  ;;  %4515 = vmatpush3.bf16.msra.mxu0 %v5726_v57 }
 0x6dd   :  { %v1859_v38 = vadd.f32 %v1855_v59, %v1851_v33  ;;  %v5734_v43 = vmax.f32 %v1858_v61, 0.0 }
 0x6df   :  { %v5736_v56 = vmax.f32 %v1859_v38, 0.0 }
 0x6e1   :  { %v5740_v45 = vpack.c.bf16 %v5736_v56, %v5734_v43 }
 0x6e3   :  { %4504 = vmatprep.subr.bf16.mxu1 %v5740_v45  ;;  %4516 = vmatprep.subr.bf16.mxu0 %v5740_v45 }
 0x6e4   :  { %4505 = vmatpush3.bf16.msra.mxu1 %v5740_v45  ;;  %4517 = vmatpush3.bf16.msra.mxu0 %v5740_v45 }
 0x6e5   :  { %4526 = vmatprep.subr.bf16.mxu1 %v2239_v60 }
 0x6e7   :  { %4507 = vmatmul.mubr.msk.bf16.vlgmr.msra.gmra.mrb[28].mxu1 %vm791_vm5, %v5403_v12  ;;  %4519 = vmatmul.mubr.msk.bf16.vlgmr.msra.gmra.mrb[28].mxu0 %vm791_vm5, %v5310_v63  ;;  %v158_v12 = vld [vmem:[#allocation2 + $0x140] sm:$0xff] }
 0x6e8   :  { %4510 = vmatprep.mubr.msk.bf16.mxu1 %vm791_vm5, %v5407_v13  ;;  %4522 = vmatprep.mubr.msk.bf16.mxu0 %vm791_vm5, %v5322_v9  ;;  %v2243_v13 = vpack.c.bf16 %v159_v30, %v158_v12 }
 0x6e9   :  { %4527 = vmatpush3.bf16.msra.mxu1 %v2239_v60 }
 0x6ea   :  { %4528 = vmatprep.subr.bf16.mxu1 %v2240_v42 }
 0x6ed   :  { %4529 = vmatpush3.bf16.msra.mxu1 %v2240_v42 }
 0x6ee   :  { %4530 = vmatprep.subr.bf16.mxu1 %v2241_v49 }
 0x6ef   :  { %4511 = vmatmul.mubr.msk.bf16.gmra.mrb[32].mxu1 %vm791_vm5, %v5423_v16  ;;  %4523 = vmatmul.mubr.msk.bf16.gmra.mrb[32].mxu0 %vm791_vm5, %v5330_v17  ;;  %v163_v16 = vld [vmem:[#allocation2 + $0x168] sm:$0xff] }
 0x6f0   :  { %4542 = vmatprep.mubr.bf16.mxu1 %v5726_v57  ;;  %4550 = vmatprep.mubr.msk.bf16.mxu0 %vm791_vm5, %v5312_v0  ;;  %v2245_v39 = vpack.c.bf16 %v163_v16, %v162_v21  ;;  %v5764_v0 = vsub.s32 6, %v5349_v32 }
 0x6f1   :  { %4531 = vmatpush3.bf16.msra.mxu1 %v2241_v49 }
 0x6f2   :  { %4532 = vmatprep.subr.bf16.mxu1 %v2242_v10  ;;  %v1999_v54 = vrot.slane %v5696_v25, %v5764_v0  ;;  %v2011_v37 = vrot.slane %v5705_v50, %v5764_v0 }
 0x6f5   :  { %4533 = vmatpush3.bf16.msra.mxu1 %v2242_v10 }
 0x6f6   :  { %4534 = vmatprep.subr.bf16.mxu1 %v2243_v13 }
 0x6f9   :  { %4535 = vmatpush3.bf16.msra.mxu1 %v2243_v13 }
 0x6fa   :  { %4536 = vmatprep.subr.bf16.mxu1 %v2244_v29 }
 0x6fd   :  { %4537 = vmatpush3.bf16.msra.mxu1 %v2244_v29 }
 0x6fe   :  { %4538 = vmatprep.subr.bf16.mxu1 %v2245_v39 }
 0x701   :  { %4539 = vmatpush3.bf16.msra.mxu1 %v2245_v39 }
 0x702   :  { %4540 = vmatprep.subr.bf16.mxu1 %v2246_v18 }
 0x705   :  { %4541 = vmatpush3.bf16.msra.mxu1 %v2246_v18 }
 0x708   :  { %4543 = vmatmul.mubr.bf16.vlgmr.msra.gmra.mrb[36].mxu1 %v5740_v45 }
 0x709   :  { %2522 = vmatprep.mubr.bf16.mxu1 %v5074_v3 }
 0x7ba   :  { %v4508_v51 = vpop.f32.mrb[28].mxu1  ;;  %v4520_v35 = vpop.f32.mrb[28].mxu0 }
 0x7bb   :  { %v2002_v61 = vmul.f32 %v4508_v51, %v1999_v54  ;;  %v2014_v33 = vmul.f32 %v4520_v35, %v2011_v37  ;;  %v1900_v59 = vpop.f32.mrb[29].mxu1  ;;  %v1965_v38 = vpop.f32.mrb[29].mxu0 }
 0x7bc   :  { %v2000_v20 = vmul.f32 %v1999_v54, %v1900_v59  ;;  %v2012_v11 = vmul.f32 %v2011_v37, %v1965_v38  ;;  %v4509_v60 = vpop.f32.mrb[30].mxu1  ;;  %v4521_v26 = vpop.f32.mrb[30].mxu0 }
 0x7bd   :  { %v2003_v1 = vmul.f32 %v4509_v60, %v1999_v54  ;;  %v2015_v42 = vmul.f32 %v4521_v26, %v2011_v37  ;;  %v1903_v2 = vpop.f32.mrb[31].mxu1  ;;  %v1968_v44 = vpop.f32.mrb[31].mxu0  ;;  %v2022_v49 = vadd.f32 %v2014_v33, %v2002_v61  ;;  %v5771_v26 = vsub.s32 7, %v5349_v32 }
 0x7be   :  { %v2001_v46 = vmul.f32 %v1999_v54, %v1903_v2  ;;  %v2013_v19 = vmul.f32 %v2011_v37, %v1968_v44  ;;  %v2020_v10 = vadd.f32 %v2012_v11, %v2000_v20 }
 0x7bf   :  { %2032 = vadd.xlane.f32.xlu0 %v2022_v49  ;;  %v2023_v50 = vadd.f32 %v2015_v42, %v2003_v1  ;;  %v2250_v1 = vrot.slane %v5696_v25, %v5771_v26 }
 0x7c0   :  { %v2021_v12 = vadd.f32 %v2013_v19, %v2001_v46 }
 0x7c2   :  { %v4512_v30 = vpop.f32.mrb[32].mxu1  ;;  %v4524_v13 = vpop.f32.mrb[32].mxu0 }
 0x7c3   :  { %v2006_v40 = vmul.f32 %v4512_v30, %v1999_v54  ;;  %v2018_v62 = vmul.f32 %v4524_v13, %v2011_v37  ;;  %v1981_v29 = vpop.f32.mrb[33].mxu0  ;;  %2028 = vadd.xlane.f32.xlu0 %v2020_v10  ;;  %v1916_v21 = vpop.f32.mrb[33].mxu1 }
 0x7c4   :  { %v2016_v16 = vmul.f32 %v2011_v37, %v1981_v29  ;;  %v2004_v39 = vmul.f32 %v1999_v54, %v1916_v21  ;;  %v4513_v55 = vpop.f32.mrb[34].mxu1  ;;  %v4525_v34 = vpop.f32.mrb[34].mxu0 }
 0x7c5   :  { %v2007_v18 = vmul.f32 %v4513_v55, %v1999_v54  ;;  %v2019_v51 = vmul.f32 %v4525_v34, %v2011_v37  ;;  %v1919_v35 = vpop.f32.mrb[35].mxu1  ;;  %v1984_v61 = vpop.f32.mrb[35].mxu0  ;;  %v2026_v33 = vadd.f32 %v2018_v62, %v2006_v40  ;;  %v2044_v40 = vstv %s4063_s29 }
 0x7c6   :  { %v2005_v59 = vmul.f32 %v1999_v54, %v1919_v35  ;;  %v2017_v38 = vmul.f32 %v2011_v37, %v1984_v61  ;;  %v2024_v20 = vadd.f32 %v2016_v16, %v2004_v39 }
 0x7c7   :  { %2034 = vadd.xlane.f32.xlu0 %v2023_v50  ;;  %v2027_v11 = vadd.f32 %v2019_v51, %v2007_v18 }
 0x7c8   :  { %v2025_v60 = vadd.f32 %v2017_v38, %v2005_v59 }
 0x7cb   :  { %2030 = vadd.xlane.f32.xlu0 %v2021_v12 }
 0x7cf   :  { %2040 = vadd.xlane.f32.xlu0 %v2026_v33 }
 0x7d3   :  { %2036 = vadd.xlane.f32.xlu0 %v2024_v20 }
 0x7d7   :  { %2038 = vadd.xlane.f32.xlu0 %v2025_v60 }
 0x7db   :  { %v4544_v42 = vpop.f32.mrb[36].mxu1  ;;  %2042 = vadd.xlane.f32.xlu0 %v2027_v11 }
 0x7dc   :  { %v2285_v2 = vpop.f32.mrb[37].mxu1  ;;  %v2294_v54 = vadd.f32 %v4544_v42, %v2250_v1 }
 0x7dd   :  { %v4545_v44 = vpop.f32.mrb[38].mxu1  ;;  %v2286_v46 = vadd.f32 %v2285_v2, %v2250_v1 }
 0x7de   :  { %v2297_v37 = vadd.f32 %v4545_v44, %v2250_v1  ;;  %v2288_v49 = vpop.f32.mrb[39].mxu1 }
 0x7df   :  { %v2289_v19 = vadd.f32 %v2288_v49, %v2250_v1 }
 0x7e0   :  { %v2301_v10 = vpack.c.bf16 %v2297_v37, %v2294_v54 }
 0x7e1   :  { %v2300_v50 = vpack.c.bf16 %v2289_v19, %v2286_v46 }
 0x7e3   :  { %4546 = vmatprep.subr.bf16.mxu0 %v2300_v50 }
 0x7e4   :  { %4547 = vmatpush3.bf16.msra.mxu0 %v2300_v50 }
 0x7e5   :  { %4548 = vmatprep.subr.bf16.mxu0 %v2301_v10 }
 0x7e8   :  { %4549 = vmatpush3.bf16.msra.mxu0 %v2301_v10 }
 0x7eb   :  { %4551 = vmatmul.mubr.msk.bf16.vlgmr.msra.gmra.mrb[36].mxu0 %vm791_vm5, %v5310_v63 }
 0x7ec   :  { %4554 = vmatprep.mubr.msk.bf16.mxu0 %vm791_vm5, %v5322_v9 }
 0x7f3   :  { %4555 = vmatmul.mubr.msk.bf16.gmra.mrb[40].mxu0 %vm791_vm5, %v5330_v17 }
 0x7f4   :  { %4566 = vmatprep.mubr.msk.bf16.mxu0 %vm6286_vm8, %v5664_v27 }
 0x84c   :  { %v2033_v32 = vpop.xlane.xlu0 %2032 }
 0x84d   :  { %v2047_v21 = vadd.f32 %v2044_v40, %v2033_v32 }
 0x84f   :  { %v2063_v18 = vmul.f32 0.01, %v2047_v21  ;;  %vm2055_vm12 = vcmp.gt.f32.partialorder %v2047_v21, 0.0 }
 0x850   :  { %v2029_v25 = vpop.xlane.xlu0 %2028 }
 0x851   :  { %v2045_v63 = vadd.f32 %v2044_v40, %v2029_v25  ;;  %v5789_v11 = vsel %vm2055_vm12, %v2047_v21, %v2063_v18 }
 0x852   :  { %v2079_v50 = vsel %vm687_vm2, %v5789_v11, -1e+30 }
 0x853   :  { %v2061_v27 = vmul.f32 0.01, %v2045_v63  ;;  %vm2053_vm14 = vcmp.gt.f32.partialorder %v2045_v63, 0.0  ;;  %v2087_v21 = vsel %vm791_vm5, %v2079_v50, -inf }
 0x854   :  { %v2035_v12 = vpop.xlane.xlu0 %2034 }
 0x855   :  { %v2048_v39 = vadd.f32 %v2044_v40, %v2035_v12  ;;  %v5791_v60 = vsel %vm2053_vm14, %v2045_v63, %v2061_v27 }
 0x856   :  { %v2077_v32 = vsel %vm685_vm3, %v5791_v60, -1e+30 }
 0x857   :  { %v2064_v35 = vmul.f32 0.01, %v2048_v39  ;;  %vm2056_vm15 = vcmp.gt.f32.partialorder %v2048_v39, 0.0  ;;  %v2085_v63 = vsel %vm791_vm5, %v2077_v32, -inf }
 0x858   :  { %v2031_v30 = vpop.xlane.xlu0 %2030 }
 0x859   :  { %v2046_v62 = vadd.f32 %v2044_v40, %v2031_v30  ;;  %v5793_v42 = vsel %vm2056_vm15, %v2048_v39, %v2064_v35 }
 0x85a   :  { %v2080_v25 = vsel %vm688_vm4, %v5793_v42, -1e+30 }
 0x85b   :  { %v2062_v55 = vmul.f32 0.01, %v2046_v62  ;;  %vm2054_vm9 = vcmp.gt.f32.partialorder %v2046_v62, 0.0 }
 0x85c   :  { %v2041_v13 = vpop.xlane.xlu0 %2040 }
 0x85d   :  { %v2051_v29 = vadd.f32 %v2044_v40, %v2041_v13  ;;  %v5783_v33 = vsel %vm2054_vm9, %v2046_v62, %v2062_v55 }
 0x85e   :  { %v2078_v2 = vsel %vm686_vm1, %v5783_v33, -1e+30 }
 0x85f   :  { %v2067_v17 = vmul.f32 0.01, %v2051_v29  ;;  %vm2059_vm10 = vcmp.gt.f32.partialorder %v2051_v29, 0.0  ;;  %v2086_v12 = vsel %vm791_vm5, %v2078_v2, -inf }
 0x860   :  { %v2037_v16 = vpop.xlane.xlu0 %2036 }
 0x861   :  { %v2049_v9 = vadd.f32 %v2044_v40, %v2037_v16  ;;  %v5785_v59 = vsel %vm2059_vm10, %v2051_v29, %v2067_v17  ;;  %v2088_v16 = vsel %vm791_vm5, %v2080_v25, -inf }
 0x862   :  { %v2083_v37 = vsel %vm691_vm13, %v5785_v59, -1e+30 }
 0x863   :  { %v2065_v34 = vmul.f32 0.01, %v2049_v9  ;;  %vm2057_vm11 = vcmp.gt.f32.partialorder %v2049_v9, 0.0  ;;  %v2093_v30 = vsel %vm791_vm5, %v2083_v37, -inf }
 0x864   :  { %v2039_v51 = vpop.xlane.xlu0 %2038 }
 0x865   :  { %v2050_v61 = vadd.f32 %v2044_v40, %v2039_v51  ;;  %v5787_v38 = vsel %vm2057_vm11, %v2049_v9, %v2065_v34  ;;  %v2094_v9 = vmax.f32 %v2087_v21, %v2093_v30 }
 0x866   :  { %v2081_v49 = vsel %vm689_vm6, %v5787_v38, -1e+30 }
 0x867   :  { %vm2058_vm8 = vcmp.gt.f32.partialorder %v2050_v61, 0.0  ;;  %v2066_v20 = vmul.f32 0.01, %v2050_v61  ;;  %v2089_v13 = vsel %vm791_vm5, %v2081_v49, -inf }
 0x868   :  { %v2043_v1 = vpop.xlane.xlu0 %2042  ;;  %v2090_v55 = vmax.f32 %v2085_v63, %v2089_v13 }
 0x869   :  { %v5798_v44 = vsel %vm2058_vm8, %v2050_v61, %v2066_v20  ;;  %v2052_v54 = vadd.f32 %v2044_v40, %v2043_v1 }
 0x86a   :  { %v2082_v46 = vsel %vm690_vm7, %v5798_v44, -1e+30 }
 0x86b   :  { %v2091_v19 = vsel %vm791_vm5, %v2082_v46, -inf  ;;  %vm2060_vm9 = vcmp.gt.f32.partialorder %v2052_v54, 0.0  ;;  %v2068_v10 = vmul.f32 0.01, %v2052_v54 }
 0x86c   :  { %v2092_v62 = vmax.f32 %v2086_v12, %v2091_v19 }
 0x86d   :  { %v5822_v40 = vsel %vm2060_vm9, %v2052_v54, %v2068_v10 }
 0x86e   :  { %v2084_v29 = vsel %vm692_vm0, %v5822_v40, -1e+30  ;;  %v2097_v34 = vmax.f32 %v2090_v55, %v2092_v62  ;;  %vm6287_vm0 = vcmask 523264  }
 0x86f   :  { %v2095_v39 = vsel %vm791_vm5, %v2084_v29, -inf }
 0x870   :  { %v2096_v17 = vmax.f32 %v2088_v16, %v2095_v39 }
 0x872   :  { %v2098_v18 = vmax.f32 %v2094_v9, %v2096_v17 }
 0x874   :  { %v2099_v27 = vmax.f32 %v2097_v34, %v2098_v18 }
 0x876   :  { %v2100_v51 = vrot.slane %v2099_v27, 4 }
 0x878   :  { %v2101_v35 = vmax.f32 %v2099_v27, %v2100_v51 }
 0x87a   :  { %v2102_v61 = vrot.slane %v2101_v35, 2 }
 0x87c   :  { %v2103_v20 = vmax.f32 %v2101_v35, %v2102_v61 }
 0x87e   :  { %v2104_v1 = vrot.slane %v2103_v20, 1 }
 0x880   :  { %v2105_v2 = vmax.f32 %v2103_v20, %v2104_v1 }
 0x882   :  { %v2106_v54 = vmul.f32 %v5338_v24, %v2105_v2  ;;  %v2107_v49 = vmul.f32 %v5335_v23, %v2105_v2  ;;  %v2108_v19 = vmul.f32 %v5392_v6, %v2105_v2  ;;  %v2109_v50 = vmul.f32 %v5389_v5, %v2105_v2 }
 0x883   :  { %v2110_v25 = vmul.f32 %v5398_v8, %v2105_v2  ;;  %v2111_v30 = vmul.f32 %v5395_v7, %v2105_v2  ;;  %v2112_v62 = vmul.f32 %v5419_v15, %v2105_v2  ;;  %v2113_v21 = vmul.f32 %v5416_v14, %v2105_v2 }
 0x884   :  { %v2114_v37 = vsel %vm791_vm5, %v2106_v54, 0.0  ;;  %v2117_v46 = vsel %vm791_vm5, %v2107_v49, 0.0  ;;  %v2120_v10 = vsel %vm791_vm5, %v2108_v19, 0.0  ;;  %v2123_v32 = vsel %vm791_vm5, %v2109_v50, 0.0 }
 0x885   :  { %2115 = vadd.xlane.f32.xlu0 %v2114_v37  ;;  %v2126_v12 = vsel %vm791_vm5, %v2110_v25, 0.0  ;;  %v2129_v13 = vsel %vm791_vm5, %v2111_v30, 0.0  ;;  %v2132_v29 = vsel %vm791_vm5, %v2112_v62, 0.0  ;;  %v2135_v63 = vsel %vm791_vm5, %v2113_v21, 0.0 }
 0x889   :  { %2118 = vadd.xlane.f32.xlu0 %v2117_v46 }
 0x88d   :  { %2121 = vadd.xlane.f32.xlu0 %v2120_v10 }
 0x891   :  { %2124 = vadd.xlane.f32.xlu0 %v2123_v32 }
 0x895   :  { %2127 = vadd.xlane.f32.xlu0 %v2126_v12 }
 0x899   :  { %2130 = vadd.xlane.f32.xlu0 %v2129_v13 }
 0x89d   :  { %2133 = vadd.xlane.f32.xlu0 %v2132_v29 }
 0x8a1   :  { %2136 = vadd.xlane.f32.xlu0 %v2135_v63 }
 0x8be   :  { %v5847_v16 = vpop.f32.mrb[36].mxu0 }
 0x8bf   :  { %v5849_v39 = vpop.f32.mrb[37].mxu0 }
 0x8c0   :  { %v5851_v9 = vpop.f32.mrb[38].mxu0 }
 0x8c1   :  { %v5853_v55 = vpop.f32.mrb[39].mxu0 }
 0x8c6   :  { %v5855_v17 = vpop.f32.mrb[40].mxu0 }
 0x8c7   :  { %v5857_v34 = vpop.f32.mrb[41].mxu0 }
 0x8c8   :  { %v5859_v18 = vpop.f32.mrb[42].mxu0 }
 0x8c9   :  { %v5861_v27 = vpop.f32.mrb[43].mxu0 }
 0x912   :  { %v2116_v51 = vpop.xlane.xlu0 %2115 }
 0x913   :  { %v2138_v20 = vsub.f32 %v5791_v60, %v2116_v51 }
 0x915   :  { %v2146_v37 = vmul.f32 1.442695, %v2138_v20 }
 0x916   :  { %v2119_v35 = vpop.xlane.xlu0 %2118 }
 0x917   :  { %v2139_v61 = vsub.f32 %v5783_v33, %v2119_v35 }
 0x919   :  { %v2148_v54 = vmul.f32 1.442695, %v2139_v61 }
 0x91a   :  { %v2122_v1 = vpop.xlane.xlu0 %2121 }
 0x91b   :  { %v2140_v2 = vsub.f32 %v5789_v11, %v2122_v1  ;;  %4880 = vpow2.f32 %v2148_v54 }
 0x91c   :  { %4882 = vpow2.f32 %v2146_v37 }
 0x91d   :  { %v2150_v46 = vmul.f32 1.442695, %v2140_v2 }
 0x91e   :  { %v2125_v49 = vpop.xlane.xlu0 %2124 }
 0x91f   :  { %v2141_v19 = vsub.f32 %v5793_v42, %v2125_v49  ;;  %4884 = vpow2.f32 %v2150_v46 }
 0x921   :  { %v2152_v10 = vmul.f32 1.442695, %v2141_v19 }
 0x922   :  { %v2128_v50 = vpop.xlane.xlu0 %2127 }
 0x923   :  { %v2142_v32 = vsub.f32 %v5787_v38, %v2128_v50  ;;  %4886 = vpow2.f32 %v2152_v10 }
 0x925   :  { %v2154_v33 = vmul.f32 1.442695, %v2142_v32  ;;  %v5869_v30 = vpop.eup %4880 }
 0x926   :  { %v2131_v25 = vpop.xlane.xlu0 %2130  ;;  %v5872_v13 = vpop.eup %4882  ;;  %v2163_v38 = vmul.f32 %v5869_v30, %v5335_v23 }
 0x927   :  { %4888 = vpow2.f32 %v2154_v33  ;;  %v2143_v60 = vsub.f32 %v5798_v44, %v2131_v25  ;;  %v2162_v51 = vmul.f32 %v5872_v13, %v5338_v24 }
 0x928   :  { %v2171_v20 = vsel %vm791_vm5, %v2163_v38, 0.0 }
 0x929   :  { %v2156_v11 = vmul.f32 1.442695, %v2143_v60  ;;  %v5874_v62 = vpop.eup %4884  ;;  %v2170_v2 = vsel %vm791_vm5, %v2162_v51, 0.0 }
 0x92a   :  { %v2134_v12 = vpop.xlane.xlu0 %2133  ;;  %v2172_v49 = vadd.f32 %v2171_v20, %v2170_v2 }
 0x92b   :  { %4890 = vpow2.f32 %v2156_v11  ;;  %v2144_v42 = vsub.f32 %v5785_v59, %v2134_v12  ;;  %v2164_v59 = vmul.f32 %v5874_v62, %v5392_v6 }
 0x92d   :  { %v2158_v29 = vmul.f32 1.442695, %v2144_v42  ;;  %v5878_v63 = vpop.eup %4886  ;;  %v2173_v54 = vsel %vm791_vm5, %v2164_v59, 0.0 }
 0x92e   :  { %v2137_v21 = vpop.xlane.xlu0 %2136  ;;  %v2165_v1 = vmul.f32 %v5878_v63, %v5389_v5  ;;  %v2174_v10 = vadd.f32 %v2173_v54, %v2172_v49 }
 0x92f   :  { %4892 = vpow2.f32 %v2158_v29  ;;  %v2145_v44 = vsub.f32 %v5822_v40, %v2137_v21 }
 0x930   :  { %v2175_v46 = vsel %vm791_vm5, %v2165_v1, 0.0 }
 0x931   :  { %v5885_v35 = vpop.eup %4888  ;;  %v2160_v61 = vmul.f32 1.442695, %v2145_v44  ;;  %v2176_v33 = vadd.f32 %v2175_v46, %v2174_v10 }
 0x932   :  { %v2166_v40 = vmul.f32 %v5885_v35, %v5398_v8 }
 0x933   :  { %4894 = vpow2.f32 %v2160_v61 }
 0x934   :  { %v2177_v50 = vsel %vm791_vm5, %v2166_v40, 0.0 }
 0x935   :  { %v5894_v37 = vpop.eup %4890  ;;  %v2178_v11 = vadd.f32 %v2177_v50, %v2176_v33 }
 0x936   :  { %v2167_v19 = vmul.f32 %v5894_v37, %v5395_v7 }
 0x938   :  { %v2179_v25 = vsel %vm791_vm5, %v2167_v19, 0.0 }
 0x939   :  { %v5900_v32 = vpop.eup %4892  ;;  %v2180_v29 = vadd.f32 %v2179_v25, %v2178_v11 }
 0x93a   :  { %v2168_v60 = vmul.f32 %v5900_v32, %v5419_v15 }
 0x93c   :  { %v2181_v12 = vsel %vm791_vm5, %v2168_v60, 0.0 }
 0x93d   :  { %v5906_v42 = vpop.eup %4894  ;;  %v2182_v21 = vadd.f32 %v2181_v12, %v2180_v29 }
 0x93e   :  { %v2169_v38 = vmul.f32 %v5906_v42, %v5416_v14 }
 0x940   :  { %v2183_v44 = vsel %vm791_vm5, %v2169_v38, 0.0 }
 0x941   :  { %v2184_v51 = vadd.f32 %v2183_v44, %v2182_v21  ;;  %v562_v21 = vld [vmem:[%s6274_s5 + $0x38] sm:$0xff]  ;;  %v532_v44 = vld [vmem:[%s6271_s2 + $0x8] sm:$0xff] }
 0x943   :  { %v2185_v59 = vrot.slane %v2184_v51, 4 }
 0x945   :  { %v2186_v61 = vadd.f32 %v2185_v59, %v2184_v51  ;;  %v534_v51 = vld [vmem:[%s6271_s2 + $0x18] sm:$0xff]  ;;  %v555_v59 = vld [vmem:[%s6274_s5] sm:$0xff] }
 0x947   :  { %v2187_v20 = vrot.slane %v2186_v61, 2 }
 0x949   :  { %v2188_v1 = vadd.f32 %v2187_v20, %v2186_v61  ;;  %v536_v61 = vld [vmem:[%s6271_s2 + $0x28] sm:$0xff] }
 0x94a   :  { %v556_v20 = vld [vmem:[%s6274_s5 + $0x8] sm:$0xff] }
 0x94b   :  { %v2189_v2 = vrot.slane %v2188_v1, 1 }
 0x94d   :  { %v2190_v54 = vadd.f32 %v2189_v2, %v2188_v1  ;;  %v538_v1 = vld [vmem:[%s6271_s2 + $0x38] sm:$0xff]  ;;  %v564_v2 = vld [vmem:[%s6275_s6 + $0x8] sm:$0xff] }
 0x94f   :  { %v2195_v40 = vmul.f32 %v5398_v8, %v2190_v54  ;;  %v2191_v49 = vmul.f32 %v5338_v24, %v2190_v54  ;;  %v2192_v10 = vmul.f32 %v5335_v23, %v2190_v54  ;;  %v2193_v33 = vmul.f32 %v5392_v6, %v2190_v54  ;;  %v563_v23 = vld [vmem:[%s6275_s6] sm:$0xff] }
 0x950   :  { %v2194_v60 = vmul.f32 %v5389_v5, %v2190_v54  ;;  %v2196_v8 = vmul.f32 %v5395_v7, %v2190_v54  ;;  %v2197_v12 = vmul.f32 %v5419_v15, %v2190_v54  ;;  %v566_v5 = vld [vmem:[%s6275_s6 + $0x18] sm:$0xff]  ;;  %v2198_v29 = vmul.f32 %v5416_v14, %v2190_v54  ;;  %v560_v7 = vld [vmem:[%s6274_s5 + $0x28] sm:$0xff]  ;;  %v557_v54 = vld [vmem:[%s6274_s5 + $0x10] sm:$0xff] }
 0x951   :  { %v2211_v46 = vsel %vm791_vm5, %v2195_v40, 0.0  ;;  %v2199_v19 = vsel %vm791_vm5, %v2191_v49, 0.0  ;;  %v2202_v50 = vsel %vm791_vm5, %v2192_v10, 0.0  ;;  %v2205_v25 = vsel %vm791_vm5, %v2193_v33, 0.0  ;;  %v568_v15 = vld [vmem:[%s6275_s6 + $0x28] sm:$0xff]  ;;  %v570_v14 = vld [vmem:[%s6275_s6 + $0x38] sm:$0xff] }
 0x952   :  { %2212 = vadd.xlane.f32.xlu1 %v2211_v46  ;;  %2200 = vadd.xlane.f32.xlu0 %v2199_v19  ;;  %v2208_v24 = vsel %vm791_vm5, %v2194_v60, 0.0  ;;  %v2214_v11 = vsel %vm791_vm5, %v2196_v8, 0.0  ;;  %v2217_v6 = vsel %vm791_vm5, %v2197_v12, 0.0  ;;  %v2220_v38 = vsel %vm791_vm5, %v2198_v29, 0.0  ;;  %v558_v40 = vld [vmem:[%s6274_s5 + $0x18] sm:$0xff]  ;;  %v565_v49 = vld [vmem:[%s6275_s6 + $0x10] sm:$0xff] }
 0x953   :  { %v559_v46 = vld [vmem:[%s6274_s5 + $0x20] sm:$0xff]  ;;  %v561_v10 = vld [vmem:[%s6274_s5 + $0x30] sm:$0xff]  ;;  %v350_v8 = vld [vmem:[#allocation5 + $0x308] sm:$0xff] }
 0x954   :  { %v567_v19 = vld [vmem:[%s6275_s6 + $0x20] sm:$0xff]  ;;  %v356_v29 = vld [vmem:[#allocation5 + $0x338] sm:$0xff] }
 0x955   :  { %v531_v33 = vld [vmem:[%s6271_s2] sm:$0xff] }
 0x956   :  { %2203 = vadd.xlane.f32.xlu0 %v2202_v50  ;;  %v569_v50 = vld [vmem:[%s6275_s6 + $0x30] sm:$0xff]  ;;  %v535_v60 = vld [vmem:[%s6271_s2 + $0x20] sm:$0xff] }
 0x95a   :  { %2206 = vadd.xlane.f32.xlu0 %v2205_v25  ;;  %v533_v25 = vld [vmem:[%s6271_s2 + $0x10] sm:$0xff] }
 0x95e   :  { %2209 = vadd.xlane.f32.xlu0 %v2208_v24  ;;  %v537_v24 = vld [vmem:[%s6271_s2 + $0x30] sm:$0xff] }
 0x962   :  { %2215 = vadd.xlane.f32.xlu0 %v2214_v11  ;;  %v349_v11 = vld [vmem:[#allocation5 + $0x300] sm:$0xff] }
 0x963   :  { %2906 = vperm.xlu1 %4795, %v563_v23   ;;  %v353_v23 = vld [vmem:[#allocation5 + $0x320] sm:$0xff] }
 0x964   :  { %v2455_v12 = vpack.c.bf16 %v353_v23, %v350_v8 }
 0x966   :  { %2218 = vadd.xlane.f32.xlu0 %v2217_v6  ;;  %2490 = vmatprep.subr.bf16.mxu1 %v2455_v12 }
 0x967   :  { %2915 = vperm.xlu1 %4795, %v566_v5   ;;  %v352_v5 = vld [vmem:[#allocation5 + $0x318] sm:$0xff] }
 0x968   :  { %v2454_v6 = vpack.c.bf16 %v352_v5, %v349_v11 }
 0x96a   :  { %2221 = vadd.xlane.f32.xlu0 %v2220_v38  ;;  %v355_v38 = vld [vmem:[#allocation5 + $0x330] sm:$0xff]  ;;  %2491 = vmatpush1.bf16.msra.mxu1 %v2454_v6 }
 0x96b   :  { %2873 = vperm.xlu1 %4795, %v560_v7   ;;  %v359_v7 = vld [vmem:[#allocation5 + $0x350] sm:$0xff] }
 0x96f   :  { %2921 = vperm.xlu1 %4795, %v568_v15   ;;  %v2458_v15 = vpack.c.bf16 %v359_v7, %v356_v29 }
 0x971   :  { %2492 = vmatprep.subr.bf16.mxu1 %v2458_v15 }
 0x973   :  { %2879 = vperm.xlu1 %4795, %v562_v21   ;;  %v358_v21 = vld [vmem:[#allocation5 + $0x348] sm:$0xff] }
 0x977   :  { %2927 = vperm.xlu1 %4795, %v570_v14   ;;  %v2457_v14 = vpack.c.bf16 %v358_v21, %v355_v38  ;;  %v354_v21 = vld [vmem:[#allocation5 + $0x328] sm:$0xff] }
 0x979   :  { %2493 = vmatpush1.bf16.msra.mxu1 %v2457_v14 }
 0x97b   :  { %3063 = vperm.xlu1 %4795, %v532_v44   ;;  %v362_v44 = vld [vmem:[#allocation5 + $0x368] sm:$0xff] }
 0x97f   :  { %3073 = vperm.xlu1 %4795, %v534_v51   ;;  %v365_v51 = vld [vmem:[#allocation5 + $0x380] sm:$0xff] }
 0x980   :  { %2858 = vperm.xlu0 %4794, %v555_v59   ;;  %v2461_v59 = vpack.c.bf16 %v365_v51, %v362_v44  ;;  %v357_v51 = vld [vmem:[#allocation5 + $0x340] sm:$0xff] }
 0x982   :  { %2494 = vmatprep.subr.bf16.mxu1 %v2461_v59 }
 0x983   :  { %3083 = vperm.xlu1 %4795, %v536_v61  }
 0x984   :  { %2861 = vperm.xlu0 %4794, %v556_v20  }
 0x987   :  { %3093 = vperm.xlu1 %4795, %v538_v1  }
 0x988   :  { %2909 = vperm.xlu0 %4794, %v564_v2  }
 0x98c   :  { %2864 = vperm.xlu0 %4794, %v557_v54  }
 0x990   :  { %2867 = vperm.xlu0 %4794, %v558_v40  }
 0x994   :  { %2912 = vperm.xlu0 %4794, %v565_v49  }
 0x998   :  { %2870 = vperm.xlu0 %4794, %v559_v46  }
 0x99c   :  { %2918 = vperm.xlu0 %4794, %v567_v19  }
 0x9a0   :  { %2876 = vperm.xlu0 %4794, %v561_v10  }
 0x9a4   :  { %2924 = vperm.xlu0 %4794, %v569_v50  }
 0x9a8   :  { %3058 = vperm.xlu0 %4794, %v531_v33  }
 0x9ac   :  { %3068 = vperm.xlu0 %4794, %v533_v25  }
 0x9b0   :  { %3078 = vperm.xlu0 %4794, %v535_v60  }
 0x9b4   :  { %3088 = vperm.xlu0 %4794, %v537_v24  }
 0x9df   :  { %v2201_v61 = vpop.xlane.xlu0 %2200  ;;  %v2213_v2 = vpop.xlane.xlu1 %2212 }
 0x9e0   :  { %4896 = vrcp.f32 %v2201_v61  ;;  %v363_v61 = vld [vmem:[#allocation5 + $0x370] sm:$0xff] }
 0x9e3   :  { %v2204_v20 = vpop.xlane.xlu0 %2203 }
 0x9e4   :  { %4898 = vrcp.f32 %v2204_v20  ;;  %v366_v20 = vld [vmem:[#allocation5 + $0x388] sm:$0xff] }
 0x9e7   :  { %v2207_v1 = vpop.xlane.xlu0 %2206 }
 0x9e8   :  { %4900 = vrcp.f32 %v2207_v1  ;;  %v368_v1 = vld [vmem:[#allocation5 + $0x398] sm:$0xff] }
 0x9e9   :  { %4902 = vrcp.f32 %v2213_v2  ;;  %v371_v2 = vld [vmem:[#allocation5 + $0x3b0] sm:$0xff] }
 0x9ea   :  { %v4897_v54 = vpop.eup %4896 }
 0x9eb   :  { %v2210_v40 = vpop.xlane.xlu0 %2209  ;;  %v2231_v49 = vmul.f32 %v4897_v54, %v5872_v13  ;;  %v2464_v54 = vpack.c.bf16 %v371_v2, %v368_v1  ;;  %v400_v2 = vld [vmem:[#allocation5 + $0x490] sm:$0xff] }
 0x9ec   :  { %4904 = vrcp.f32 %v2210_v40  ;;  %v367_v40 = vld [vmem:[#allocation5 + $0x390] sm:$0xff] }
 0x9ed   :  { %v2367_v50 = vmul.f32 %v5849_v39, %v2231_v49  ;;  %v370_v49 = vld [vmem:[#allocation5 + $0x3a8] sm:$0xff] }
 0x9ee   :  { %v4899_v46 = vpop.eup %4898 }
 0x9ef   :  { %v2216_v19 = vpop.xlane.xlu0 %2215  ;;  %v2232_v10 = vmul.f32 %v4899_v46, %v5869_v30  ;;  %v369_v46 = vld [vmem:[#allocation5 + $0x3a0] sm:$0xff] }
 0x9f0   :  { %4906 = vrcp.f32 %v2216_v19  ;;  %v2463_v19 = vpack.c.bf16 %v370_v49, %v367_v40 }
 0x9f1   :  { %v2368_v33 = vmul.f32 %v5853_v55, %v2232_v10 }
 0x9f2   :  { %v4901_v25 = vpop.eup %4900 }
 0x9f3   :  { %v2219_v60 = vpop.xlane.xlu0 %2218  ;;  %v2375_v24 = vpack.c.bf16 %v2368_v33, %v2367_v50  ;;  %v4903_v8 = vpop.eup %4902  ;;  %v2233_v23 = vmul.f32 %v4901_v25, %v5874_v62  ;;  %v374_v50 = vld [vmem:[#allocation5 + $0x3c8] sm:$0xff]  ;;  %v377_v33 = vld [vmem:[#allocation5 + $0x3e0] sm:$0xff] }
 0x9f4   :  { %4908 = vrcp.f32 %v2219_v60  ;;  %v2235_v55 = vmul.f32 %v4903_v8, %v5885_v35  ;;  %v351_v35 = vld [vmem:[#allocation5 + $0x310] sm:$0xff]  ;;  %v2467_v25 = vpack.c.bf16 %v377_v33, %v374_v50  ;;  %v373_v60 = vld [vmem:[#allocation5 + $0x3c0] sm:$0xff] }
 0x9f5   :  { %4558 = vmatprep.subr.bf16.mxu0 %v2375_v24  ;;  %v2369_v30 = vmul.f32 %v5847_v16, %v2233_v23  ;;  %v375_v8 = vld [vmem:[#allocation5 + $0x3d0] sm:$0xff] }
 0x9f6   :  { %v4905_v11 = vpop.eup %4904  ;;  %4559 = vmatpush3.bf16.msra.mxu0 %v2375_v24  ;;  %v2371_v7 = vmul.f32 %v5857_v34, %v2235_v55  ;;  %v2456_v34 = vpack.c.bf16 %v354_v21, %v351_v35  ;;  %v376_v24 = vld [vmem:[#allocation5 + $0x3d8] sm:$0xff]  ;;  %v379_v55 = vld [vmem:[#allocation5 + $0x3f0] sm:$0xff] }
 0x9f7   :  { %v2222_v13 = vpop.xlane.xlu0 %2221  ;;  %v2234_v12 = vmul.f32 %v4905_v11, %v5878_v63  ;;  %v2466_v23 = vpack.c.bf16 %v376_v24, %v373_v60  ;;  %v378_v11 = vld [vmem:[#allocation5 + $0x3e8] sm:$0xff]  ;;  %v387_v35 = vld [vmem:[#allocation5 + $0x430] sm:$0xff] }
 0x9f8   :  { %4910 = vrcp.f32 %v2222_v13  ;;  %v2468_v13 = vpack.c.bf16 %v378_v11, %v375_v8 }
 0x9f9   :  { %v2370_v39 = vmul.f32 %v5851_v9, %v2234_v12  ;;  %v380_v12 = vld [vmem:[#allocation5 + $0x3f8] sm:$0xff] }
 0x9fa   :  { %v4907_v5 = vpop.eup %4906 }
 0x9fb   :  { %v2376_v6 = vpack.c.bf16 %v2370_v39, %v2369_v30  ;;  %v2236_v29 = vmul.f32 %v4907_v5, %v5894_v37  ;;  %v383_v30 = vld [vmem:[#allocation5 + $0x410] sm:$0xff]  ;;  %v382_v5 = vld [vmem:[#allocation5 + $0x408] sm:$0xff] }
 0x9fc   :  { %v2470_v39 = vpack.c.bf16 %v383_v30, %v380_v12 }
 0x9fd   :  { %4560 = vmatprep.subr.bf16.mxu0 %v2376_v6  ;;  %v2372_v62 = vmul.f32 %v5861_v27, %v2236_v29  ;;  %v360_v27 = vld [vmem:[#allocation5 + $0x358] sm:$0xff]  ;;  %v2469_v29 = vpack.c.bf16 %v382_v5, %v379_v55 }
 0x9fe   :  { %v4909_v38 = vpop.eup %4908  ;;  %4561 = vmatpush3.bf16.msra.mxu0 %v2376_v6  ;;  %v2459_v59 = vpack.c.bf16 %v360_v27, %v357_v51  ;;  %v381_v6 = vld [vmem:[#allocation5 + $0x400] sm:$0xff]  ;;  %v391_v27 = vld [vmem:[#allocation5 + $0x450] sm:$0xff] }
 0x9ff   :  { %v2377_v15 = vpack.c.bf16 %v2372_v62, %v2371_v7  ;;  %v2237_v63 = vmul.f32 %v4909_v38, %v5900_v32  ;;  %v361_v32 = vld [vmem:[#allocation5 + $0x360] sm:$0xff]  ;;  %v384_v7 = vld [vmem:[#allocation5 + $0x418] sm:$0xff]  ;;  %v386_v38 = vld [vmem:[#allocation5 + $0x428] sm:$0xff] }
 0xa00   :  { %v2471_v62 = vpack.c.bf16 %v384_v7, %v381_v6  ;;  %v398_v6 = vld [vmem:[#allocation5 + $0x480] sm:$0xff] }
 0xa01   :  { %4562 = vmatprep.subr.bf16.mxu0 %v2377_v15  ;;  %v2373_v14 = vmul.f32 %v5855_v17, %v2237_v63 }
 0xa02   :  { %v4911_v16 = vpop.eup %4910  ;;  %4563 = vmatpush3.bf16.msra.mxu0 %v2377_v15  ;;  %v389_v15 = vld [vmem:[#allocation5 + $0x440] sm:$0xff] }
 0xa03   :  { %v2238_v9 = vmul.f32 %v4911_v16, %v5906_v42  ;;  %v364_v42 = vld [vmem:[#allocation5 + $0x378] sm:$0xff]  ;;  %v2473_v63 = vpack.c.bf16 %v389_v15, %v386_v38  ;;  %v385_v16 = vld [vmem:[#allocation5 + $0x420] sm:$0xff] }
 0xa04   :  { %v2460_v17 = vpack.c.bf16 %v364_v42, %v361_v32  ;;  %v393_v32 = vld [vmem:[#allocation5 + $0x460] sm:$0xff] }
 0xa05   :  { %v2374_v37 = vmul.f32 %v5859_v18, %v2238_v9  ;;  %v2462_v18 = vpack.c.bf16 %v366_v20, %v363_v61  ;;  %v388_v9 = vld [vmem:[#allocation5 + $0x438] sm:$0xff]  ;;  %v399_v20 = vld [vmem:[#allocation5 + $0x488] sm:$0xff] }
 0xa06   :  { %2495 = vmatpush1.bf16.msra.mxu1 %v2460_v17  ;;  %v2472_v21 = vpack.c.bf16 %v388_v9, %v385_v16  ;;  %v396_v61 = vld [vmem:[#allocation5 + $0x478] sm:$0xff]  ;;  %v406_v16 = vld [vmem:[#allocation5 + $0x4c0] sm:$0xff] }
 0xa07   :  { %v2378_v44 = vpack.c.bf16 %v2374_v37, %v2373_v14  ;;  %2496 = vmatprep.subr.bf16.mxu1 %v2464_v54  ;;  %v390_v14 = vld [vmem:[#allocation5 + $0x448] sm:$0xff]  ;;  %v2477_v17 = vpack.c.bf16 %v396_v61, %v393_v32  ;;  %v409_v9 = vld [vmem:[#allocation5 + $0x4d8] sm:$0xff]  ;;  %v412_v61 = vld [vmem:[#allocation5 + $0x4f0] sm:$0xff] }
 0xa08   :  { %v2474_v37 = vpack.c.bf16 %v390_v14, %v387_v35  ;;  %v403_v54 = vld [vmem:[#allocation5 + $0x4a8] sm:$0xff] }
 0xa09   :  { %4564 = vmatprep.subr.bf16.mxu0 %v2378_v44  ;;  %v2594_v40 = vpack.c.bf16 %v403_v54, %v400_v2  ;;  %v411_v32 = vld [vmem:[#allocation5 + $0x4e8] sm:$0xff]  ;;  %v413_v2 = vld [vmem:[#allocation5 + $0x4f8] sm:$0xff] }
 0xa0a   :  { %4565 = vmatpush3.bf16.msra.mxu0 %v2378_v44  ;;  %2497 = vmatpush1.bf16.msra.mxu1 %v2463_v19  ;;  %v392_v44 = vld [vmem:[#allocation5 + $0x458] sm:$0xff] }
 0xa0b   :  { %4570 = vmatprep.subr.bf16.mxu0 %v2456_v34  ;;  %2498 = vmatprep.subr.bf16.mxu1 %v2467_v25 }
 0xa0d   :  { %4567 = vmatmul.mubr.msk.bf16.vlgmr.msra.gmra.mrb[44].mxu0 %vm6287_vm0, %v5668_v47  ;;  %v372_v47 = vld [vmem:[#allocation5 + $0x3b8] sm:$0xff] }
 0xa0e   :  { %4571 = vmatpush3.bf16.msra.mxu0 %v2456_v34  ;;  %v2465_v10 = vpack.c.bf16 %v372_v47, %v369_v46  ;;  %2499 = vmatpush1.bf16.msra.mxu1 %v2466_v23  ;;  %v395_v34 = vld [vmem:[#allocation5 + $0x470] sm:$0xff] }
 0xa0f   :  { %4572 = vmatprep.subr.bf16.mxu0 %v2459_v59  ;;  %2500 = vmatprep.subr.bf16.mxu1 %v2470_v39  ;;  %v2476_v51 = vpack.c.bf16 %v395_v34, %v392_v44  ;;  %v404_v34 = vld [vmem:[#allocation5 + $0x4b0] sm:$0xff] }
 0xa12   :  { %4573 = vmatpush3.bf16.msra.mxu0 %v2459_v59  ;;  %2501 = vmatpush1.bf16.msra.mxu1 %v2469_v29  ;;  %v394_v59 = vld [vmem:[#allocation5 + $0x468] sm:$0xff]  ;;  %v401_v29 = vld [vmem:[#allocation5 + $0x498] sm:$0xff] }
 0xa13   :  { %4574 = vmatprep.subr.bf16.mxu0 %v2462_v18  ;;  %2502 = vmatprep.subr.bf16.mxu1 %v2473_v63  ;;  %v2475_v42 = vpack.c.bf16 %v394_v59, %v391_v27  ;;  %v408_v63 = vld [vmem:[#allocation5 + $0x4d0] sm:$0xff]  ;;  %v2597_v59 = vpack.c.bf16 %v409_v9, %v406_v16  ;;  %v431_v16 = vld [vmem:[#allocation5 + $0x588] sm:$0xff] }
 0xa16   :  { %4575 = vmatpush3.bf16.msra.mxu0 %v2462_v18  ;;  %2503 = vmatpush1.bf16.msra.mxu1 %v2472_v21  ;;  %v402_v18 = vld [vmem:[#allocation5 + $0x4a0] sm:$0xff] }
 0xa17   :  { %4576 = vmatprep.subr.bf16.mxu0 %v2465_v10  ;;  %2504 = vmatprep.subr.bf16.mxu1 %v2476_v51  ;;  %v2593_v1 = vpack.c.bf16 %v402_v18, %v399_v20  ;;  %v407_v51 = vld [vmem:[#allocation5 + $0x4c8] sm:$0xff] }
 0xa18   :  { %v2595_v20 = vpack.c.bf16 %v407_v51, %v404_v34  ;;  %v434_v51 = vld [vmem:[#allocation5 + $0x5a0] sm:$0xff] }
 0xa1a   :  { %4577 = vmatpush3.bf16.msra.mxu0 %v2465_v10  ;;  %2505 = vmatpush1.bf16.msra.mxu1 %v2475_v42  ;;  %v414_v42 = vld [vmem:[#allocation5 + $0x500] sm:$0xff] }
 0xa1b   :  { %4578 = vmatprep.subr.bf16.mxu0 %v2468_v13  ;;  %2628 = vmatprep.subr.bf16.mxu1 %v2593_v1  ;;  %v2599_v18 = vpack.c.bf16 %v414_v42, %v411_v32  ;;  %v410_v1 = vld [vmem:[#allocation5 + $0x4e0] sm:$0xff]  ;;  %v441_v42 = vld [vmem:[#allocation5 + $0x5d8] sm:$0xff] }
 0xa1e   :  { %4579 = vmatpush3.bf16.msra.mxu0 %v2468_v13 }
 0xa1f   :  { %4580 = vmatprep.subr.bf16.mxu0 %v2471_v62 }
 0xa22   :  { %4581 = vmatpush3.bf16.msra.mxu0 %v2471_v62  ;;  %v405_v62 = vld [vmem:[#allocation5 + $0x4b8] sm:$0xff] }
 0xa23   :  { %4582 = vmatprep.subr.bf16.mxu0 %v2474_v37  ;;  %v2596_v27 = vpack.c.bf16 %v408_v63, %v405_v62  ;;  %v428_v63 = vld [vmem:[#allocation5 + $0x570] sm:$0xff] }
 0xa26   :  { %4583 = vmatpush3.bf16.msra.mxu0 %v2474_v37  ;;  %v2592_v37 = vpack.c.bf16 %v401_v29, %v398_v6  ;;  %v432_v6 = vld [vmem:[#allocation5 + $0x590] sm:$0xff]  ;;  %v430_v29 = vld [vmem:[#allocation5 + $0x580] sm:$0xff] }
 0xa27   :  { %4584 = vmatprep.subr.bf16.mxu0 %v2477_v17 }
 0xa2a   :  { %4585 = vmatpush3.bf16.msra.mxu0 %v2477_v17  ;;  %v415_v17 = vld [vmem:[#allocation5 + $0x508] sm:$0xff] }
 0xa2b   :  { %4590 = vmatprep.subr.bf16.mxu0 %v2594_v40  ;;  %v2600_v54 = vpack.c.bf16 %v415_v17, %v412_v61  ;;  %v444_v61 = vld [vmem:[#allocation5 + $0x5f0] sm:$0xff]  ;;  %v442_v17 = vld [vmem:[#allocation5 + $0x5e0] sm:$0xff] }
 0xae0   :  { %v4568_v49 = vpop.f32.mrb[44].mxu0 }
 0xae1   :  { %v2434_v46 = vmin.f32 %v4568_v49, 0.0  ;;  %v2413_v19 = vpop.f32.mrb[45].mxu0  ;;  %vm2430_vm1 = vcmp.gt.f32.partialorder %v4568_v49, 0.0 }
 0xae2   :  { %v2432_v47 = vmin.f32 %v2413_v19, 0.0  ;;  %v4569_v10 = vpop.f32.mrb[46].mxu0  ;;  %vm2428_vm3 = vcmp.gt.f32.partialorder %v2413_v19, 0.0 }
 0xae3   :  { %v2440_v50 = vmul.f32 1.442695, %v2434_v46  ;;  %v2435_v33 = vmin.f32 %v4569_v10, 0.0  ;;  %v2416_v25 = vpop.f32.mrb[47].mxu0  ;;  %vm2431_vm2 = vcmp.gt.f32.partialorder %v4569_v10, 0.0  ;;  %v420_v46 = vld [vmem:[#allocation5 + $0x530] sm:$0xff] }
 0xae4   :  { %v2436_v60 = vmul.f32 1.442695, %v2432_v47  ;;  %v2433_v24 = vmin.f32 %v2416_v25, 0.0  ;;  %vm2429_vm4 = vcmp.gt.f32.partialorder %v2416_v25, 0.0  ;;  %v421_v47 = vld [vmem:[#allocation5 + $0x538] sm:$0xff] }
 0xae5   :  { %4912 = vpow2.f32 %v2440_v50  ;;  %v2442_v8 = vmul.f32 1.442695, %v2435_v33  ;;  %v419_v33 = vld [vmem:[#allocation5 + $0x528] sm:$0xff] }
 0xae6   :  { %4914 = vpow2.f32 %v2436_v60  ;;  %v2438_v23 = vmul.f32 1.442695, %v2433_v24  ;;  %v423_v24 = vld [vmem:[#allocation5 + $0x548] sm:$0xff] }
 0xae7   :  { %4916 = vpow2.f32 %v2442_v8  ;;  %v426_v8 = vld [vmem:[#allocation5 + $0x560] sm:$0xff] }
 0xae8   :  { %4918 = vpow2.f32 %v2438_v23  ;;  %v424_v23 = vld [vmem:[#allocation5 + $0x550] sm:$0xff] }
 0xaef   :  { %v4913_v11 = vpop.eup %4912 }
 0xaf0   :  { %v4915_v13 = vpop.eup %4914  ;;  %v4118_v12 = vadd.f32 -1.0, %v4913_v11  ;;  %v427_v11 = vld [vmem:[#allocation5 + $0x568] sm:$0xff] }
 0xaf1   :  { %v4917_v30 = vpop.eup %4916  ;;  %v4116_v39 = vadd.f32 -1.0, %v4915_v13 }
 0xaf2   :  { %v4919_v55 = vpop.eup %4918  ;;  %v4119_v5 = vadd.f32 -1.0, %v4917_v30  ;;  %v2450_v38 = vsel %vm2430_vm1, %v4568_v49, %v4118_v12  ;;  %v417_v49 = vld [vmem:[#allocation5 + $0x518] sm:$0xff]  ;;  %v2605_v12 = vpack.c.bf16 %v426_v8, %v423_v24  ;;  %v422_v30 = vld [vmem:[#allocation5 + $0x540] sm:$0xff] }
 0xaf3   :  { %v4117_v7 = vadd.f32 -1.0, %v4919_v55  ;;  %v2448_v35 = vsel %vm2428_vm3, %v2413_v19, %v4116_v39  ;;  %v418_v19 = vld [vmem:[#allocation5 + $0x520] sm:$0xff]  ;;  %v2602_v50 = vpack.c.bf16 %v420_v46, %v417_v49  ;;  %v425_v39 = vld [vmem:[#allocation5 + $0x558] sm:$0xff]  ;;  %v2606_v55 = vpack.c.bf16 %v427_v11, %v424_v23  ;;  %v2907_v49 = vpop.permute.xlu1 %2906 }
 0xaf4   :  { %v2451_v15 = vsel %vm2431_vm2, %v4569_v10, %v4119_v5  ;;  %v2598_v10 = vpack.c.bf16 %v413_v2, %v410_v1  ;;  %v2603_v60 = vpack.c.bf16 %v421_v47, %v418_v19  ;;  %v429_v5 = vld [vmem:[#allocation5 + $0x578] sm:$0xff]  ;;  %v2614_v1 = vpack.c.bf16 %v444_v61, %v441_v42  ;;  %v440_v2 = vld [vmem:[#allocation5 + $0x5d0] sm:$0xff] }
 0xaf5   :  { %v2453_v21 = vpack.c.bf16 %v2451_v15, %v2450_v38  ;;  %v2449_v14 = vsel %vm2429_vm4, %v2416_v25, %v4117_v7  ;;  %v6019_v25 = vpop.permute.xlu0 %2858  ;;  %v433_v7 = vld [vmem:[#allocation5 + $0x598] sm:$0xff]  ;;  %v2604_v38 = vpack.c.bf16 %v425_v39, %v422_v30  ;;  %v2608_v15 = vpack.c.bf16 %v432_v6, %v429_v5  ;;  %v167_v6 = vld [vmem:[#allocation2 + $0x180] sm:$0xff] }
 0xaf6   :  { %v2452_v44 = vpack.c.bf16 %v2449_v14, %v2448_v35  ;;  %v2609_v9 = vpack.c.bf16 %v433_v7, %v430_v29  ;;  %v435_v35 = vld [vmem:[#allocation5 + $0x5a8] sm:$0xff]  ;;  %v436_v14 = vld [vmem:[#allocation5 + $0x5b0] sm:$0xff]  ;;  %vm2881_vm7 = vcmp.eq.s32.totalorder %v5300_v48, %v6019_v25  ;;  %vm2929_vm10 = vcmp.eq.s32.totalorder %v5300_v48, %v2907_v49 }
 0xaf7   :  { %v168_v29 = vld [vmem:[#allocation2 + $0x188] sm:$0xff]  ;;  %v169_v7 = vld [vmem:[#allocation2 + $0x190] sm:$0xff] }
 0xaf8   :  { %2523 = vmatmul.mubr.bf16.vlgmr.msra.gmra.mrb[40].mxu1 %v2452_v44  ;;  %4586 = vmatprep.mubr.bf16.mxu0 %v2452_v44  ;;  %v2607_v44 = vpack.c.bf16 %v431_v16, %v428_v63  ;;  %v3048_v63 = vpack.c.bf16 %v168_v29, %v167_v6  ;;  %v170_v16 = vld [vmem:[#allocation2 + $0x198] sm:$0xff] }
 0xaf9   :  { %2629 = vmatpush1.bf16.msra.mxu1 %v2592_v37  ;;  %4587 = vmatmul.mubr.bf16.vlgmr.msra.gmra.mrb[48].mxu0 %v2453_v21  ;;  %v2862_v62 = vpop.permute.xlu0 %2861  ;;  %v439_v37 = vld [vmem:[#allocation5 + $0x5c8] sm:$0xff]  ;;  %v178_v6 = vld [vmem:[#allocation2 + $0x1d8] sm:$0xff] }
 0xafa   :  { %4591 = vmatpush3.bf16.msra.mxu0 %v2594_v40  ;;  %4606 = vmatprep.mubr.bf16.mxu0 %v5726_v57  ;;  %v416_v40 = vld [vmem:[#allocation5 + $0x510] sm:$0xff]  ;;  %v2612_v32 = vpack.c.bf16 %v439_v37, %v436_v14  ;;  %vm2882_vm13 = vcmp.eq.s32.totalorder %v5300_v48, %v2862_v62  ;;  %v171_v14 = vld [vmem:[#allocation2 + $0x1a0] sm:$0xff]  ;;  %v172_v37 = vld [vmem:[#allocation2 + $0x1a8] sm:$0xff] }
 0xafb   :  { %2630 = vmatprep.subr.bf16.mxu1 %v2596_v27  ;;  %4592 = vmatprep.subr.bf16.mxu0 %v2597_v59  ;;  %v2601_v13 = vpack.c.bf16 %v419_v33, %v416_v40  ;;  %v437_v27 = vld [vmem:[#allocation5 + $0x5b8] sm:$0xff]  ;;  %v4128_v33 = vsel %vm2929_vm10, 1.0, %v5076_v58  ;;  %v3050_v61 = vpack.c.bf16 %v172_v37, %v171_v14  ;;  %v179_v37 = vld [vmem:[#allocation2 + $0x1e0] sm:$0xff] }
 0xafc   :  { %2532 = vmatprep.mubr.bf16.mxu1 %v5074_v3 }
 0xafd   :  { %2631 = vmatpush1.bf16.msra.mxu1 %v2595_v20  ;;  %v445_v20 = vld [vmem:[#allocation5 + $0x5f8] sm:$0xff] }
 0xafe   :  { %4593 = vmatpush3.bf16.msra.mxu0 %v2597_v59  ;;  %2632 = vmatprep.subr.bf16.mxu1 %v2599_v18  ;;  %v2910_v59 = vpop.permute.xlu0 %2909  ;;  %v2610_v18 = vpack.c.bf16 %v437_v27, %v434_v51  ;;  %v2615_v46 = vpack.c.bf16 %v445_v20, %v442_v17  ;;  %v173_v20 = vld [vmem:[#allocation2 + $0x1b0] sm:$0xff] }
 0xaff   :  { %4594 = vmatprep.subr.bf16.mxu0 %v2600_v54  ;;  %vm2930_vm6 = vcmp.eq.s32.totalorder %v5300_v48, %v2910_v59 }
 0xb00   :  { %2533 = vmatmul.mubr.bf16.gmra.mrb[44].mxu1 %v2453_v21  ;;  %v438_v21 = vld [vmem:[#allocation5 + $0x5c0] sm:$0xff]  ;;  %v4129_v19 = vsel %vm2930_vm6, 1.0, %v5076_v58 }
 0xb01   :  { %2633 = vmatpush1.bf16.msra.mxu1 %v2598_v10  ;;  %2660 = vmatprep.mubr.bf16.mxu1 %v5074_v3  ;;  %v2611_v34 = vpack.c.bf16 %v438_v21, %v435_v35  ;;  %v4120_v10 = vsel %vm2881_vm7, 1.0, %v5076_v58  ;;  %v3049_v21 = vpack.c.bf16 %v170_v16, %v169_v7 }
 0xb02   :  { %4595 = vmatpush3.bf16.msra.mxu0 %v2600_v54  ;;  %2634 = vmatprep.subr.bf16.mxu1 %v2602_v50  ;;  %v443_v54 = vld [vmem:[#allocation5 + $0x5e8] sm:$0xff]  ;;  %v4121_v50 = vsel %vm2882_vm13, 1.0, %v5076_v58  ;;  %v2953_v25 = vadd.f32 %v4128_v33, %v4120_v10  ;;  %v175_v10 = vld [vmem:[#allocation2 + $0x1c0] sm:$0xff] }
 0xb03   :  { %4596 = vmatprep.subr.bf16.mxu0 %v2603_v60  ;;  %v2613_v47 = vpack.c.bf16 %v443_v54, %v440_v2  ;;  %v2954_v40 = vadd.f32 %v4129_v19, %v4121_v50  ;;  %v176_v50 = vld [vmem:[#allocation2 + $0x1c8] sm:$0xff] }
 0xb05   :  { %2635 = vmatpush1.bf16.msra.mxu1 %v2601_v13 }
 0xb06   :  { %4597 = vmatpush3.bf16.msra.mxu0 %v2603_v60  ;;  %2636 = vmatprep.subr.bf16.mxu1 %v2605_v12  ;;  %v2961_v60 = vpack.c.bf16 %v2954_v40, %v2953_v25 }
 0xb07   :  { %4598 = vmatprep.subr.bf16.mxu0 %v2606_v55 }
 0xb09   :  { %2637 = vmatpush1.bf16.msra.mxu1 %v2604_v38 }
 0xb0a   :  { %4599 = vmatpush3.bf16.msra.mxu0 %v2606_v55  ;;  %2638 = vmatprep.subr.bf16.mxu1 %v2608_v15 }
 0xb0b   :  { %4600 = vmatprep.subr.bf16.mxu0 %v2609_v9 }
 0xb0d   :  { %2639 = vmatpush1.bf16.msra.mxu1 %v2607_v44 }
 0xb0e   :  { %4601 = vmatpush3.bf16.msra.mxu0 %v2609_v9  ;;  %2640 = vmatprep.subr.bf16.mxu1 %v2611_v34 }
 0xb0f   :  { %4602 = vmatprep.subr.bf16.mxu0 %v2612_v32 }
 0xb11   :  { %2641 = vmatpush1.bf16.msra.mxu1 %v2610_v18  ;;  %v174_v18 = vld [vmem:[#allocation2 + $0x1b8] sm:$0xff] }
 0xb12   :  { %4603 = vmatpush3.bf16.msra.mxu0 %v2612_v32  ;;  %2642 = vmatprep.subr.bf16.mxu1 %v2614_v1 }
 0xb13   :  { %4604 = vmatprep.subr.bf16.mxu0 %v2615_v46 }
 0xb15   :  { %2643 = vmatpush1.bf16.msra.mxu1 %v2613_v47 }
 0xb16   :  { %4605 = vmatpush3.bf16.msra.mxu0 %v2615_v46  ;;  %4622 = vmatprep.subr.bf16.mxu1 %v3048_v63  ;;  %v3051_v46 = vpack.c.bf16 %v174_v18, %v173_v20 }
 0xb18   :  { %2661 = vmatmul.mubr.bf16.vlgmr.msra.gmra.mrb[40].mxu1 %v5726_v57  ;;  %v6047_v57 = vld [vmem:[%s6280_s11 + $0x18] sm:$0xff] }
 0xb19   :  { %4607 = vmatmul.mubr.bf16.vlgmr.msra.gmra.mrb[52].mxu0 %v5740_v45  ;;  %2670 = vmatprep.mubr.bf16.mxu1 %v5074_v3  ;;  %v2481_v3 = vrot.slane %v6047_v57, %v5352_v36  ;;  %v2619_v13 = vrot.slane %v6047_v57, %v5446_v52 }
 0xb1a   :  { %4614 = vmatprep.mubr.msk.bf16.mxu0 %vm791_vm5, %v2961_v60  ;;  %4623 = vmatpush3.bf16.msra.mxu1 %v3048_v63  ;;  %v104_v60 = vld [vmem:[%s6280_s11 + $0x28] sm:$0xff] }
 0xb1b   :  { %v4750_v39 = vadd.f32 %v2619_v13, %v2481_v3  ;;  %4624 = vmatprep.subr.bf16.mxu1 %v3049_v21 }
 0xb1e   :  { %4625 = vmatpush3.bf16.msra.mxu1 %v3049_v21 }
 0xb1f   :  { %4626 = vmatprep.subr.bf16.mxu1 %v3050_v61 }
 0xb20   :  { %2671 = vmatmul.mubr.bf16.gmra.mrb[44].mxu1 %v5740_v45  ;;  %v103_v45 = vld [vmem:[%s6280_s11 + $0x20] sm:$0xff] }
 0xb21   :  { %v2485_v12 = vrot.slane %v103_v45, %v5352_v36  ;;  %v2623_v30 = vrot.slane %v103_v45, %v5446_v52  ;;  %v3052_v45 = vpack.c.bf16 %v176_v50, %v175_v10 }
 0xb22   :  { %4627 = vmatpush3.bf16.msra.mxu1 %v3050_v61 }
 0xb23   :  { %v4752_v5 = vadd.f32 %v2623_v30, %v2485_v12  ;;  %4628 = vmatprep.subr.bf16.mxu1 %v3051_v46  ;;  %v2627_v12 = vrot.slane %v104_v60, %v5446_v52 }
 0xb26   :  { %4629 = vmatpush3.bf16.msra.mxu1 %v3051_v46 }
 0xb27   :  { %4630 = vmatprep.subr.bf16.mxu1 %v3052_v45 }
 0xb2a   :  { %4631 = vmatpush3.bf16.msra.mxu1 %v3052_v45 }
 0xbcc   :  { %v6036_v24 = vpop.f32.mrb[48].mxu0 }
 0xbcd   :  { %v6038_v8 = vpop.f32.mrb[49].mxu0 }
 0xbce   :  { %v6040_v23 = vpop.f32.mrb[50].mxu0 }
 0xbcf   :  { %v6042_v11 = vpop.f32.mrb[51].mxu0 }
 0xbeb   :  { %v2662_v55 = vpop.f32.mrb[40].mxu1 }
 0xbec   :  { %v4751_v62 = vadd.f32 %v4750_v39, %v2662_v55  ;;  %v2664_v38 = vpop.f32.mrb[41].mxu1  ;;  %v6058_v15 = vpop.f32.mrb[52].mxu0  ;;  %v177_v55 = vld [vmem:[#allocation2 + $0x1d0] sm:$0xff] }
 0xbed   :  { %v2666_v9 = vpop.f32.mrb[42].mxu1  ;;  %v2715_v35 = vpop.f32.mrb[53].mxu0  ;;  %v4753_v59 = vadd.f32 %v4752_v5, %v2664_v38  ;;  %v3053_v63 = vpack.c.bf16 %v178_v6, %v177_v55 }
 0xbee   :  { %v2734_v44 = vmul.f32 0.5, %v4751_v62  ;;  %v4755_v34 = vadd.f32 %v4750_v39, %v2666_v9  ;;  %v2668_v51 = vpop.f32.mrb[43].mxu1  ;;  %v6060_v27 = vpop.f32.mrb[54].mxu0  ;;  %v2716_v9 = vadd.f32 %v2715_v35, %v2627_v12 }
 0xbef   :  { %v2718_v32 = vpop.f32.mrb[55].mxu0  ;;  %v4757_v17 = vadd.f32 %v4752_v5, %v2668_v51  ;;  %v2754_v1 = vmul.f32 0.5, %v4753_v59  ;;  %4632 = vmatprep.subr.bf16.mxu1 %v3053_v63  ;;  %v2727_v10 = vadd.f32 %v6060_v27, %v2627_v12 }
 0xbf0   :  { %4920 = vtanh.f32 %v2734_v44  ;;  %v2735_v42 = vmul.f32 0.5, %v4755_v34  ;;  %v180_v44 = vld [vmem:[#allocation2 + $0x1e8] sm:$0xff]  ;;  %v2719_v51 = vadd.f32 %v2718_v32, %v2627_v12  ;;  %4633 = vmatpush3.bf16.msra.mxu1 %v3053_v63  ;;  %v2724_v32 = vadd.f32 %v6058_v15, %v2627_v12 }
 0xbf1   :  { %v2755_v19 = vmul.f32 0.5, %v4757_v17 }
 0xbf2   :  { %4922 = vtanh.f32 %v2735_v42  ;;  %v3054_v42 = vpack.c.bf16 %v180_v44, %v179_v37 }
 0xbf3   :  { %v2672_v2 = vpop.f32.mrb[44].mxu1  ;;  %4924 = vtanh.f32 %v2754_v1 }
 0xbf4   :  { %v4759_v54 = vadd.f32 %v4750_v39, %v2672_v2  ;;  %v2674_v49 = vpop.f32.mrb[45].mxu1  ;;  %4634 = vmatprep.subr.bf16.mxu1 %v3054_v42 }
 0xbf5   :  { %v2676_v47 = vpop.f32.mrb[46].mxu1  ;;  %v4761_v3 = vadd.f32 %v4752_v5, %v2674_v49  ;;  %4635 = vmatpush3.bf16.msra.mxu1 %v3054_v42 }
 0xbf6   :  { %v2736_v40 = vmul.f32 0.5, %v4759_v54  ;;  %v4763_v33 = vadd.f32 %v4750_v39, %v2676_v47  ;;  %v2678_v25 = vpop.f32.mrb[47].mxu1  ;;  %v2489_v39 = vrot.slane %v104_v60, %v5352_v36 }
 0xbf7   :  { %v4765_v30 = vadd.f32 %v4752_v5, %v2678_v25  ;;  %v2756_v62 = vmul.f32 0.5, %v4761_v3 }
 0xbf8   :  { %4926 = vtanh.f32 %v2736_v40  ;;  %v2737_v13 = vmul.f32 0.5, %v4763_v33  ;;  %v2578_v5 = vadd.f32 %v6038_v8, %v2489_v39  ;;  %v2581_v17 = vadd.f32 %v6042_v11, %v2489_v39 }
 0xbf9   :  { %4928 = vtanh.f32 %v2755_v19  ;;  %v2757_v14 = vmul.f32 0.5, %v4765_v30  ;;  %v2586_v11 = vadd.f32 %v6036_v24, %v2489_v39  ;;  %v2589_v60 = vadd.f32 %v6040_v23, %v2489_v39 }
 0xbfa   :  { %v4921_v29 = vpop.eup %4920  ;;  %4930 = vtanh.f32 %v2737_v13 }
 0xbfb   :  { %v2742_v7 = vadd.f32 1.0, %v4921_v29  ;;  %4932 = vtanh.f32 %v2756_v62 }
 0xbfc   :  { %v4923_v38 = vpop.eup %4922  ;;  %4934 = vtanh.f32 %v2757_v14 }
 0xbfd   :  { %v2743_v16 = vadd.f32 1.0, %v4923_v38  ;;  %v2746_v21 = vmul.f32 0.5, %v2742_v7  ;;  %v4925_v61 = vpop.eup %4924 }
 0xbfe   :  { %v2762_v49 = vadd.f32 1.0, %v4925_v61 }
 0xbff   :  { %v2770_v34 = vmul.f32 %v2746_v21, %v2716_v9  ;;  %v2747_v59 = vmul.f32 0.5, %v2743_v16 }
 0xc00   :  { %v2766_v33 = vmul.f32 0.5, %v2762_v49 }
 0xc01   :  { %v2774_v20 = vadd.f32 %v2770_v34, %v2578_v5  ;;  %v2771_v18 = vmul.f32 %v2747_v59, %v2719_v51 }
 0xc02   :  { %v4927_v35 = vpop.eup %4926  ;;  %v2782_v55 = vsub.f32 1.0, %v2766_v33  ;;  %v2790_v24 = vmul.f32 %v2766_v33, %v5720_v22 }
 0xc03   :  { %v4929_v1 = vpop.eup %4928  ;;  %4936 = vtanh.f32 %v2774_v20  ;;  %v2775_v2 = vadd.f32 %v2771_v18, %v2581_v17  ;;  %v2744_v54 = vadd.f32 1.0, %v4927_v35 }
 0xc04   :  { %v4931_v8 = vpop.eup %4930  ;;  %v2763_v47 = vadd.f32 1.0, %v4929_v1 }
 0xc05   :  { %4938 = vtanh.f32 %v2775_v2  ;;  %v2748_v46 = vmul.f32 0.5, %v2744_v54  ;;  %v2745_v19 = vadd.f32 1.0, %v4931_v8  ;;  %v4933_v25 = vpop.eup %4932 }
 0xc06   :  { %v2767_v45 = vmul.f32 0.5, %v2763_v47  ;;  %v4935_v30 = vpop.eup %4934  ;;  %v2764_v6 = vadd.f32 1.0, %v4933_v25 }
 0xc07   :  { %v2772_v50 = vmul.f32 %v2748_v46, %v2724_v32  ;;  %v2749_v40 = vmul.f32 0.5, %v2745_v19  ;;  %v2765_v7 = vadd.f32 1.0, %v4935_v30 }
 0xc08   :  { %v2783_v12 = vsub.f32 1.0, %v2767_v45  ;;  %v2791_v38 = vmul.f32 %v2767_v45, %v5722_v41  ;;  %v2768_v23 = vmul.f32 0.5, %v2764_v6 }
 0xc09   :  { %v2776_v3 = vadd.f32 %v2772_v50, %v2586_v11  ;;  %v2773_v13 = vmul.f32 %v2749_v40, %v2727_v10  ;;  %v2769_v9 = vmul.f32 0.5, %v2765_v7 }
 0xc0a   :  { %v2784_v21 = vsub.f32 1.0, %v2768_v23  ;;  %v2792_v34 = vmul.f32 %v2768_v23, %v5734_v43  ;;  %v2916_v23 = vpop.permute.xlu1 %2915 }
 0xc0b   :  { %4940 = vtanh.f32 %v2776_v3  ;;  %v2777_v15 = vadd.f32 %v2773_v13, %v2589_v60  ;;  %v2785_v59 = vsub.f32 1.0, %v2769_v9  ;;  %v2793_v20 = vmul.f32 %v2769_v9, %v5736_v56 }
 0xc0c   :  { %vm2932_vm0 = vcmp.eq.s32.totalorder %v5300_v48, %v2916_v23  ;;  %v182_v23 = vld [vmem:[#allocation2 + $0x1f8] sm:$0xff] }
 0xc0d   :  { %v4937_v29 = vpop.eup %4936  ;;  %4942 = vtanh.f32 %v2777_v15 }
 0xc0e   :  { %v2786_v27 = vmul.f32 %v4937_v29, %v2782_v55  ;;  %v2865_v55 = vpop.permute.xlu0 %2864  ;;  %v2874_v9 = vpop.permute.xlu1 %2873 }
 0xc0f   :  { %v4939_v62 = vpop.eup %4938  ;;  %vm2883_vm14 = vcmp.eq.s32.totalorder %v5300_v48, %v2865_v55  ;;  %vm2886_vm1 = vcmp.eq.s32.totalorder %v5300_v48, %v2874_v9  ;;  %v186_v9 = vld [vmem:[#allocation2 + $0x210] sm:$0xff] }
 0xc10   :  { %v2787_v63 = vmul.f32 %v4939_v62, %v2783_v12  ;;  %v2794_v39 = vadd.f32 %v2790_v24, %v2786_v27 }
 0xc12   :  { %v2795_v16 = vadd.f32 %v2791_v38, %v2787_v63  ;;  %v2798_v14 = vmax.f32 %v2794_v39, 0.0  ;;  %v2868_v27 = vpop.permute.xlu0 %2867 }
 0xc13   :  { %vm2884_vm15 = vcmp.eq.s32.totalorder %v5300_v48, %v2868_v27 }
 0xc14   :  { %v2799_v37 = vmax.f32 %v2795_v16, 0.0 }
 0xc15   :  { %v4941_v44 = vpop.eup %4940 }
 0xc16   :  { %v2788_v5 = vmul.f32 %v4941_v44, %v2784_v21  ;;  %v2802_v51 = vadd.f32 %v2799_v37, %v2798_v14  ;;  %v2913_v38 = vpop.permute.xlu0 %2912  ;;  %v2834_v21 = vrot.slane %v6047_v57, %v5449_v53 }
 0xc17   :  { %v4943_v42 = vpop.eup %4942  ;;  %vm2931_vm11 = vcmp.eq.s32.totalorder %v5300_v48, %v2913_v38 }
 0xc18   :  { %v2796_v61 = vadd.f32 %v2792_v34, %v2788_v5  ;;  %v2789_v17 = vmul.f32 %v4943_v42, %v2785_v59  ;;  %v2922_v42 = vpop.permute.xlu1 %2921 }
 0xc19   :  { %vm2934_vm8 = vcmp.eq.s32.totalorder %v5300_v48, %v2922_v42 }
 0xc1a   :  { %v2800_v18 = vmax.f32 %v2796_v61, 0.0  ;;  %v2797_v35 = vadd.f32 %v2793_v20, %v2789_v17  ;;  %v2871_v16 = vpop.permute.xlu0 %2870 }
 0xc1b   :  { %vm2885_vm9 = vcmp.eq.s32.totalorder %v5300_v48, %v2871_v16  ;;  %v185_v16 = vld [vmem:[#allocation2 + $0x208] sm:$0xff] }
 0xc1c   :  { %v2803_v1 = vadd.f32 %v2802_v51, %v2800_v18  ;;  %v2801_v2 = vmax.f32 %v2797_v35, 0.0 }
 0xc1e   :  { %v2804_v54 = vadd.f32 %v2803_v1, %v2801_v2 }
 0xc20   :  { %v2805_v8 = vrot.slane %v2804_v54, 4 }
 0xc22   :  { %v2806_v49 = vadd.f32 %v2805_v8, %v2804_v54 }
 0xc24   :  { %v2807_v32 = vrot.slane %v2806_v49, 2 }
 0xc26   :  { %v2808_v46 = vadd.f32 %v2807_v32, %v2806_v49 }
 0xc28   :  { %v2809_v19 = vrot.slane %v2808_v46, 1 }
 0xc2a   :  { %v2810_v47 = vadd.f32 %v2809_v19, %v2808_v46 }
 0xc2c   :  { %v2812_v11 = vmul.f32 0.03125, %v2810_v47  ;;  %v2880_v47 = vpop.permute.xlu1 %2879 }
 0xc2d   :  { %vm2888_vm6 = vcmp.eq.s32.totalorder %v5300_v48, %v2880_v47 }
 0xc2e   :  { %v2813_v10 = vsub.f32 %v2798_v14, %v2812_v11  ;;  %v2814_v50 = vsub.f32 %v2799_v37, %v2812_v11  ;;  %v2815_v40 = vsub.f32 %v2800_v18, %v2812_v11  ;;  %v2816_v33 = vsub.f32 %v2801_v2, %v2812_v11  ;;  %v2919_v14 = vpop.permute.xlu0 %2918 }
 0xc2f   :  { %v2848_v37 = vrot.slane %v6047_v57, %v5644_v31  ;;  %vm2933_vm12 = vcmp.eq.s32.totalorder %v5300_v48, %v2919_v14  ;;  %v4122_v11 = vsel %vm2883_vm14, 1.0, %v5076_v58  ;;  %v187_v14 = vld [vmem:[#allocation2 + $0x218] sm:$0xff] }
 0xc30   :  { %v2817_v25 = vmul.f32 %v2813_v10, %v2813_v10  ;;  %v2818_v60 = vmul.f32 %v2814_v50, %v2814_v50  ;;  %v2819_v3 = vmul.f32 %v2815_v40, %v2815_v40  ;;  %v2820_v45 = vmul.f32 %v2816_v33, %v2816_v33 }
 0xc31   :  { %v2838_v44 = vmul.f32 %v2834_v21, %v2816_v33  ;;  %v2835_v5 = vmul.f32 %v2834_v21, %v2813_v10  ;;  %v2836_v34 = vmul.f32 %v2834_v21, %v2814_v50  ;;  %v2837_v51 = vmul.f32 %v2834_v21, %v2815_v40 }
 0xc32   :  { %v2821_v13 = vadd.f32 %v2818_v60, %v2817_v25  ;;  %v2877_v8 = vpop.permute.xlu0 %2876  ;;  %v4123_v10 = vsel %vm2884_vm15, 1.0, %v5076_v58  ;;  %v4133_v40 = vsel %vm2934_vm8, 1.0, %v5076_v58  ;;  %v4124_v25 = vsel %vm2885_vm9, 1.0, %v5076_v58 }
 0xc33   :  { %v4131_v60 = vsel %vm2932_vm0, 1.0, %v5076_v58  ;;  %vm2887_vm4 = vcmp.eq.s32.totalorder %v5300_v48, %v2877_v8 }
 0xc34   :  { %v2822_v30 = vadd.f32 %v2821_v13, %v2819_v3  ;;  %v2928_v3 = vpop.permute.xlu1 %2927  ;;  %v4126_v27 = vsel %vm2887_vm4, 1.0, %v5076_v58 }
 0xc35   :  { %vm2936_vm3 = vcmp.eq.s32.totalorder %v5300_v48, %v2928_v3  ;;  %v198_v3 = vld [vmem:[#allocation2 + $0x270] sm:$0xff] }
 0xc36   :  { %v2823_v15 = vadd.f32 %v2822_v30, %v2820_v45  ;;  %v2925_v50 = vpop.permute.xlu0 %2924  ;;  %v4125_v45 = vsel %vm2886_vm1, 1.0, %v5076_v58  ;;  %v2956_v30 = vadd.f32 %v4131_v60, %v4123_v10  ;;  %v194_v10 = vld [vmem:[#allocation2 + $0x250] sm:$0xff] }
 0xc37   :  { %vm2935_vm2 = vcmp.eq.s32.totalorder %v5300_v48, %v2925_v50  ;;  %v184_v48 = vld [vmem:[#allocation2 + $0x200] sm:$0xff]  ;;  %v195_v50 = vld [vmem:[#allocation2 + $0x258] sm:$0xff] }
 0xc38   :  { %v2824_v6 = vrot.slane %v2823_v15, 4  ;;  %v3213_v21 = vpack.c.bf16 %v185_v16, %v184_v48 }
 0xc3a   :  { %v2825_v29 = vadd.f32 %v2824_v6, %v2823_v15  ;;  %v2958_v15 = vadd.f32 %v4133_v40, %v4125_v45  ;;  %v3218_v40 = vpack.c.bf16 %v195_v50, %v194_v10  ;;  %v3059_v16 = vpop.permute.xlu0 %3058 }
 0xc3c   :  { %v2826_v24 = vrot.slane %v2825_v29, 2 }
 0xc3e   :  { %v2827_v12 = vadd.f32 %v2826_v24, %v2825_v29  ;;  %v4134_v29 = vsel %vm2935_vm2, 1.0, %v5076_v58  ;;  %v4135_v24 = vsel %vm2936_vm3, 1.0, %v5076_v58 }
 0xc40   :  { %v2828_v7 = vrot.slane %v2827_v12, 1 }
 0xc42   :  { %v2829_v62 = vadd.f32 %v2828_v7, %v2827_v12  ;;  %v2959_v12 = vadd.f32 %v4134_v29, %v4126_v27  ;;  %v4127_v7 = vsel %vm2888_vm6, 1.0, %v5076_v58  ;;  %v204_v29 = vld [vmem:[#allocation2 + $0x298] sm:$0xff]  ;;  %v205_v27 = vld [vmem:[#allocation2 + $0x2a0] sm:$0xff] }
 0xc44   :  { %v2830_v63 = vmul.f32 0.03125, %v2829_v62  ;;  %v2960_v62 = vadd.f32 %v4135_v24, %v4127_v7 }
 0xc46   :  { %v2839_v39 = vadd.f32 1e-05, %v2830_v63  ;;  %v2964_v38 = vpack.c.bf16 %v2960_v62, %v2959_v12  ;;  %v181_v63 = vld [vmem:[#allocation2 + $0x1f0] sm:$0xff]  ;;  %v206_v12 = vld [vmem:[#allocation2 + $0x2a8] sm:$0xff] }
 0xc47   :  { %v3320_v7 = vpack.c.bf16 %v206_v12, %v205_v27  ;;  %v207_v62 = vld [vmem:[#allocation2 + $0x2b0] sm:$0xff] }
 0xc48   :  { %4944 = vrsqrt.f32 %v2839_v39  ;;  %v3055_v39 = vpack.c.bf16 %v182_v23, %v181_v63  ;;  %v209_v23 = vld [vmem:[#allocation2 + $0x2c0] sm:$0xff] }
 0xc4a   :  { %4636 = vmatprep.subr.bf16.mxu1 %v3055_v39 }
 0xc4b   :  { %4637 = vmatpush3.bf16.msra.mxu1 %v3055_v39  ;;  %v210_v39 = vld [vmem:[#allocation2 + $0x2c8] sm:$0xff] }
 0xc4c   :  { %v3322_v48 = vpack.c.bf16 %v210_v39, %v209_v23 }
 0xc52   :  { %v4945_v59 = vpop.eup %4944 }
 0xc53   :  { %v2844_v61 = vmul.f32 %v4945_v59, %v2838_v44  ;;  %v2841_v17 = vmul.f32 %v4945_v59, %v2835_v5  ;;  %v2842_v20 = vmul.f32 %v4945_v59, %v2836_v34  ;;  %v2843_v18 = vmul.f32 %v4945_v59, %v2837_v51  ;;  %v188_v44 = vld [vmem:[#allocation2 + $0x220] sm:$0xff]  ;;  %v189_v5 = vld [vmem:[#allocation2 + $0x228] sm:$0xff]  ;;  %v190_v51 = vld [vmem:[#allocation2 + $0x230] sm:$0xff] }
 0xc54   :  { %v3215_v34 = vpack.c.bf16 %v189_v5, %v188_v44  ;;  %v191_v59 = vld [vmem:[#allocation2 + $0x238] sm:$0xff] }
 0xc55   :  { %v2849_v35 = vadd.f32 %v2848_v37, %v2841_v17  ;;  %v2850_v1 = vadd.f32 %v2848_v37, %v2842_v20  ;;  %v2851_v2 = vadd.f32 %v2848_v37, %v2843_v18  ;;  %v2852_v54 = vadd.f32 %v2848_v37, %v2844_v61  ;;  %v192_v61 = vld [vmem:[#allocation2 + $0x240] sm:$0xff]  ;;  %v193_v17 = vld [vmem:[#allocation2 + $0x248] sm:$0xff] }
 0xc56   :  { %v3214_v37 = vpack.c.bf16 %v187_v14, %v186_v9  ;;  %v3216_v42 = vpack.c.bf16 %v191_v59, %v190_v51  ;;  %v3217_v20 = vpack.c.bf16 %v193_v17, %v192_v61  ;;  %v3064_v9 = vpop.permute.xlu1 %3063 }
 0xc57   :  { %v6083_v49 = vadd.f32 %v2849_v35, %v5720_v22  ;;  %v6086_v32 = vadd.f32 %v2850_v1, %v5722_v41  ;;  %v6089_v46 = vadd.f32 %v2851_v2, %v5734_v43  ;;  %v6092_v19 = vadd.f32 %v2852_v54, %v5736_v56 }
 0xc58   :  { %v4130_v41 = vsel %vm2931_vm11, 1.0, %v5076_v58  ;;  %v4132_v43 = vsel %vm2933_vm12, 1.0, %v5076_v58 }
 0xc59   :  { %v2965_v22 = vpack.c.bf16 %v6086_v32, %v6083_v49  ;;  %v2966_v56 = vpack.c.bf16 %v6092_v19, %v6089_v46  ;;  %v2955_v33 = vadd.f32 %v4130_v41, %v4122_v11  ;;  %v2957_v13 = vadd.f32 %v4132_v43, %v4124_v25  ;;  %v197_v25 = vld [vmem:[#allocation2 + $0x268] sm:$0xff] }
 0xc5a   :  { %v3074_v14 = vpop.permute.xlu1 %3073 }
 0xc5b   :  { %4610 = vmatprep.subr.bf16.mxu0 %v2965_v22  ;;  %v2962_v55 = vpack.c.bf16 %v2956_v30, %v2955_v33  ;;  %v2963_v6 = vpack.c.bf16 %v2958_v15, %v2957_v13  ;;  %v196_v33 = vld [vmem:[#allocation2 + $0x260] sm:$0xff]  ;;  %v199_v13 = vld [vmem:[#allocation2 + $0x278] sm:$0xff]  ;;  %v202_v15 = vld [vmem:[#allocation2 + $0x288] sm:$0xff] }
 0xc5c   :  { %4611 = vmatpush3.bf16.msra.mxu0 %v2965_v22  ;;  %v3219_v60 = vpack.c.bf16 %v197_v25, %v196_v33  ;;  %v3220_v45 = vpack.c.bf16 %v199_v13, %v198_v3  ;;  %v201_v30 = vld [vmem:[#allocation2 + $0x280] sm:$0xff] }
 0xc5d   :  { %4612 = vmatprep.subr.bf16.mxu0 %v2966_v56 }
 0xc5e   :  { %v3084_v51 = vpop.permute.xlu1 %3083 }
 0xc60   :  { %4613 = vmatpush3.bf16.msra.mxu0 %v2966_v56 }
 0xc61   :  { %4646 = vmatprep.subr.bf16.mxu0 %v3213_v21 }
 0xc63   :  { %4615 = vmatmul.mubr.msk.bf16.vlgmr.msra.gmra.mrb[56].mxu0 %vm791_vm5, %v2962_v55  ;;  %v203_v55 = vld [vmem:[#allocation2 + $0x290] sm:$0xff] }
 0xc64   :  { %4618 = vmatprep.mubr.msk.bf16.mxu0 %vm791_vm5, %v2963_v6  ;;  %4647 = vmatpush3.bf16.msra.mxu0 %v3213_v21  ;;  %v3318_v6 = vpack.c.bf16 %v202_v15, %v201_v30  ;;  %v3319_v24 = vpack.c.bf16 %v204_v29, %v203_v55  ;;  %v3069_v21 = vpop.permute.xlu0 %3068 }
 0xc65   :  { %4648 = vmatprep.subr.bf16.mxu0 %v3214_v37 }
 0xc66   :  { %4670 = vmatprep.subr.bf16.mxu1 %v3318_v6 }
 0xc68   :  { %4649 = vmatpush3.bf16.msra.mxu0 %v3214_v37  ;;  %v3099_v37 = vrot.slane %v6047_v57, %v5691_v28  ;;  %v3079_v44 = vpop.permute.xlu0 %3078 }
 0xc69   :  { %4650 = vmatprep.subr.bf16.mxu0 %v3215_v34 }
 0xc6a   :  { %v3102_v5 = vmul.f32 %v3099_v37, %v3069_v21  ;;  %v3100_v59 = vmul.f32 %v3099_v37, %v3059_v16  ;;  %v3103_v61 = vmul.f32 %v3099_v37, %v3074_v14  ;;  %v3105_v25 = vmul.f32 %v3099_v37, %v3084_v51 }
 0xc6b   :  { %4619 = vmatmul.mubr.msk.bf16.gmra.mrb[60].mxu0 %vm791_vm5, %v2964_v38  ;;  %v208_v38 = vld [vmem:[#allocation2 + $0x2b8] sm:$0xff] }
 0xc6c   :  { %4651 = vmatpush3.bf16.msra.mxu0 %v3215_v34  ;;  %v3321_v63 = vpack.c.bf16 %v208_v38, %v207_v62  ;;  %v3176_v34 = vrot.slane %v6047_v57, %v5688_v4 }
 0xc6d   :  { %4652 = vmatprep.subr.bf16.mxu0 %v3216_v42 }
 0xc70   :  { %4653 = vmatpush3.bf16.msra.mxu0 %v3216_v42 }
 0xc71   :  { %4654 = vmatprep.subr.bf16.mxu0 %v3217_v20 }
 0xc74   :  { %4655 = vmatpush3.bf16.msra.mxu0 %v3217_v20 }
 0xc75   :  { %4656 = vmatprep.subr.bf16.mxu0 %v3218_v40 }
 0xc78   :  { %4657 = vmatpush3.bf16.msra.mxu0 %v3218_v40 }
 0xc79   :  { %4658 = vmatprep.subr.bf16.mxu0 %v3219_v60 }
 0xc7c   :  { %4659 = vmatpush3.bf16.msra.mxu0 %v3219_v60  ;;  %v3104_v60 = vmul.f32 %v3099_v37, %v3079_v44 }
 0xc7d   :  { %4660 = vmatprep.subr.bf16.mxu0 %v3220_v45 }
 0xc80   :  { %4661 = vmatpush3.bf16.msra.mxu0 %v3220_v45 }
 0xd36   :  { %v4616_v18 = vpop.f32.mrb[56].mxu0 }
 0xd37   :  { %v3013_v35 = vpop.f32.mrb[57].mxu0 }
 0xd38   :  { %v4617_v1 = vpop.f32.mrb[58].mxu0 }
 0xd39   :  { %v3045_v2 = vpack.c.bf16 %v4617_v1, %v4616_v18  ;;  %v3016_v54 = vpop.f32.mrb[59].mxu0  ;;  %v3101_v18 = vmul.f32 %v3099_v37, %v3064_v9 }
 0xd3a   :  { %v3044_v8 = vpack.c.bf16 %v3016_v54, %v3013_v35 }
 0xd3c   :  { %4638 = vmatprep.mubr.bf16.mxu1 %v3044_v8 }
 0xd3d   :  { %4639 = vmatmul.mubr.bf16.vlgmr.msra.gmra.mrb[48].mxu1 %v3045_v2 }
 0xd3e   :  { %v4620_v47 = vpop.f32.mrb[60].mxu0  ;;  %4671 = vmatpush3.bf16.msra.mxu1 %v3318_v6 }
 0xd3f   :  { %v3029_v22 = vpop.f32.mrb[61].mxu0  ;;  %4672 = vmatprep.subr.bf16.mxu1 %v3319_v24 }
 0xd40   :  { %v4621_v41 = vpop.f32.mrb[62].mxu0 }
 0xd41   :  { %v3047_v43 = vpack.c.bf16 %v4621_v41, %v4620_v47  ;;  %v3032_v56 = vpop.f32.mrb[63].mxu0  ;;  %v3089_v47 = vpop.permute.xlu0 %3088 }
 0xd42   :  { %v3046_v11 = vpack.c.bf16 %v3032_v56, %v3029_v22  ;;  %4673 = vmatpush3.bf16.msra.mxu1 %v3319_v24  ;;  %v3106_v40 = vmul.f32 %v3099_v37, %v3089_v47 }
 0xd43   :  { %4674 = vmatprep.subr.bf16.mxu1 %v3320_v7 }
 0xd44   :  { %4642 = vmatprep.mubr.bf16.mxu1 %v3046_v11  ;;  %v3094_v11 = vpop.permute.xlu1 %3093 }
 0xd45   :  { %4643 = vmatmul.mubr.bf16.gmra.mrb[52].mxu1 %v3047_v43  ;;  %v3107_v45 = vmul.f32 %v3099_v37, %v3094_v11 }
 0xd46   :  { %4675 = vmatpush3.bf16.msra.mxu1 %v3320_v7 }
 0xd47   :  { %4676 = vmatprep.subr.bf16.mxu1 %v3321_v63 }
 0xd4a   :  { %4677 = vmatpush3.bf16.msra.mxu1 %v3321_v63 }
 0xd4b   :  { %4678 = vmatprep.subr.bf16.mxu1 %v3322_v48 }
 0xd4e   :  { %4679 = vmatpush3.bf16.msra.mxu1 %v3322_v48 }
 0xe10   :  { %v4640_v42 = vpop.f32.mrb[48].mxu1 }
 0xe11   :  { %v3151_v17 = vadd.f32 %v4640_v42, %v3102_v5  ;;  %v3142_v20 = vpop.f32.mrb[49].mxu1 }
 0xe12   :  { %v3143_v35 = vadd.f32 %v3142_v20, %v3100_v59  ;;  %v4641_v1 = vpop.f32.mrb[50].mxu1  ;;  %v211_v20 = vld [vmem:[#allocation2 + $0x2d0] sm:$0xff] }
 0xe13   :  { %v3179_v2 = vadd.f32 %v3176_v34, %v3151_v17  ;;  %v3154_v54 = vadd.f32 %v4641_v1, %v3103_v61  ;;  %v3145_v8 = vpop.f32.mrb[51].mxu1  ;;  %v214_v1 = vld [vmem:[#allocation2 + $0x2e8] sm:$0xff] }
 0xe14   :  { %v3177_v22 = vadd.f32 %v3176_v34, %v3143_v35  ;;  %v3146_v41 = vadd.f32 %v3145_v8, %v3101_v18  ;;  %v212_v18 = vld [vmem:[#allocation2 + $0x2d8] sm:$0xff] }
 0xe15   :  { %v3195_v43 = vmul.f32 0.01, %v3179_v2  ;;  %v3180_v56 = vadd.f32 %v3176_v34, %v3154_v54  ;;  %vm3187_vm5 = vcmp.gt.f32.partialorder %v3179_v2, 0.0  ;;  %v3323_v35 = vpack.c.bf16 %v212_v18, %v211_v20  ;;  %v215_v54 = vld [vmem:[#allocation2 + $0x2f0] sm:$0xff]  ;;  %v216_v8 = vld [vmem:[#allocation2 + $0x2f8] sm:$0xff] }
 0xe16   :  { %v3193_v10 = vmul.f32 0.01, %v3177_v22  ;;  %v3178_v50 = vadd.f32 %v3176_v34, %v3146_v41  ;;  %vm3185_vm7 = vcmp.gt.f32.partialorder %v3177_v22, 0.0  ;;  %v3325_v47 = vpack.c.bf16 %v216_v8, %v215_v54 }
 0xe17   :  { %vm3188_vm13 = vcmp.gt.f32.partialorder %v3180_v56, 0.0  ;;  %v3196_v33 = vmul.f32 0.01, %v3180_v56  ;;  %v3203_v30 = vsel %vm3187_vm5, %v3179_v2, %v3195_v43  ;;  %4680 = vmatprep.subr.bf16.mxu1 %v3323_v35 }
 0xe18   :  { %vm3186_vm10 = vcmp.gt.f32.partialorder %v3178_v50, 0.0  ;;  %v3194_v3 = vmul.f32 0.01, %v3178_v50  ;;  %v4644_v13 = vpop.f32.mrb[52].mxu1  ;;  %v3201_v12 = vsel %vm3185_vm7, %v3177_v22, %v3193_v10  ;;  %4681 = vmatpush3.bf16.msra.mxu1 %v3323_v35  ;;  %v3224_v22 = vrot.slane %v6047_v57, %v5764_v0 }
 0xe19   :  { %v3204_v15 = vsel %vm3188_vm13, %v3180_v56, %v3196_v33  ;;  %v3167_v55 = vadd.f32 %v4644_v13, %v3106_v40  ;;  %v3158_v6 = vpop.f32.mrb[53].mxu1 }
 0xe1a   :  { %v3210_v29 = vpack.c.bf16 %v3204_v15, %v3203_v30  ;;  %v3159_v24 = vadd.f32 %v3158_v6, %v3104_v60  ;;  %v4645_v27 = vpop.f32.mrb[54].mxu1  ;;  %v3202_v7 = vsel %vm3186_vm10, %v3178_v50, %v3194_v3 }
 0xe1b   :  { %v3183_v62 = vadd.f32 %v3176_v34, %v3167_v55  ;;  %v3170_v38 = vadd.f32 %v4645_v27, %v3107_v45  ;;  %v3161_v63 = vpop.f32.mrb[55].mxu1  ;;  %v3209_v23 = vpack.c.bf16 %v3202_v7, %v3201_v12 }
 0xe1c   :  { %v3181_v39 = vadd.f32 %v3176_v34, %v3159_v24  ;;  %v3162_v48 = vadd.f32 %v3161_v63, %v3105_v25 }
 0xe1d   :  { %v3199_v16 = vmul.f32 0.01, %v3183_v62  ;;  %v3184_v9 = vadd.f32 %v3176_v34, %v3170_v38  ;;  %4662 = vmatprep.mubr.bf16.mxu0 %v3209_v23  ;;  %vm3191_vm11 = vcmp.gt.f32.partialorder %v3183_v62, 0.0 }
 0xe1e   :  { %v3197_v21 = vmul.f32 0.01, %v3181_v39  ;;  %v3182_v14 = vadd.f32 %v3176_v34, %v3162_v48  ;;  %4663 = vmatmul.mubr.bf16.vlgmr.msra.gmra.mrb[64].mxu0 %v3210_v29  ;;  %vm3189_vm12 = vcmp.gt.f32.partialorder %v3181_v39, 0.0  ;;  %v213_v34 = vld [vmem:[#allocation2 + $0x2e0] sm:$0xff] }
 0xe1f   :  { %vm3192_vm14 = vcmp.gt.f32.partialorder %v3184_v9, 0.0  ;;  %v3200_v37 = vmul.f32 0.01, %v3184_v9  ;;  %v3207_v5 = vsel %vm3191_vm11, %v3183_v62, %v3199_v16  ;;  %v3324_v2 = vpack.c.bf16 %v214_v1, %v213_v34 }
 0xe20   :  { %vm3190_vm15 = vcmp.gt.f32.partialorder %v3182_v14, 0.0  ;;  %v3198_v44 = vmul.f32 0.01, %v3182_v14  ;;  %v3205_v59 = vsel %vm3189_vm12, %v3181_v39, %v3197_v21 }
 0xe21   :  { %v3208_v51 = vsel %vm3192_vm14, %v3184_v9, %v3200_v37  ;;  %4682 = vmatprep.subr.bf16.mxu1 %v3324_v2 }
 0xe22   :  { %v3206_v42 = vsel %vm3190_vm15, %v3182_v14, %v3198_v44  ;;  %v3212_v61 = vpack.c.bf16 %v3208_v51, %v3207_v5  ;;  %4683 = vmatpush3.bf16.msra.mxu1 %v3324_v2 }
 0xe23   :  { %v3211_v17 = vpack.c.bf16 %v3206_v42, %v3205_v59  ;;  %4684 = vmatprep.subr.bf16.mxu1 %v3325_v47  ;;  %v3329_v59 = vrot.slane %v6047_v57, %v5771_v26 }
 0xe25   :  { %4666 = vmatprep.mubr.bf16.mxu0 %v3211_v17 }
 0xe26   :  { %4667 = vmatmul.mubr.bf16.gmra.mrb[68].mxu0 %v3212_v61  ;;  %4685 = vmatpush3.bf16.msra.mxu1 %v3325_v47 }
 0xe27   :  { %4694 = vmatprep.subr.bf16.mxu1 %v5076_v58 }
 0xef1   :  { %v4664_v41 = vpop.f32.mrb[64].mxu0 }
 0xef2   :  { %v3268_v43 = vadd.f32 %v4664_v41, %v3224_v22  ;;  %v3259_v56 = vpop.f32.mrb[65].mxu0 }
 0xef3   :  { %v3260_v11 = vadd.f32 %v3259_v56, %v3224_v22  ;;  %v4665_v10 = vpop.f32.mrb[66].mxu0 }
 0xef4   :  { %v3300_v50 = vmul.f32 0.01, %v3268_v43  ;;  %v3271_v40 = vadd.f32 %v4665_v10, %v3224_v22  ;;  %v3262_v33 = vpop.f32.mrb[67].mxu0  ;;  %vm3292_vm8 = vcmp.gt.f32.partialorder %v3268_v43, 0.0 }
 0xef5   :  { %v3298_v25 = vmul.f32 0.01, %v3260_v11  ;;  %v3263_v60 = vadd.f32 %v3262_v33, %v3224_v22  ;;  %vm3290_vm9 = vcmp.gt.f32.partialorder %v3260_v11, 0.0 }
 0xef6   :  { %vm3293_vm0 = vcmp.gt.f32.partialorder %v3271_v40, 0.0  ;;  %v3301_v3 = vmul.f32 0.01, %v3271_v40  ;;  %v3308_v45 = vsel %vm3292_vm8, %v3268_v43, %v3300_v50  ;;  %vm3656_vm8 = vcmask 1040384  }
 0xef7   :  { %vm3291_vm1 = vcmp.gt.f32.partialorder %v3263_v60, 0.0  ;;  %v3299_v13 = vmul.f32 0.01, %v3263_v60  ;;  %v3306_v6 = vsel %vm3290_vm9, %v3260_v11, %v3298_v25  ;;  %vm5077_vm9 = vmmov 0  }
 0xef8   :  { %v3309_v30 = vsel %vm3293_vm0, %v3271_v40, %v3301_v3 }
 0xef9   :  { %v3315_v15 = vpack.c.bf16 %v3309_v30, %v3308_v45  ;;  %v4668_v55 = vpop.f32.mrb[68].mxu0  ;;  %v3307_v29 = vsel %vm3291_vm1, %v3263_v60, %v3299_v13  ;;  %vm3726_vm1 = vcmask 1041408  }
 0xefa   :  { %v3284_v24 = vadd.f32 %v4668_v55, %v3224_v22  ;;  %v3275_v27 = vpop.f32.mrb[69].mxu0  ;;  %v3314_v12 = vpack.c.bf16 %v3307_v29, %v3306_v6 }
 0xefb   :  { %v3276_v7 = vadd.f32 %v3275_v27, %v3224_v22  ;;  %v4669_v62 = vpop.f32.mrb[70].mxu0 }
 0xefc   :  { %v3304_v38 = vmul.f32 0.01, %v3284_v24  ;;  %v3287_v63 = vadd.f32 %v4669_v62, %v3224_v22  ;;  %v3278_v23 = vpop.f32.mrb[71].mxu0  ;;  %4686 = vmatprep.mubr.bf16.mxu1 %v3314_v12  ;;  %vm3296_vm2 = vcmp.gt.f32.partialorder %v3284_v24, 0.0 }
 0xefd   :  { %v3302_v39 = vmul.f32 0.01, %v3276_v7  ;;  %v3279_v48 = vadd.f32 %v3278_v23, %v3224_v22  ;;  %4687 = vmatmul.mubr.bf16.vlgmr.msra.gmra.mrb[56].mxu1 %v3315_v15  ;;  %vm3294_vm3 = vcmp.gt.f32.partialorder %v3276_v7, 0.0 }
 0xefe   :  { %vm3297_vm4 = vcmp.gt.f32.partialorder %v3287_v63, 0.0  ;;  %v3305_v16 = vmul.f32 0.01, %v3287_v63  ;;  %v3312_v21 = vsel %vm3296_vm2, %v3284_v24, %v3304_v38 }
 0xeff   :  { %vm3295_vm6 = vcmp.gt.f32.partialorder %v3279_v48, 0.0  ;;  %v3303_v9 = vmul.f32 0.01, %v3279_v48  ;;  %v3310_v37 = vsel %vm3294_vm3, %v3276_v7, %v3302_v39 }
 0xf00   :  { %v3313_v14 = vsel %vm3297_vm4, %v3287_v63, %v3305_v16 }
 0xf01   :  { %v3311_v44 = vsel %vm3295_vm6, %v3279_v48, %v3303_v9  ;;  %v3317_v5 = vpack.c.bf16 %v3313_v14, %v3312_v21  ;;  %vm4054_vm6 = vcmask 1024  }
 0xf02   :  { %v3316_v51 = vpack.c.bf16 %v3311_v44, %v3310_v37 }
 0xf04   :  { %4690 = vmatprep.mubr.bf16.mxu1 %v3316_v51 }
 0xf05   :  { %4691 = vmatmul.mubr.bf16.gmra.mrb[60].mxu1 %v3317_v5 }
 0xf06   :  { %4710 = vmatprep.mubr.msk.bf16.mxu1 %vm5077_vm9, %v5076_v58 }
 0xfd0   :  { %v4688_v42 = vpop.f32.mrb[56].mxu1 }
 0xfd1   :  { %v3364_v61 = vpop.f32.mrb[57].mxu1  ;;  %v3373_v17 = vadd.f32 %v4688_v42, %v3329_v59 }
 0xfd2   :  { %v3365_v20 = vadd.f32 %v3364_v61, %v3329_v59  ;;  %v4689_v18 = vpop.f32.mrb[58].mxu1 }
 0xfd3   :  { %v3376_v35 = vadd.f32 %v4689_v18, %v3329_v59  ;;  %v3367_v34 = vpop.f32.mrb[59].mxu1  ;;  %v3405_v54 = vmul.f32 0.01, %v3373_v17  ;;  %vm3397_vm13 = vcmp.gt.f32.partialorder %v3373_v17, 0.0 }
 0xfd4   :  { %v3403_v1 = vmul.f32 0.01, %v3365_v20  ;;  %v3368_v2 = vadd.f32 %v3367_v34, %v3329_v59  ;;  %vm3395_vm5 = vcmp.gt.f32.partialorder %v3365_v20, 0.0 }
 0xfd5   :  { %v3406_v47 = vmul.f32 0.01, %v3376_v35  ;;  %vm3398_vm10 = vcmp.gt.f32.partialorder %v3376_v35, 0.0  ;;  %v3413_v11 = vsel %vm3397_vm13, %v3373_v17, %v3405_v54 }
 0xfd6   :  { %vm3396_vm7 = vcmp.gt.f32.partialorder %v3368_v2, 0.0  ;;  %v3404_v8 = vmul.f32 0.01, %v3368_v2  ;;  %v3411_v22 = vsel %vm3395_vm5, %v3365_v20, %v3403_v1 }
 0xfd7   :  { %v3414_v33 = vsel %vm3398_vm10, %v3376_v35, %v3406_v47 }
 0xfd8   :  { %v3412_v41 = vsel %vm3396_vm7, %v3368_v2, %v3404_v8  ;;  %v4692_v43 = vpop.f32.mrb[60].mxu1 }
 0xfd9   :  { %v3419_v57 = vadd.f32 %v3412_v41, %v3411_v22  ;;  %v3380_v56 = vpop.f32.mrb[61].mxu1  ;;  %v3389_v10 = vadd.f32 %v4692_v43, %v3329_v59 }
 0xfda   :  { %v3381_v50 = vadd.f32 %v3380_v56, %v3329_v59  ;;  %v4693_v40 = vpop.f32.mrb[62].mxu1 }
 0xfdb   :  { %v3420_v25 = vadd.f32 %v3419_v57, %v3413_v11  ;;  %v3383_v60 = vpop.f32.mrb[63].mxu1  ;;  %v3392_v13 = vadd.f32 %v4693_v40, %v3329_v59  ;;  %v3409_v15 = vmul.f32 0.01, %v3389_v10  ;;  %vm3401_vm14 = vcmp.gt.f32.partialorder %v3389_v10, 0.0 }
 0xfdc   :  { %vm3399_vm11 = vcmp.gt.f32.partialorder %v3381_v50, 0.0  ;;  %v3407_v3 = vmul.f32 0.01, %v3381_v50  ;;  %v3384_v45 = vadd.f32 %v3383_v60, %v3329_v59 }
 0xfdd   :  { %v3421_v30 = vadd.f32 %v3420_v25, %v3414_v33  ;;  %v3410_v24 = vmul.f32 0.01, %v3392_v13  ;;  %vm3402_vm15 = vcmp.gt.f32.partialorder %v3392_v13, 0.0  ;;  %v3417_v7 = vsel %vm3401_vm14, %v3389_v10, %v3409_v15 }
 0xfde   :  { %v3415_v55 = vsel %vm3399_vm11, %v3381_v50, %v3407_v3  ;;  %vm3400_vm12 = vcmp.gt.f32.partialorder %v3384_v45, 0.0  ;;  %v3408_v6 = vmul.f32 0.01, %v3384_v45 }
 0xfdf   :  { %v3422_v29 = vadd.f32 %v3421_v30, %v3415_v55  ;;  %v3418_v38 = vsel %vm3402_vm15, %v3392_v13, %v3410_v24 }
 0xfe0   :  { %v3416_v27 = vsel %vm3400_vm12, %v3384_v45, %v3408_v6  ;;  %v6137_v45 = vld [vmem:[%s6280_s11 + $0x30] sm:$0xff] }
 0xfe1   :  { %v3423_v12 = vadd.f32 %v3422_v29, %v3416_v27  ;;  %v3467_v30 = vrot.slane %v6137_v45, %v5352_v36  ;;  %v3489_v15 = vrot.slane %v6137_v45, %v5446_v52 }
 0xfe3   :  { %v3424_v62 = vadd.f32 %v3423_v12, %v3417_v7 }
 0xfe5   :  { %v3425_v63 = vadd.f32 %v3424_v62, %v3418_v38 }
 0xfe7   :  { %v3426_v23 = vrot.slane %v3425_v63, 4 }
 0xfe9   :  { %v3427_v39 = vadd.f32 %v3426_v23, %v3425_v63 }
 0xfeb   :  { %v3428_v48 = vrot.slane %v3427_v39, 2 }
 0xfed   :  { %v3429_v16 = vadd.f32 %v3428_v48, %v3427_v39 }
 0xfef   :  { %v3430_v9 = vrot.slane %v3429_v16, 1 }
 0xff1   :  { %v3431_v21 = vadd.f32 %v3430_v9, %v3429_v16 }
 0xff3   :  { %v3433_v14 = vmul.f32 0.015625, %v3431_v21 }
 0xff5   :  { %v3434_v37 = vsub.f32 %v3411_v22, %v3433_v14  ;;  %v3435_v44 = vsub.f32 %v3412_v41, %v3433_v14  ;;  %v3436_v5 = vsub.f32 %v3413_v11, %v3433_v14  ;;  %v3437_v51 = vsub.f32 %v3414_v33, %v3433_v14 }
 0xff6   :  { %v3438_v59 = vsub.f32 %v3415_v55, %v3433_v14  ;;  %v3439_v42 = vsub.f32 %v3416_v27, %v3433_v14  ;;  %v3440_v61 = vsub.f32 %v3417_v7, %v3433_v14  ;;  %v3441_v17 = vsub.f32 %v3418_v38, %v3433_v14 }
 0xff7   :  { %v3442_v20 = vmul.f32 %v3434_v37, %v3434_v37  ;;  %v3443_v18 = vmul.f32 %v3435_v44, %v3435_v44  ;;  %v3444_v35 = vmul.f32 %v3436_v5, %v3436_v5  ;;  %v3445_v1 = vmul.f32 %v3437_v51, %v3437_v51 }
 0xff8   :  { %v3446_v54 = vmul.f32 %v3438_v59, %v3438_v59  ;;  %v3447_v47 = vmul.f32 %v3439_v42, %v3439_v42  ;;  %v3448_v57 = vmul.f32 %v3440_v61, %v3440_v61  ;;  %v3449_v22 = vmul.f32 %v3441_v17, %v3441_v17 }
 0xff9   :  { %v3450_v34 = vadd.f32 %v3443_v18, %v3442_v20  ;;  %v3501_v55 = vrot.slane %v6137_v45, %v5449_v53  ;;  %v3473_v6 = vmul.f32 %v3467_v30, %v3439_v42  ;;  %v3469_v29 = vmul.f32 %v3467_v30, %v3435_v44 }
 0xffa   :  { %v3468_v24 = vmul.f32 %v3467_v30, %v3434_v37  ;;  %v3470_v27 = vmul.f32 %v3467_v30, %v3436_v5  ;;  %v3472_v7 = vmul.f32 %v3467_v30, %v3438_v59  ;;  %v3471_v62 = vmul.f32 %v3467_v30, %v3437_v51 }
 0xffb   :  { %v3451_v2 = vadd.f32 %v3450_v34, %v3444_v35  ;;  %v3474_v38 = vmul.f32 %v3467_v30, %v3440_v61  ;;  %v3475_v63 = vmul.f32 %v3467_v30, %v3441_v17 }
 0xffd   :  { %v3452_v8 = vadd.f32 %v3451_v2, %v3445_v1 }
 0xfff   :  { %v3453_v43 = vadd.f32 %v3452_v8, %v3446_v54 }
0x1001   :  { %v3454_v56 = vadd.f32 %v3453_v43, %v3447_v47 }
0x1003   :  { %v3455_v41 = vadd.f32 %v3454_v56, %v3448_v57 }
0x1005   :  { %v3456_v11 = vadd.f32 %v3455_v41, %v3449_v22 }
0x1007   :  { %v3457_v10 = vrot.slane %v3456_v11, 4 }
0x1009   :  { %v3458_v50 = vadd.f32 %v3457_v10, %v3456_v11 }
0x100b   :  { %v3459_v40 = vrot.slane %v3458_v50, 2 }
0x100d   :  { %v3460_v33 = vadd.f32 %v3459_v40, %v3458_v50  ;;  %v3546_v50 = vrot.slane %v6137_v45, %v5644_v31 }
0x100f   :  { %v3461_v25 = vrot.slane %v3460_v33, 1 }
0x1011   :  { %v3462_v60 = vadd.f32 %v3461_v25, %v3460_v33 }
0x1013   :  { %v3463_v3 = vmul.f32 0.015625, %v3462_v60 }
0x1015   :  { %v3476_v13 = vadd.f32 1e-05, %v3463_v3  ;;  %v3547_v3 = vmul.f32 %v3546_v50, %v6083_v49 }
0x1017   :  { %4946 = vrsqrt.f32 %v3476_v13 }
0x1021   :  { %v4947_v12 = vpop.eup %4946 }
0x1022   :  { %v3483_v23 = vmul.f32 %v4947_v12, %v3473_v6  ;;  %v3479_v39 = vmul.f32 %v4947_v12, %v3469_v29  ;;  %v3478_v48 = vmul.f32 %v4947_v12, %v3468_v24  ;;  %v3480_v16 = vmul.f32 %v4947_v12, %v3470_v27 }
0x1023   :  { %v3482_v9 = vmul.f32 %v4947_v12, %v3472_v7  ;;  %v3481_v21 = vmul.f32 %v4947_v12, %v3471_v62  ;;  %v3484_v14 = vmul.f32 %v4947_v12, %v3474_v38  ;;  %v3485_v20 = vmul.f32 %v4947_v12, %v3475_v63 }
0x1024   :  { %v6145_v18 = vadd.f32 %v3489_v15, %v3479_v39  ;;  %v6147_v35 = vadd.f32 %v3489_v15, %v3478_v48  ;;  %v6149_v44 = vadd.f32 %v3489_v15, %v3480_v16  ;;  %v6151_v37 = vadd.f32 %v3489_v15, %v3483_v23  ;;  %v462_v23 = vld [vmem:[#allocation7 + $0x80] sm:$0xff]  ;;  %v463_v39 = vld [vmem:[#allocation7 + $0x88] sm:$0xff] }
0x1025   :  { %v6153_v5 = vadd.f32 %v3489_v15, %v3482_v9  ;;  %v6155_v51 = vadd.f32 %v3489_v15, %v3481_v21  ;;  %v6157_v59 = vadd.f32 %v3489_v15, %v3484_v14  ;;  %v6159_v42 = vadd.f32 %v3489_v15, %v3485_v20  ;;  %v446_v16 = vld [vmem:[#allocation7] sm:$0xff]  ;;  %v447_v9 = vld [vmem:[#allocation7 + $0x8] sm:$0xff]  ;;  %v464_v21 = vld [vmem:[#allocation7 + $0x90] sm:$0xff] }
0x1026   :  { %v3503_v61 = vmul.f32 %v3501_v55, %v6145_v18  ;;  %v3502_v17 = vmul.f32 %v3501_v55, %v6147_v35  ;;  %v3601_v34 = vmax.f32 %v6147_v35, %v6145_v18  ;;  %v3504_v47 = vmul.f32 %v3501_v55, %v6149_v44  ;;  %v465_v14 = vld [vmem:[#allocation7 + $0x98] sm:$0xff] }
0x1027   :  { %v3602_v1 = vmax.f32 %v6149_v44, %v6155_v51  ;;  %v3633_v2 = vmax.f32 %v6153_v5, %v6151_v37  ;;  %v3634_v8 = vmax.f32 %v6157_v59, %v6159_v42  ;;  %v3506_v43 = vmul.f32 %v3501_v55, %v6153_v5 }
0x1028   :  { %3512 = vadd.xlane.f32.xlu1 %v3503_v61  ;;  %3510 = vadd.xlane.f32.xlu0 %v3502_v17  ;;  %v3505_v11 = vmul.f32 %v3501_v55, %v6155_v51  ;;  %v3507_v10 = vmul.f32 %v3501_v55, %v6151_v37  ;;  %v3508_v13 = vmul.f32 %v3501_v55, %v6157_v59  ;;  %v448_v61 = vld [vmem:[#allocation7 + $0x10] sm:$0xff]  ;;  %v449_v17 = vld [vmem:[#allocation7 + $0x18] sm:$0xff] }
0x1029   :  { %v3603_v54 = vmax.f32 %v3601_v34, %v3602_v1  ;;  %v3635_v56 = vmax.f32 %v3633_v2, %v3634_v8  ;;  %v3549_v24 = vmul.f32 %v3546_v50, %v6089_v46  ;;  %v3509_v27 = vmul.f32 %v3501_v55, %v6159_v42  ;;  %v466_v1 = vld [vmem:[#allocation7 + $0xa0] sm:$0xff]  ;;  %v467_v2 = vld [vmem:[#allocation7 + $0xa8] sm:$0xff] }
0x102a   :  { %v3548_v38 = vmul.f32 %v3546_v50, %v6086_v32  ;;  %v3550_v63 = vmul.f32 %v3546_v50, %v6092_v19  ;;  %v3671_v48 = vpack.c.bf16 %v463_v39, %v462_v23  ;;  %v3663_v55 = vpack.c.bf16 %v447_v9, %v446_v16  ;;  %v450_v8 = vld [vmem:[#allocation7 + $0x20] sm:$0xff]  ;;  %v476_v23 = vld [vmem:[#allocation7 + $0xf0] sm:$0xff]  ;;  %v477_v39 = vld [vmem:[#allocation7 + $0xf8] sm:$0xff] }
0x102b   :  { %v3604_v57 = vrot.slane %v3603_v54, 4  ;;  %v3636_v41 = vrot.slane %v3635_v56, 4  ;;  %v3672_v20 = vpack.c.bf16 %v465_v14, %v464_v21  ;;  %v3664_v34 = vpack.c.bf16 %v449_v17, %v448_v61  ;;  %v470_v50 = vld [vmem:[#allocation7 + $0xc0] sm:$0xff]  ;;  %v460_v16 = vld [vmem:[#allocation7 + $0x70] sm:$0xff]  ;;  %v461_v9 = vld [vmem:[#allocation7 + $0x78] sm:$0xff] }
0x102c   :  { %3514 = vadd.xlane.f32.xlu1 %v3504_v47  ;;  %3518 = vadd.xlane.f32.xlu0 %v3506_v43  ;;  %v451_v47 = vld [vmem:[#allocation7 + $0x28] sm:$0xff]  ;;  %v495_v21 = vld [vmem:[#allocation7 + $0x180] sm:$0xff]  ;;  %v3526_v61 = vstv %s4064_s14 }
0x102d   :  { %v3605_v22 = vmax.f32 %v3603_v54, %v3604_v57  ;;  %v3637_v33 = vmax.f32 %v3635_v56, %v3636_v41  ;;  %4304 = vmatprep.subr.bf16.mxu0 %v3671_v48  ;;  %v3673_v54 = vpack.c.bf16 %v467_v2, %v466_v1  ;;  %v3665_v43 = vpack.c.bf16 %v451_v47, %v450_v8  ;;  %v468_v57 = vld [vmem:[#allocation7 + $0xb0] sm:$0xff]  ;;  %v469_v56 = vld [vmem:[#allocation7 + $0xb8] sm:$0xff]  ;;  %v496_v14 = vld [vmem:[#allocation7 + $0x188] sm:$0xff] }
0x102e   :  { %4305 = vmatpush3.bf16.msra.mxu0 %v3663_v55  ;;  %v452_v41 = vld [vmem:[#allocation7 + $0x30] sm:$0xff]  ;;  %v3678_v48 = vpack.c.bf16 %v477_v39, %v476_v23  ;;  %v3670_v55 = vpack.c.bf16 %v461_v9, %v460_v16 }
0x102f   :  { %v3606_v40 = vrot.slane %v3605_v22, 2  ;;  %v3638_v60 = vrot.slane %v3637_v33, 2  ;;  %4306 = vmatprep.subr.bf16.mxu0 %v3672_v20  ;;  %v3866_v20 = vpack.c.bf16 %v496_v14, %v495_v21 }
0x1030   :  { %3516 = vadd.xlane.f32.xlu1 %v3505_v11  ;;  %3520 = vadd.xlane.f32.xlu0 %v3507_v10  ;;  %v453_v11 = vld [vmem:[#allocation7 + $0x38] sm:$0xff] }
0x1031   :  { %v3607_v25 = vmax.f32 %v3605_v22, %v3606_v40  ;;  %v3639_v15 = vmax.f32 %v3637_v33, %v3638_v60  ;;  %v3674_v22 = vpack.c.bf16 %v469_v56, %v468_v57  ;;  %v3666_v10 = vpack.c.bf16 %v453_v11, %v452_v41  ;;  %v471_v40 = vld [vmem:[#allocation7 + $0xc8] sm:$0xff] }
0x1032   :  { %4307 = vmatpush3.bf16.msra.mxu0 %v3664_v34  ;;  %v3675_v33 = vpack.c.bf16 %v471_v40, %v470_v50  ;;  %v455_v60 = vld [vmem:[#allocation7 + $0x48] sm:$0xff] }
0x1033   :  { %v3608_v30 = vrot.slane %v3607_v25, 1  ;;  %v3640_v29 = vrot.slane %v3639_v15, 1  ;;  %4308 = vmatprep.subr.bf16.mxu0 %v3673_v54 }
0x1034   :  { %3551 = vadd.xlane.f32.xlu1 %v3547_v3  ;;  %3522 = vadd.xlane.f32.xlu0 %v3508_v13  ;;  %v472_v13 = vld [vmem:[#allocation7 + $0xd0] sm:$0xff] }
0x1035   :  { %v3609_v6 = vmax.f32 %v3607_v25, %v3608_v30  ;;  %v3641_v12 = vmax.f32 %v3639_v15, %v3640_v29  ;;  %v454_v25 = vld [vmem:[#allocation7 + $0x40] sm:$0xff]  ;;  %v473_v30 = vld [vmem:[#allocation7 + $0xd8] sm:$0xff] }
0x1036   :  { %4309 = vmatpush3.bf16.msra.mxu0 %v3665_v43  ;;  %v3667_v3 = vpack.c.bf16 %v455_v60, %v454_v25  ;;  %v3676_v15 = vpack.c.bf16 %v473_v30, %v472_v13  ;;  %v457_v29 = vld [vmem:[#allocation7 + $0x58] sm:$0xff] }
0x1037   :  { %v3658_v7 = vsel %vm3656_vm8, %v3609_v6, %v3641_v12  ;;  %4310 = vmatprep.subr.bf16.mxu0 %v3674_v22  ;;  %v456_v6 = vld [vmem:[#allocation7 + $0x50] sm:$0xff]  ;;  %v475_v12 = vld [vmem:[#allocation7 + $0xe8] sm:$0xff] }
0x1038   :  { %3555 = vadd.xlane.f32.xlu1 %v3549_v24  ;;  %3524 = vadd.xlane.f32.xlu0 %v3509_v27  ;;  %v3662_v62 = vpack.c.bf16 %v3658_v7, %v3658_v7  ;;  %v3668_v24 = vpack.c.bf16 %v457_v29, %v456_v6  ;;  %v474_v27 = vld [vmem:[#allocation7 + $0xe0] sm:$0xff] }
0x1039   :  { %v3677_v7 = vpack.c.bf16 %v475_v12, %v474_v27  ;;  %v3649_v27 = vmax.f32 %v6089_v46, %v6092_v19 }
0x103a   :  { %3715 = vmatprep.mubr.bf16.mxu0 %v3662_v62  ;;  %4311 = vmatpush3.bf16.msra.mxu0 %v3666_v10  ;;  %v458_v62 = vld [vmem:[#allocation7 + $0x60] sm:$0xff] }
0x103b   :  { %4312 = vmatprep.subr.bf16.mxu0 %v3675_v33  ;;  %v3650_v39 = vrot.slane %v3649_v27, 4 }
0x103c   :  { %3553 = vadd.xlane.f32.xlu0 %v3548_v38  ;;  %v459_v38 = vld [vmem:[#allocation7 + $0x68] sm:$0xff] }
0x103e   :  { %4313 = vmatpush3.bf16.msra.mxu0 %v3667_v3  ;;  %v3559_v3 = vstv %s4065_s8 }
0x103f   :  { %4314 = vmatprep.subr.bf16.mxu0 %v3676_v15 }
0x1040   :  { %3557 = vadd.xlane.f32.xlu0 %v3550_v63  ;;  %v3669_v63 = vpack.c.bf16 %v459_v38, %v458_v62 }
0x1042   :  { %4315 = vmatpush3.bf16.msra.mxu0 %v3668_v24  ;;  %v3617_v24 = vmax.f32 %v6083_v49, %v6086_v32 }
0x1043   :  { %4316 = vmatprep.subr.bf16.mxu0 %v3677_v7 }
0x1044   :  { %v3618_v23 = vrot.slane %v3617_v24, 4 }
0x1046   :  { %4317 = vmatpush3.bf16.msra.mxu0 %v3669_v63 }
0x1047   :  { %4318 = vmatprep.subr.bf16.mxu0 %v3678_v48 }
0x104a   :  { %4319 = vmatpush3.bf16.msra.mxu0 %v3670_v55 }
0x104b   :  { %4335 = vmatprep.subr.bf16.mxu0 %v3866_v20 }
0x10b5   :  { %v3513_v17 = vpop.xlane.xlu1 %3512  ;;  %v3511_v34 = vpop.xlane.xlu0 %3510 }
0x10b6   :  { %v3528_v1 = vadd.f32 %v3526_v61, %v3513_v17  ;;  %v3527_v2 = vadd.f32 %v3526_v61, %v3511_v34 }
0x10b8   :  { %4948 = vtanh.f32 %v3528_v1  ;;  %v3619_v1 = vmax.f32 %v3617_v24, %v3618_v23 }
0x10b9   :  { %4950 = vtanh.f32 %v3527_v2  ;;  %v3515_v54 = vpop.xlane.xlu1 %3514  ;;  %v3519_v8 = vpop.xlane.xlu0 %3518  ;;  %v3651_v2 = vmax.f32 %v3649_v27, %v3650_v39 }
0x10ba   :  { %v3529_v47 = vadd.f32 %v3526_v61, %v3515_v54  ;;  %v3531_v56 = vadd.f32 %v3526_v61, %v3519_v8 }
0x10bc   :  { %4952 = vtanh.f32 %v3529_v47 }
0x10bd   :  { %v3517_v43 = vpop.xlane.xlu1 %3516  ;;  %v3521_v57 = vpop.xlane.xlu0 %3520 }
0x10be   :  { %v3530_v22 = vadd.f32 %v3526_v61, %v3517_v43  ;;  %v3532_v41 = vadd.f32 %v3526_v61, %v3521_v57 }
0x10c0   :  { %4954 = vtanh.f32 %v3530_v22  ;;  %v3620_v22 = vrot.slane %v3619_v1, 2 }
0x10c1   :  { %4956 = vtanh.f32 %v3532_v41  ;;  %v3552_v11 = vpop.xlane.xlu1 %3551  ;;  %v3523_v10 = vpop.xlane.xlu0 %3522 }
0x10c2   :  { %v4949_v50 = vpop.eup %4948  ;;  %4958 = vtanh.f32 %v3531_v56  ;;  %v3533_v40 = vadd.f32 %v3526_v61, %v3523_v10  ;;  %v3560_v7 = vadd.f32 %v3559_v3, %v3552_v11 }
0x10c3   :  { %v4951_v33 = vpop.eup %4950  ;;  %v3581_v25 = vmul.f32 %v4949_v50, %v6145_v18 }
0x10c4   :  { %4960 = vtanh.f32 %v3533_v40  ;;  %v3580_v60 = vmul.f32 %v4951_v33, %v6147_v35  ;;  %v3564_v21 = vmul.f32 0.5, %v3560_v7  ;;  %v3621_v40 = vmax.f32 %v3619_v1, %v3620_v22  ;;  %v500_v22 = vld [vmem:[#allocation7 + $0x1a8] sm:$0xff] }
0x10c5   :  { %v3556_v13 = vpop.xlane.xlu1 %3555  ;;  %v3525_v30 = vpop.xlane.xlu0 %3524 }
0x10c6   :  { %v4953_v15 = vpop.eup %4952  ;;  %v3562_v6 = vadd.f32 %v3559_v3, %v3556_v13  ;;  %v3534_v29 = vadd.f32 %v3526_v61, %v3525_v30  ;;  %v3592_v62 = vadd.f32 %v3581_v25, %v3580_v60  ;;  %v3622_v30 = vrot.slane %v3621_v40, 1 }
0x10c7   :  { %v3582_v12 = vmul.f32 %v4953_v15, %v6149_v44 }
0x10c8   :  { %4962 = vtanh.f32 %v3534_v29  ;;  %v3566_v18 = vmul.f32 0.5, %v3562_v6 }
0x10c9   :  { %v3554_v38 = vpop.xlane.xlu0 %3553  ;;  %v3593_v16 = vadd.f32 %v3592_v62, %v3582_v12 }
0x10ca   :  { %v4955_v35 = vpop.eup %4954  ;;  %v3561_v63 = vadd.f32 %v3559_v3, %v3554_v38  ;;  %4964 = vtanh.f32 %v3566_v18  ;;  %v3623_v18 = vmax.f32 %v3621_v40, %v3622_v30  ;;  %v502_v40 = vld [vmem:[#allocation7 + $0x1b8] sm:$0xff] }
0x10cb   :  { %v4957_v48 = vpop.eup %4956  ;;  %v3583_v9 = vmul.f32 %v4955_v35, %v6155_v51 }
0x10cc   :  { %v4959_v55 = vpop.eup %4958  ;;  %v3565_v14 = vmul.f32 0.5, %v3561_v63  ;;  %v3585_v61 = vmul.f32 %v4957_v48, %v6151_v37  ;;  %v3652_v37 = vrot.slane %v3651_v2, 2  ;;  %v479_v48 = vld [vmem:[#allocation7 + $0x100] sm:$0xff] }
0x10cd   :  { %v3594_v20 = vadd.f32 %v3593_v16, %v3583_v9  ;;  %v3558_v44 = vpop.xlane.xlu0 %3557  ;;  %v3584_v54 = vmul.f32 %v4959_v55, %v6153_v5  ;;  %v480_v16 = vld [vmem:[#allocation7 + $0x108] sm:$0xff] }
0x10ce   :  { %v4961_v17 = vpop.eup %4960  ;;  %4966 = vtanh.f32 %v3565_v14  ;;  %v3563_v34 = vadd.f32 %v3559_v3, %v3558_v44  ;;  %v3653_v33 = vmax.f32 %v3651_v2, %v3652_v37  ;;  %v3858_v2 = vpack.c.bf16 %v480_v16, %v479_v48 }
0x10cf   :  { %v3595_v8 = vrot.slane %v3594_v20, 4  ;;  %v3586_v47 = vmul.f32 %v4961_v17, %v6157_v59  ;;  %4968 = vtanh.f32 %v3564_v21  ;;  %v3624_v57 = vadd.f32 %v3585_v61, %v3584_v54  ;;  %v498_v61 = vld [vmem:[#allocation7 + $0x198] sm:$0xff] }
0x10d0   :  { %v3567_v51 = vmul.f32 0.5, %v3563_v34  ;;  %v3654_v15 = vrot.slane %v3653_v33, 1 }
0x10d1   :  { %v3596_v43 = vadd.f32 %v3595_v8, %v3594_v20  ;;  %v3625_v41 = vadd.f32 %v3624_v57, %v3586_v47  ;;  %v497_v20 = vld [vmem:[#allocation7 + $0x190] sm:$0xff] }
0x10d2   :  { %v4963_v56 = vpop.eup %4962  ;;  %4970 = vtanh.f32 %v3567_v51  ;;  %v3655_v38 = vmax.f32 %v3653_v33, %v3654_v15  ;;  %v3867_v8 = vpack.c.bf16 %v498_v61, %v497_v20  ;;  %v481_v47 = vld [vmem:[#allocation7 + $0x110] sm:$0xff]  ;;  %v482_v51 = vld [vmem:[#allocation7 + $0x118] sm:$0xff] }
0x10d3   :  { %v3587_v11 = vmul.f32 %v4963_v56, %v6159_v42  ;;  %v3597_v10 = vrot.slane %v3596_v43, 2  ;;  %v499_v56 = vld [vmem:[#allocation7 + $0x1a0] sm:$0xff]  ;;  %v510_v20 = vld [vmem:[#allocation7 + $0x1f8] sm:$0xff] }
0x10d4   :  { %v4965_v25 = vpop.eup %4964  ;;  %v3660_v44 = vsel %vm3656_vm8, %v3623_v18, %v3655_v38  ;;  %v489_v38 = vld [vmem:[#allocation7 + $0x150] sm:$0xff] }
0x10d5   :  { %v3626_v50 = vadd.f32 %v3625_v41, %v3587_v11  ;;  %v3598_v3 = vadd.f32 %v3597_v10, %v3596_v43  ;;  %v3574_v6 = vadd.f32 1.0, %v4965_v25  ;;  %v3857_v57 = vpack.c.bf16 %v3660_v44, %v3660_v44  ;;  %v483_v41 = vld [vmem:[#allocation7 + $0x120] sm:$0xff]  ;;  %v484_v11 = vld [vmem:[#allocation7 + $0x128] sm:$0xff] }
0x10d6   :  { %v3860_v25 = vpack.c.bf16 %v484_v11, %v483_v41  ;;  %v223_v41 = vld [vmem:[#allocation2 + $0x328] sm:$0xff] }
0x10d7   :  { %v3627_v5 = vrot.slane %v3626_v50, 4  ;;  %v3599_v42 = vrot.slane %v3598_v3, 1  ;;  %v3578_v35 = vmul.f32 0.5, %v3574_v6 }
0x10d8   :  { %v4967_v60 = vpop.eup %4966 }
0x10d9   :  { %v3628_v59 = vadd.f32 %v3627_v5, %v3626_v50  ;;  %v4969_v13 = vpop.eup %4968  ;;  %v3573_v24 = vadd.f32 1.0, %v4967_v60  ;;  %v3600_v21 = vadd.f32 %v3599_v42, %v3598_v3  ;;  %v3590_v17 = vmul.f32 %v3578_v35, %v6089_v46  ;;  %v501_v50 = vld [vmem:[#allocation7 + $0x1b0] sm:$0xff]  ;;  %v486_v60 = vld [vmem:[#allocation7 + $0x138] sm:$0xff] }
0x10da   :  { %v3572_v12 = vadd.f32 1.0, %v4969_v13  ;;  %v3859_v46 = vpack.c.bf16 %v482_v51, %v481_v47  ;;  %v485_v5 = vld [vmem:[#allocation7 + $0x130] sm:$0xff]  ;;  %v504_v13 = vld [vmem:[#allocation7 + $0x1c8] sm:$0xff]  ;;  %v490_v35 = vld [vmem:[#allocation7 + $0x158] sm:$0xff] }
0x10db   :  { %v3629_v29 = vrot.slane %v3628_v59, 2  ;;  %v3577_v63 = vmul.f32 0.5, %v3573_v24  ;;  %v3861_v15 = vpack.c.bf16 %v486_v60, %v485_v5  ;;  %v488_v24 = vld [vmem:[#allocation7 + $0x148] sm:$0xff]  ;;  %v3863_v16 = vpack.c.bf16 %v490_v35, %v489_v38  ;;  %v228_v5 = vld [vmem:[#allocation2 + $0x350] sm:$0xff]  ;;  %v229_v60 = vld [vmem:[#allocation2 + $0x358] sm:$0xff] }
0x10dc   :  { %v4971_v27 = vpop.eup %4970  ;;  %v3576_v9 = vmul.f32 0.5, %v3572_v12  ;;  %v505_v12 = vld [vmem:[#allocation7 + $0x1d0] sm:$0xff] }
0x10dd   :  { %v3630_v7 = vadd.f32 %v3629_v29, %v3628_v59  ;;  %v3575_v62 = vadd.f32 1.0, %v4971_v27  ;;  %v3589_v34 = vmul.f32 %v3577_v63, %v6086_v32  ;;  %v3868_v32 = vpack.c.bf16 %v500_v22, %v499_v56  ;;  %v503_v59 = vld [vmem:[#allocation7 + $0x1c0] sm:$0xff]  ;;  %v220_v22 = vld [vmem:[#allocation2 + $0x310] sm:$0xff] }
0x10de   :  { %v3588_v43 = vmul.f32 %v3576_v9, %v6083_v49  ;;  %v3869_v49 = vpack.c.bf16 %v502_v40, %v501_v50  ;;  %v3870_v6 = vpack.c.bf16 %v504_v13, %v503_v59  ;;  %v487_v29 = vld [vmem:[#allocation7 + $0x140] sm:$0xff]  ;;  %v225_v50 = vld [vmem:[#allocation2 + $0x338] sm:$0xff]  ;;  %v231_v13 = vld [vmem:[#allocation2 + $0x368] sm:$0xff] }
0x10df   :  { %v3579_v23 = vmul.f32 0.5, %v3575_v62  ;;  %v3631_v39 = vrot.slane %v3630_v7, 1  ;;  %v3862_v42 = vpack.c.bf16 %v488_v24, %v487_v29  ;;  %v230_v59 = vld [vmem:[#allocation2 + $0x360] sm:$0xff] }
0x10e0   :  { %v3610_v37 = vadd.f32 %v3589_v34, %v3588_v43 }
0x10e1   :  { %v3591_v55 = vmul.f32 %v3579_v23, %v6092_v19  ;;  %v3632_v14 = vadd.f32 %v3631_v39, %v3630_v7  ;;  %v506_v7 = vld [vmem:[#allocation7 + $0x1d8] sm:$0xff]  ;;  %v507_v23 = vld [vmem:[#allocation7 + $0x1e0] sm:$0xff]  ;;  %v508_v39 = vld [vmem:[#allocation7 + $0x1e8] sm:$0xff] }
0x10e2   :  { %v3611_v33 = vrot.slane %v3610_v37, 4  ;;  %v3871_v18 = vpack.c.bf16 %v506_v7, %v505_v12  ;;  %v3872_v9 = vpack.c.bf16 %v508_v39, %v507_v23 }
0x10e3   :  { %v3657_v1 = vsel %vm3656_vm8, %v3600_v21, %v3632_v14  ;;  %v3642_v19 = vadd.f32 %v3591_v55, %v3590_v17  ;;  %v491_v55 = vld [vmem:[#allocation7 + $0x160] sm:$0xff]  ;;  %v492_v21 = vld [vmem:[#allocation7 + $0x168] sm:$0xff]  ;;  %v509_v14 = vld [vmem:[#allocation7 + $0x1f0] sm:$0xff] }
0x10e4   :  { %v3661_v54 = vpack.c.bf16 %v3657_v1, %v3657_v1  ;;  %v3612_v30 = vadd.f32 %v3611_v33, %v3610_v37  ;;  %v3864_v44 = vpack.c.bf16 %v492_v21, %v491_v55  ;;  %v3873_v34 = vpack.c.bf16 %v510_v20, %v509_v14  ;;  %v493_v1 = vld [vmem:[#allocation7 + $0x170] sm:$0xff]  ;;  %v221_v37 = vld [vmem:[#allocation2 + $0x318] sm:$0xff]  ;;  %v226_v33 = vld [vmem:[#allocation2 + $0x340] sm:$0xff] }
0x10e5   :  { %v3643_v10 = vrot.slane %v3642_v19, 4 }
0x10e6   :  { %3716 = vmatmul.mubr.bf16.vlgmr.msra.gmra.mrb[72].mxu0 %v3661_v54  ;;  %v3613_v62 = vrot.slane %v3612_v30, 2 }
0x10e7   :  { %4336 = vmatpush3.bf16.msra.mxu0 %v3858_v2  ;;  %3910 = vmatprep.mubr.bf16.mxu0 %v3857_v57  ;;  %v3644_v3 = vadd.f32 %v3643_v10, %v3642_v19  ;;  %v494_v2 = vld [vmem:[#allocation7 + $0x178] sm:$0xff]  ;;  %v218_v19 = vld [vmem:[#allocation2 + $0x300] sm:$0xff]  ;;  %v219_v57 = vld [vmem:[#allocation2 + $0x308] sm:$0xff] }
0x10e8   :  { %4337 = vmatprep.subr.bf16.mxu0 %v3867_v8  ;;  %v3614_v48 = vadd.f32 %v3613_v62, %v3612_v30  ;;  %v3865_v8 = vpack.c.bf16 %v494_v2, %v493_v1  ;;  %v3760_v56 = vpack.c.bf16 %v219_v57, %v218_v19  ;;  %v224_v10 = vld [vmem:[#allocation2 + $0x330] sm:$0xff]  ;;  %v3766_v30 = vpack.c.bf16 %v231_v13, %v230_v59 }
0x10e9   :  { %v3645_v27 = vrot.slane %v3644_v3, 2  ;;  %v3763_v40 = vpack.c.bf16 %v225_v50, %v224_v10 }
0x10ea   :  { %v3615_v17 = vrot.slane %v3614_v48, 1  ;;  %4695 = vmatpush3.bf16.msra.mxu1 %v3760_v56 }
0x10eb   :  { %4338 = vmatpush3.bf16.msra.mxu0 %v3859_v46  ;;  %v3646_v63 = vadd.f32 %v3645_v27, %v3644_v3  ;;  %4696 = vmatprep.subr.bf16.mxu1 %v5076_v58  ;;  %v3761_v46 = vpack.c.bf16 %v221_v37, %v220_v22  ;;  %v3765_v3 = vpack.c.bf16 %v229_v60, %v228_v5 }
0x10ec   :  { %4339 = vmatprep.subr.bf16.mxu0 %v3868_v32  ;;  %v3616_v47 = vadd.f32 %v3615_v17, %v3614_v48  ;;  %v222_v32 = vld [vmem:[#allocation2 + $0x320] sm:$0xff]  ;;  %v3682_v27 = vrot.slane %v6137_v45, %v5691_v28  ;;  %v6220_v17 = vld [vmem:[%s6280_s11 + $0x48] sm:$0xff] }
0x10ed   :  { %v3647_v61 = vrot.slane %v3646_v63, 1  ;;  %v3762_v11 = vpack.c.bf16 %v223_v41, %v222_v32  ;;  %v3877_v2 = vrot.slane %v6220_v17, %v5644_v31 }
0x10ee   :  { %4697 = vmatpush3.bf16.msra.mxu1 %v3761_v46 }
0x10ef   :  { %4340 = vmatpush3.bf16.msra.mxu0 %v3860_v25  ;;  %v3648_v54 = vadd.f32 %v3647_v61, %v3646_v63  ;;  %4698 = vmatprep.subr.bf16.mxu1 %v5076_v58  ;;  %v227_v25 = vld [vmem:[#allocation2 + $0x348] sm:$0xff] }
0x10f0   :  { %4341 = vmatprep.subr.bf16.mxu0 %v3869_v49  ;;  %v3764_v49 = vpack.c.bf16 %v227_v25, %v226_v33  ;;  %v3749_v33 = vrot.slane %v6137_v45, %v5688_v4 }
0x10f1   :  { %v3659_v51 = vsel %vm3656_vm8, %v3616_v47, %v3648_v54 }
0x10f2   :  { %v3856_v43 = vpack.c.bf16 %v3659_v51, %v3659_v51  ;;  %4699 = vmatpush3.bf16.msra.mxu1 %v3762_v11 }
0x10f3   :  { %4342 = vmatpush3.bf16.msra.mxu0 %v3861_v15  ;;  %4700 = vmatprep.subr.bf16.mxu1 %v5076_v58  ;;  %v232_v15 = vld [vmem:[#allocation2 + $0x370] sm:$0xff] }
0x10f4   :  { %4343 = vmatprep.subr.bf16.mxu0 %v3870_v6  ;;  %v233_v6 = vld [vmem:[#allocation2 + $0x378] sm:$0xff] }
0x10f5   :  { %v3767_v29 = vpack.c.bf16 %v233_v6, %v232_v15  ;;  %v235_v15 = vld [vmem:[#allocation2 + $0x380] sm:$0xff]  ;;  %v236_v6 = vld [vmem:[#allocation2 + $0x388] sm:$0xff] }
0x10f6   :  { %4701 = vmatpush3.bf16.msra.mxu1 %v3763_v40 }
0x10f7   :  { %4344 = vmatpush3.bf16.msra.mxu0 %v3862_v42  ;;  %4702 = vmatprep.subr.bf16.mxu1 %v5076_v58 }
0x10f8   :  { %4345 = vmatprep.subr.bf16.mxu0 %v3871_v18 }
0x10fa   :  { %4703 = vmatpush3.bf16.msra.mxu1 %v3764_v49 }
0x10fb   :  { %4346 = vmatpush3.bf16.msra.mxu0 %v3863_v16  ;;  %4704 = vmatprep.subr.bf16.mxu1 %v5076_v58 }
0x10fc   :  { %4347 = vmatprep.subr.bf16.mxu0 %v3872_v9 }
0x10fe   :  { %4705 = vmatpush3.bf16.msra.mxu1 %v3765_v3  ;;  %v3757_v3 = vrot.slane %v6137_v45, %v5764_v0 }
0x10ff   :  { %4348 = vmatpush3.bf16.msra.mxu0 %v3864_v44  ;;  %4706 = vmatprep.subr.bf16.mxu1 %v5076_v58 }
0x1100   :  { %4349 = vmatprep.subr.bf16.mxu0 %v3873_v34 }
0x1102   :  { %4707 = vmatpush3.bf16.msra.mxu1 %v3766_v30 }
0x1103   :  { %4350 = vmatpush3.bf16.msra.mxu0 %v3865_v8  ;;  %4708 = vmatprep.subr.bf16.mxu1 %v5076_v58 }
0x1106   :  { %3911 = vmatmul.mubr.bf16.vlgmr.msra.gmra.mrb[76].mxu0 %v3856_v43  ;;  %4709 = vmatpush3.bf16.msra.mxu1 %v3767_v29 }
0x1107   :  { %4714 = vmatprep.subr.bf16.mxu1 %v5076_v58 }
0x11b9   :  { %v4320_v24 = vpop.f32.mrb[72].mxu0 }
0x11ba   :  { %v4321_v12 = vpop.f32.mrb[73].mxu0 }
0x11bb   :  { %v4322_v7 = vadd.f32 %v4321_v12, %v4320_v24  ;;  %v4323_v62 = vpop.f32.mrb[74].mxu0 }
0x11bc   :  { %v4324_v42 = vpop.f32.mrb[75].mxu0  ;;  %v237_v62 = vld [vmem:[#allocation2 + $0x390] sm:$0xff] }
0x11bd   :  { %v3718_v18 = vadd.f32 %v4322_v7, %v3682_v27  ;;  %v3953_v27 = vpack.c.bf16 %v236_v6, %v235_v15  ;;  %v238_v42 = vld [vmem:[#allocation2 + $0x398] sm:$0xff] }
0x11bf   :  { %vm3723_vm0 = vcmp.gt.f32.partialorder %v3718_v18, 0.0  ;;  %v3724_v38 = vmul.f32 0.01, %v3718_v18 }
0x11c1   :  { %v3725_v35 = vsel %vm3723_vm0, %v3718_v18, %v3724_v38 }
0x11c2   :  { %v3727_v63 = vsel %vm3726_vm1, %v3725_v35, 0.0 }
0x11c3   :  { %v3728_v23 = vrot.slane %v3727_v63, 4 }
0x11c5   :  { %v3729_v39 = vadd.f32 %v3728_v23, %v3727_v63  ;;  %v239_v63 = vld [vmem:[#allocation2 + $0x3a0] sm:$0xff]  ;;  %v240_v23 = vld [vmem:[#allocation2 + $0x3a8] sm:$0xff] }
0x11c7   :  { %v3730_v48 = vrot.slane %v3729_v39, 2 }
0x11c9   :  { %v3731_v16 = vadd.f32 %v3730_v48, %v3729_v39 }
0x11cb   :  { %v3732_v9 = vrot.slane %v3731_v16, 1 }
0x11cd   :  { %v3733_v55 = vadd.f32 %v3732_v9, %v3731_v16  ;;  %v3955_v16 = vpack.c.bf16 %v240_v23, %v239_v63  ;;  %v241_v9 = vld [vmem:[#allocation2 + $0x3b0] sm:$0xff] }
0x11cf   :  { %v3735_v21 = vmul.f32 0.5, %v3733_v55  ;;  %v242_v55 = vld [vmem:[#allocation2 + $0x3b8] sm:$0xff] }
0x11d1   :  { %v3736_v14 = vsub.f32 %v3725_v35, %v3735_v21  ;;  %v3954_v35 = vpack.c.bf16 %v238_v42, %v237_v62 }
0x11d3   :  { %v3737_v20 = vmul.f32 %v3736_v14, %v3736_v14  ;;  %v3750_v5 = vmul.f32 %v3749_v33, %v3736_v14 }
0x11d5   :  { %v3738_v61 = vsel %vm3726_vm1, %v3737_v20, 0.0  ;;  %v3956_v20 = vpack.c.bf16 %v242_v55, %v241_v9 }
0x11d6   :  { %v3739_v44 = vrot.slane %v3738_v61, 4 }
0x11d8   :  { %v3740_v34 = vadd.f32 %v3739_v44, %v3738_v61  ;;  %v243_v61 = vld [vmem:[#allocation2 + $0x3c0] sm:$0xff]  ;;  %v244_v44 = vld [vmem:[#allocation2 + $0x3c8] sm:$0xff] }
0x11d9   :  { %v4351_v1 = vpop.f32.mrb[76].mxu0 }
0x11da   :  { %v3741_v54 = vrot.slane %v3740_v34, 2  ;;  %v4352_v8 = vpop.f32.mrb[77].mxu0 }
0x11db   :  { %v4353_v47 = vadd.f32 %v4352_v8, %v4351_v1  ;;  %v4354_v51 = vpop.f32.mrb[78].mxu0  ;;  %v246_v8 = vld [vmem:[#allocation2 + $0x3d8] sm:$0xff] }
0x11dc   :  { %v3742_v43 = vadd.f32 %v3741_v54, %v3740_v34  ;;  %v4355_v19 = vpop.f32.mrb[79].mxu0  ;;  %v245_v54 = vld [vmem:[#allocation2 + $0x3d0] sm:$0xff]  ;;  %v247_v51 = vld [vmem:[#allocation2 + $0x3e0] sm:$0xff] }
0x11dd   :  { %v3913_v57 = vadd.f32 %v4353_v47, %v3877_v2  ;;  %v3957_v2 = vpack.c.bf16 %v244_v44, %v243_v61  ;;  %v3958_v47 = vpack.c.bf16 %v246_v8, %v245_v54  ;;  %v3942_v19 = vrot.slane %v6220_v17, %v5691_v28 }
0x11de   :  { %v3743_v56 = vrot.slane %v3742_v43, 1  ;;  %v3771_v28 = vrot.slane %v6137_v45, %v5771_v26 }
0x11df   :  { %vm3918_vm2 = vcmp.gt.f32.partialorder %v3913_v57, 0.0  ;;  %v3919_v22 = vmul.f32 0.01, %v3913_v57 }
0x11e0   :  { %v3744_v37 = vadd.f32 %v3743_v56, %v3742_v43  ;;  %v248_v43 = vld [vmem:[#allocation2 + $0x3e8] sm:$0xff]  ;;  %v249_v56 = vld [vmem:[#allocation2 + $0x3f0] sm:$0xff] }
0x11e1   :  { %v3920_v46 = vsel %vm3918_vm2, %v3913_v57, %v3919_v22  ;;  %v3959_v57 = vpack.c.bf16 %v248_v43, %v247_v51  ;;  %v250_v22 = vld [vmem:[#allocation2 + $0x3f8] sm:$0xff] }
0x11e2   :  { %v3745_v32 = vmul.f32 0.5, %v3744_v37  ;;  %v3921_v41 = vsel %vm3726_vm1, %v3920_v46, 0.0 }
0x11e3   :  { %v3922_v11 = vrot.slane %v3921_v41, 4 }
0x11e4   :  { %v3751_v10 = vadd.f32 1e-05, %v3745_v32 }
0x11e5   :  { %v3923_v50 = vadd.f32 %v3922_v11, %v3921_v41  ;;  %v3960_v41 = vpack.c.bf16 %v250_v22, %v249_v56 }
0x11e6   :  { %4972 = vrsqrt.f32 %v3751_v10 }
0x11e7   :  { %v3924_v31 = vrot.slane %v3923_v50, 2 }
0x11e9   :  { %v3925_v40 = vadd.f32 %v3924_v31, %v3923_v50 }
0x11eb   :  { %v3926_v25 = vrot.slane %v3925_v40, 1 }
0x11ed   :  { %v3927_v49 = vadd.f32 %v3926_v25, %v3925_v40 }
0x11ef   :  { %v3928_v60 = vmul.f32 0.5, %v3927_v49 }
0x11f0   :  { %v4973_v59 = vpop.eup %4972 }
0x11f1   :  { %v3753_v13 = vmul.f32 %v4973_v59, %v3750_v5  ;;  %v3929_v30 = vsub.f32 %v3920_v46, %v3928_v60  ;;  %v3950_v46 = vrot.slane %v6220_v17, %v5688_v4 }
0x11f3   :  { %v3930_v29 = vmul.f32 %v3929_v30, %v3929_v30  ;;  %v3758_v24 = vadd.f32 %v3757_v3, %v3753_v13  ;;  %v3943_v37 = vmul.f32 %v3942_v19, %v3929_v30 }
0x11f5   :  { %v3931_v12 = vsel %vm3726_vm1, %v3930_v29, 0.0  ;;  %v3759_v7 = vpack.c.bf16 %v3758_v24, %v3758_v24 }
0x11f6   :  { %v3932_v18 = vrot.slane %v3931_v12, 4 }
0x11f7   :  { %4711 = vmatmul.mubr.bf16.vlgmr.msra.gmra.mrb[64].mxu1 %v3759_v7  ;;  %v3964_v7 = vrot.slane %v6220_v17, %v5764_v0 }
0x11f8   :  { %v3933_v38 = vadd.f32 %v3932_v18, %v3931_v12  ;;  %4715 = vmatpush3.bf16.msra.mxu1 %v3953_v27  ;;  %4730 = vmatprep.mubr.msk.bf16.mxu1 %vm5077_vm9, %v5076_v58 }
0x11f9   :  { %4716 = vmatprep.subr.bf16.mxu1 %v5076_v58 }
0x11fa   :  { %v3934_v39 = vrot.slane %v3933_v38, 2 }
0x11fc   :  { %v3935_v48 = vadd.f32 %v3934_v39, %v3933_v38  ;;  %4717 = vmatpush3.bf16.msra.mxu1 %v3954_v35 }
0x11fd   :  { %4718 = vmatprep.subr.bf16.mxu1 %v5076_v58 }
0x11fe   :  { %v3936_v21 = vrot.slane %v3935_v48, 1 }
0x1200   :  { %v3937_v14 = vadd.f32 %v3936_v21, %v3935_v48  ;;  %4719 = vmatpush3.bf16.msra.mxu1 %v3955_v16 }
0x1201   :  { %4720 = vmatprep.subr.bf16.mxu1 %v5076_v58 }
0x1202   :  { %v3938_v34 = vmul.f32 0.5, %v3937_v14 }
0x1204   :  { %v3944_v1 = vadd.f32 1e-05, %v3938_v34  ;;  %4721 = vmatpush3.bf16.msra.mxu1 %v3956_v20  ;;  %v3836_v34 = vrot.slane %v6220_v17, %v5352_v36 }
0x1205   :  { %4722 = vmatprep.subr.bf16.mxu1 %v5076_v58 }
0x1206   :  { %4974 = vrsqrt.f32 %v3944_v1 }
0x1208   :  { %4723 = vmatpush3.bf16.msra.mxu1 %v3957_v2 }
0x1209   :  { %4724 = vmatprep.subr.bf16.mxu1 %v5076_v58 }
0x120c   :  { %4725 = vmatpush3.bf16.msra.mxu1 %v3958_v47  ;;  %v3844_v47 = vrot.slane %v6220_v17, %v5446_v52 }
0x120d   :  { %4726 = vmatprep.subr.bf16.mxu1 %v5076_v58 }
0x1210   :  { %v4975_v32 = vpop.eup %4974  ;;  %4727 = vmatpush3.bf16.msra.mxu1 %v3959_v57  ;;  %v3849_v57 = vrot.slane %v6220_v17, %v5449_v53  ;;  %v4029_v53 = vrot.slane %v6220_v17, %v5771_v26  ;;  %v3854_v26 = vstv %s4066_s15 }
0x1211   :  { %4728 = vmatprep.subr.bf16.mxu1 %v5076_v58  ;;  %v3946_v11 = vmul.f32 %v4975_v32, %v3943_v37 }
0x1213   :  { %v3951_v10 = vadd.f32 %v3950_v46, %v3946_v11 }
0x1214   :  { %4729 = vmatpush3.bf16.msra.mxu1 %v3960_v41 }
0x1215   :  { %v3952_v50 = vpack.c.bf16 %v3951_v10, %v3951_v10 }
0x1217   :  { %4731 = vmatmul.mubr.bf16.vlgmr.msra.gmra.mrb[68].mxu1 %v3952_v50 }
0x12ca   :  { %v3806_v31 = vpop.f32.mrb[64].mxu1 }
0x12cb   :  { %v3807_v40 = vadd.f32 %v3806_v31, %v3771_v28  ;;  %v4712_v33 = vpop.f32.mrb[65].mxu1 }
0x12cc   :  { %v3809_v25 = vpop.f32.mrb[66].mxu1 }
0x12cd   :  { %vm3812_vm3 = vcmp.gt.f32.partialorder %v3807_v40, 0.0  ;;  %v3813_v49 = vmul.f32 0.01, %v3807_v40  ;;  %v4713_v4 = vpop.f32.mrb[67].mxu1  ;;  %v107_v25 = vld [vmem:[%s6280_s11 + $0x60] sm:$0x3] }
0x12ce   :  { %v4037_v4 = vrot.slane %v107_v25, %v5352_v36 }
0x12cf   :  { %v3814_v5 = vsel %vm3812_vm3, %v3807_v40, %v3813_v49 }
0x12d0   :  { %v3815_v60 = vsel %vm3726_vm1, %v3814_v5, 0.0 }
0x12d1   :  { %v3816_v3 = vrot.slane %v3815_v60, 4 }
0x12d3   :  { %v3817_v58 = vadd.f32 %v3816_v3, %v3815_v60  ;;  %v4042_v3 = vrot.slane %v107_v25, %v5446_v52 }
0x12d5   :  { %v3818_v59 = vrot.slane %v3817_v58, 2 }
0x12d7   :  { %v3819_v13 = vadd.f32 %v3818_v59, %v3817_v58 }
0x12d9   :  { %v3820_v30 = vrot.slane %v3819_v13, 1 }
0x12db   :  { %v3821_v15 = vadd.f32 %v3820_v30, %v3819_v13  ;;  %v4047_v30 = vstv %s4067_s16 }
0x12dd   :  { %v3822_v6 = vmul.f32 0.5, %v3821_v15 }
0x12df   :  { %v3823_v29 = vsub.f32 %v3814_v5, %v3822_v6  ;;  %v4049_v6 = vstv %s4068_s3 }
0x12e1   :  { %v3824_v24 = vmul.f32 %v3823_v29, %v3823_v29  ;;  %v3837_v54 = vmul.f32 %v3836_v34, %v3823_v29  ;;  %v4051_v29 = vstv %s4069_s17 }
0x12e3   :  { %v3825_v45 = vsel %vm3726_vm1, %v3824_v24, 0.0 }
0x12e4   :  { %v3826_v27 = vrot.slane %v3825_v45, 4 }
0x12e6   :  { %v3827_v12 = vadd.f32 %v3826_v27, %v3825_v45 }
0x12e8   :  { %v3828_v62 = vrot.slane %v3827_v12, 2 }
0x12ea   :  { %v3829_v42 = vadd.f32 %v3828_v62, %v3827_v12  ;;  %v3999_v18 = vpop.f32.mrb[68].mxu1 }
0x12eb   :  { %v4000_v38 = vadd.f32 %v3999_v18, %v3964_v7  ;;  %v4732_v35 = vpop.f32.mrb[69].mxu1 }
0x12ec   :  { %v3830_v63 = vrot.slane %v3829_v42, 1  ;;  %v4002_v23 = vpop.f32.mrb[70].mxu1 }
0x12ed   :  { %vm4005_vm4 = vcmp.gt.f32.partialorder %v4000_v38, 0.0  ;;  %v4006_v39 = vmul.f32 0.01, %v4000_v38  ;;  %v4733_v48 = vpop.f32.mrb[71].mxu1 }
0x12ee   :  { %v3831_v16 = vadd.f32 %v3830_v63, %v3829_v42 }
0x12ef   :  { %v4007_v9 = vsel %vm4005_vm4, %v4000_v38, %v4006_v39 }
0x12f0   :  { %v3832_v55 = vmul.f32 0.5, %v3831_v16  ;;  %v4008_v21 = vsel %vm3726_vm1, %v4007_v9, 0.0 }
0x12f1   :  { %v4009_v14 = vrot.slane %v4008_v21, 4 }
0x12f2   :  { %v3838_v20 = vadd.f32 1e-05, %v3832_v55 }
0x12f3   :  { %v4010_v61 = vadd.f32 %v4009_v14, %v4008_v21 }
0x12f4   :  { %4976 = vrsqrt.f32 %v3838_v20 }
0x12f5   :  { %v4011_v0 = vrot.slane %v4010_v61, 2 }
0x12f7   :  { %v4012_v44 = vadd.f32 %v4011_v0, %v4010_v61 }
0x12f9   :  { %v4013_v1 = vrot.slane %v4012_v44, 1 }
0x12fb   :  { %v4014_v2 = vadd.f32 %v4013_v1, %v4012_v44 }
0x12fd   :  { %v4015_v8 = vmul.f32 0.5, %v4014_v2 }
0x12fe   :  { %v4977_v51 = vpop.eup %4976 }
0x12ff   :  { %v4016_v43 = vsub.f32 %v4007_v9, %v4015_v8  ;;  %v3840_v19 = vmul.f32 %v4977_v51, %v3837_v54 }
0x1301   :  { %v4017_v56 = vmul.f32 %v4016_v43, %v4016_v43  ;;  %v3845_v22 = vadd.f32 %v3844_v47, %v3840_v19  ;;  %v4030_v49 = vmul.f32 %v4029_v53, %v4016_v43 }
0x1303   :  { %v4018_v37 = vsel %vm3726_vm1, %v4017_v56, 0.0  ;;  %v3850_v46 = vmul.f32 %v3849_v57, %v3845_v22 }
0x1304   :  { %v4019_v32 = vrot.slane %v4018_v37, 4 }
0x1305   :  { %v3851_v41 = vsel %vm3726_vm1, %v3850_v46, 0.0 }
0x1306   :  { %v4020_v11 = vadd.f32 %v4019_v32, %v4018_v37  ;;  %3852 = vadd.xlane.f32.xlu1 %v3851_v41 }
0x1308   :  { %v4021_v10 = vrot.slane %v4020_v11, 2 }
0x130a   :  { %v4022_v50 = vadd.f32 %v4021_v10, %v4020_v11 }
0x130c   :  { %v4023_v28 = vrot.slane %v4022_v50, 1 }
0x130e   :  { %v4024_v31 = vadd.f32 %v4023_v28, %v4022_v50 }
0x1310   :  { %v4025_v40 = vmul.f32 0.5, %v4024_v31 }
0x1312   :  { %v4031_v33 = vadd.f32 1e-05, %v4025_v40 }
0x1314   :  { %4978 = vrsqrt.f32 %v4031_v33 }
0x131e   :  { %v4979_v5 = vpop.eup %4978 }
0x131f   :  { %v4033_v60 = vmul.f32 %v4979_v5, %v4030_v49 }
0x1321   :  { %v4038_v58 = vadd.f32 %v4037_v4, %v4033_v60 }
0x1323   :  { %v4043_v59 = vmul.f32 %v4042_v3, %v4038_v58 }
0x1325   :  { %v4044_v13 = vsel %vm3726_vm1, %v4043_v59, 0.0 }
0x1326   :  { %4045 = vadd.xlane.f32.xlu0 %v4044_v13 }
0x1393   :  { %v3853_v17 = vpop.xlane.xlu1 %3852 }
0x1394   :  { %v3855_v15 = vadd.f32 %v3854_v26, %v3853_v17 }
0x1396   :  { %v4050_v45 = vmul.f32 %v4049_v6, %v3855_v15 }
0x13b3   :  { %v4046_v36 = vpop.xlane.xlu0 %4045 }
0x13b4   :  { %v4048_v24 = vadd.f32 %v4047_v30, %v4046_v36 }
0x13b6   :  { %v4052_v27 = vmul.f32 %v4051_v29, %v4048_v24 }
0x13b8   :  { %v4053_v52 = vadd.f32 %v4052_v27, %v4050_v45 }
0x13ba   :  { %4055 = vst.msk [vmem:[%s6282_s13] sm:$0x3] %vm4054_vm6, %v4053_v52 }
0x13bb   :  { %4060 = vsyncpa [#allocation3], 1 }
0x13bc   :  { %4061 = vsyncpa [#allocation6], 1 }
0x13bd   :  { %4062 = vsyncpa [#allocation4], 1 }

</bundles_post_ra>
